<compile_context>
chip_gen: v7x
topology: tpu7x:2x2x1
jax: 0.10.0
libtpu: 0.0.40
codegen_flags: <defaults>
</compile_context>

<pallas_src>
import functools

import jax
import jax.numpy as jnp
from jax import lax
from jax.experimental import pallas as pl
from jax.experimental.pallas import tpu as pltpu

_F32 = jnp.float32


def _vq_kernel(z_ref, e_ref, esqh_ref, q_ref, sse_ref, *,
               tile_rows, n_valid, use_bf16_cross):
    """One grid step quantizes a (tile_rows, D) tile of flattened latents.

    z_ref   : (TN, D)   VMEM -- tile of flattened latents
    e_ref   : (Kp, D)   VMEM -- lane-padded codebook (resident across the grid)
    esqh_ref: (1, Kp)   VMEM -- precomputed 0.5*||e||^2 (huge for pad rows)
    q_ref   : (TN, D)   VMEM -- quantized output tile
    sse_ref : (1, 1, D) VMEM -- per-tile lane-wise partial sum of squared errors
    """
    z = z_ref[...].astype(_F32)                      # (TN, D)
    e = e_ref[...].astype(_F32)                      # (Kp, D)
    esq_half = esqh_ref[...]                         # (1, Kp)

    # argmin_k ||z - e_k||^2 == argmin_k (0.5*||e_k||^2 - z . e_k): the per-row
    # ||z||^2 constant and the positive 1/2 scale cannot change the minimizer
    # (or its first-index tie-break), so both are dropped from the kernel.
    if use_bf16_cross:
        cross = jnp.dot(z.astype(jnp.bfloat16), e.astype(jnp.bfloat16).T,
                        preferred_element_type=_F32)
    else:
        cross = jnp.dot(z, e.T, preferred_element_type=_F32,
                        precision=lax.Precision.HIGHEST)
    dist = esq_half - cross                          # (TN, Kp)

    # First-argmin over the codebook axis (matches torch.argmin tie-break).
    kp = dist.shape[1]
    min_d = jnp.min(dist, axis=1, keepdims=True)                 # (TN, 1)
    col = lax.broadcasted_iota(jnp.int32, dist.shape, 1)         # (TN, Kp)
    idx = jnp.min(jnp.where(dist <= min_d, col, kp), axis=1, keepdims=True)

    # Gather codebook rows via a one-hot matmul. HIGHEST precision keeps the
    # selected rows bit-exact f32 codebook rows (a default-precision matmul
    # would round the codebook to bf16 on TPU).
    one_hot = (col == idx).astype(_F32)                          # (TN, Kp)
    q = jnp.dot(one_hot, e, preferred_element_type=_F32,
                precision=lax.Precision.HIGHEST)                 # (TN, D)
    q_ref[...] = q.astype(q_ref.dtype)

    # Per-tile lane-wise partial SSE (sublane reduce only; the tiny cross-tile
    # / cross-lane reduce happens once in the wrapper). Rows past n_valid in a
    # ragged last tile are masked, so the wrapper never pads/slices z or q.
    diff = q - z
    sq = diff * diff
    if n_valid % tile_rows != 0:
        row = (pl.program_id(0) * tile_rows
               + lax.broadcasted_iota(jnp.int32, (tile_rows, 1), 0))
        sq = jnp.where(row < n_valid, sq, 0.0)
    sse_ref[0] = jnp.sum(sq, axis=0, keepdims=True)              # (1, D)


def _vmem_budget_bytes():
    """~80% of this generation's per-core VMEM (headroom for Mosaic scratch)."""
    cap = 64 * 1024 * 1024                      # v7x per-TC VMEM as the floor
    try:
        info = pltpu.get_tpu_info()
        cap = int(getattr(info, "vmem_capacity_bytes", cap)) or cap
    except Exception:
        pass
    return int(0.8 * cap)


def _vmem_estimate_bytes(tn, d, k_pad, z_itemsize, q_itemsize):
    io = 2 * tn * d * (z_itemsize + q_itemsize)     # double-buffered z in / q out
    io += 2 * d * 4                                 # SSE partial out
    codebook = 2 * (k_pad * d + k_pad) * 4          # codebook + half-norms
    inter = (3 * tn * k_pad + 4 * tn * d) * 4       # dist / one_hot / cross, f32 z,q
    return io + codebook + inter


def vector_quantizer_forward(z, embeddings, commitment_cost=0.25, *,
                             tile_n=4096, use_bf16_cross=False):
    """Forward pass of VectorQuantizer.

    z:          (..., D) float latents, D == embedding_dim (last axis).
    embeddings: (K, D) float32 codebook.
    Returns (quantized, loss): quantized has z.shape, loss is a scalar.
    """
    K, D = embeddings.shape
    assert z.shape[-1] == D, "embedding_dim must be the last axis of z"
    z_flat = z.reshape(-1, D)
    N = z_flat.shape[0]
    z_itemsize = z_flat.dtype.itemsize

    # dtype-aware sublane granularity (f32 -> 8 rows, bf16 -> 16 rows).
    sub = 16 if z_flat.dtype == jnp.bfloat16 else 8
    budget = _vmem_budget_bytes()

    # Lane-dense codebook axis: pad K up to a multiple of 128.
    k_pad = max(128, pl.cdiv(K, 128) * 128)

    # Largest tile (multiple of `sub`, <= tile_n, not larger than needed for N)
    # that fits the per-generation VMEM budget.
    tn = max(sub, (min(tile_n, pl.cdiv(N, sub) * sub) // sub) * sub)
    while tn > sub and _vmem_estimate_bytes(tn, D, k_pad, z_itemsize,
                                            z_itemsize) > budget:
        tn = max(sub, ((tn // 2) // sub) * sub)
    num_tiles = pl.cdiv(N, tn)

    # Precompute 0.5*||e||^2 once in the wrapper; padded rows get a huge
    # sentinel so they can never win the argmin.
    e_f32 = embeddings.astype(_F32)
    esq_half = 0.5 * jnp.sum(e_f32 * e_f32, axis=1)              # (K,)
    if k_pad != K:
        e_f32 = jnp.concatenate(
            [e_f32, jnp.zeros((k_pad - K, D), _F32)], axis=0)
        esq_half = jnp.concatenate(
            [esq_half, jnp.full((k_pad - K,), 1e30, _F32)], axis=0)
    esq_half = esq_half.reshape(1, k_pad)

    # TODO(synk): for large codebooks (K >~ 1024) stream the codebook over a
    # trailing "arbitrary" K grid axis carrying a running (min_dist, argmin)
    # in VMEM scratch; the one-shot (TN, K) distances below blow VMEM first on
    # v7x's 64 MiB per-TC budget.

    flops = 4 * N * k_pad * D                              # two (N,Kp,D) matmuls
    bytes_accessed = (N * D * (z_itemsize + z_itemsize)    # z read + q write
                      + (k_pad * D + k_pad) * 4            # codebook + norms
                      + num_tiles * D * 4)                 # SSE partials
    vmem_est = _vmem_estimate_bytes(tn, D, k_pad, z_itemsize, z_itemsize)
    vmem_limit = int(max(32 * 1024 * 1024, min(budget, 2 * vmem_est)))

    kernel = functools.partial(_vq_kernel, tile_rows=tn, n_valid=N,
                               use_bf16_cross=use_bf16_cross)

    def build(single_buffer_codebook):
        if single_buffer_codebook:
            # Resident codebook / norms never change block index: single-buffer
            # them to halve their VMEM footprint (matters as K grows, esp. v7x).
            e_spec = pl.BlockSpec((k_pad, D), lambda i: (0, 0),
                                  pipeline_mode=pl.Buffered(1))
            esq_spec = pl.BlockSpec((1, k_pad), lambda i: (0, 0),
                                    pipeline_mode=pl.Buffered(1))
        else:
            e_spec = pl.BlockSpec((k_pad, D), lambda i: (0, 0))
            esq_spec = pl.BlockSpec((1, k_pad), lambda i: (0, 0))
        return pl.pallas_call(
            kernel,
            out_shape=(
                jax.ShapeDtypeStruct((N, D), z.dtype),
                jax.ShapeDtypeStruct((num_tiles, 1, D), _F32),
            ),
            grid_spec=pltpu.PrefetchScalarGridSpec(
                num_scalar_prefetch=0,
                grid=(num_tiles,),
                in_specs=[
                    pl.BlockSpec((tn, D), lambda i: (i, 0)),       # z tile
                    e_spec,                                        # codebook
                    esq_spec,                                      # 0.5*||e||^2
                ],
                out_specs=(
                    pl.BlockSpec((tn, D), lambda i: (i, 0)),       # quantized
                    pl.BlockSpec((1, 1, D), lambda i: (i, 0, 0)),  # SSE partial
                ),
            ),
            compiler_params=pltpu.CompilerParams(
                dimension_semantics=("parallel",),   # no cross-iteration state
                vmem_limit_bytes=vmem_limit,
            ),
            cost_estimate=pl.CostEstimate(
                flops=int(flops), transcendentals=0,
                bytes_accessed=int(bytes_accessed)),
        )

    try:
        q_flat, sse_part = build(True)(z_flat, e_f32, esq_half)
    except Exception:
        # pipeline_mode=pl.Buffered(1) not supported by this JAX/Mosaic build;
        # fall back to default double-buffering (identical results).
        q_flat, sse_part = build(False)(z_flat, e_f32, esq_half)

    sse = jnp.sum(sse_part)
    mse = sse / jnp.float32(N * D)
    # Forward value only: e_latent_loss == q_latent_loss numerically, so
    # loss = q_latent_loss + commitment_cost * e_latent_loss collapses to:
    # TODO(synk): for training, wrap in jax.custom_vjp (straight-through
    # estimator + the separate detach semantics of the two loss terms).
    loss = (1.0 + commitment_cost) * mse
    # Straight-through estimator: z + (q - z).detach() == q in the forward pass.
    quantized = q_flat.reshape(z.shape)
    return quantized, loss


def _reference_forward(z, embeddings, commitment_cost=0.25):
    """Pure-JAX reference mirroring the PyTorch forward."""
    D = embeddings.shape[1]
    z_flat = z.reshape(-1, D)
    dist = (
        jnp.sum(z_flat ** 2, axis=1, keepdims=True)
        + jnp.sum(embeddings ** 2, axis=1)
        - 2.0 * jnp.dot(z_flat, embeddings.T, precision=lax.Precision.HIGHEST)
    )
    idx = jnp.argmin(dist, axis=1)
    q = embeddings[idx].reshape(z.shape)
    mse = jnp.mean((q - z) ** 2)
    loss = (1.0 + commitment_cost) * mse
    return q, loss


if __name__ == "__main__":
    num_embeddings = 64
    embedding_dim = 32
    commitment_cost = 0.25

    key = jax.random.PRNGKey(0)
    k_z, k_e = jax.random.split(key)

    # Deterministic "uniform_(-1/K, 1/K)" codebook init, matching __init__.
    embeddings = jax.random.uniform(
        k_e, (num_embeddings, embedding_dim),
        minval=-1.0 / num_embeddings, maxval=1.0 / num_embeddings,
        dtype=jnp.float32,
    )

    # Layout: (B, H, W, D) with embedding_dim last.
    z = jax.random.normal(k_z, (2, 8, 8, embedding_dim), dtype=jnp.float32) * 0.05

    quantized, loss = vector_quantizer_forward(z, embeddings, commitment_cost)
    jax.block_until_ready((quantized, loss))

    q_ref, loss_ref = _reference_forward(z, embeddings, commitment_cost)
    assert quantized.shape == z.shape
    assert jnp.allclose(quantized, q_ref, atol=1e-5), "quantized mismatch"
    assert jnp.allclose(loss, loss_ref, atol=1e-6), "loss mismatch"

    print("KERNEL_OK")
</pallas_src>

<mosaic_0001>
module attributes {stable_mosaic.version = 11 : i64} {
  func.func @_vq_kernel(%arg0: i32, %arg1: memref<128x32xf32, #tpu.memory_space<vmem>>, %arg2: memref<128x32xf32, #tpu.memory_space<vmem>>, %arg3: memref<1x128xf32, #tpu.memory_space<vmem>>, %arg4: memref<128x32xf32, #tpu.memory_space<vmem>>, %arg5: memref<1x1x32xf32, #tpu.memory_space<vmem>>) attributes {dimension_semantics = [#tpu.dimension_semantics<parallel>], iteration_bounds = array<i64: 1>, scalar_prefetch = 0 : i64, scratch_operands = 0 : i64, tpu.core_type = #tpu.core_type<tc>, window_params = [{transform_indices = @transform_0, window_bounds = array<i64: 128, 32>}, {pipeline_mode = #tpu.pipeline_mode<synchronous>, transform_indices = @transform_1, window_bounds = array<i64: 128, 32>}, {pipeline_mode = #tpu.pipeline_mode<synchronous>, transform_indices = @transform_2, window_bounds = array<i64: 1, 128>}, {transform_indices = @transform_3, window_bounds = array<i64: 128, 32>}, {transform_indices = @transform_4, window_bounds = array<i64: 1, 1, 32>}]} {
    %c0 = arith.constant 0 : index
    %c0_0 = arith.constant 0 : index
    %0 = vector.load %arg1[%c0, %c0_0] : memref<128x32xf32, #tpu.memory_space<vmem>>, vector<128x32xf32>
    %c0_1 = arith.constant 0 : index
    %c0_2 = arith.constant 0 : index
    %1 = vector.load %arg2[%c0_1, %c0_2] : memref<128x32xf32, #tpu.memory_space<vmem>>, vector<128x32xf32>
    %c0_3 = arith.constant 0 : index
    %c0_4 = arith.constant 0 : index
    %2 = vector.load %arg3[%c0_3, %c0_4] : memref<1x128xf32, #tpu.memory_space<vmem>>, vector<1x128xf32>
    %3 = tpu.transpose %1, [1, 0] : vector<128x32xf32> -> vector<32x128xf32>
    %cst = arith.constant dense<0.000000e+00> : vector<128x128xf32>
    %4 = tpu.matmul %0, %3, %cst {dimension_numbers = #tpu.dot_dimension_numbers<[1], [0], [0], [1], [0, 0, 1, 1], [], []>, precision = #tpu.contract_precision<fp32>} : vector<128x32xf32>, vector<32x128xf32>, vector<128x128xf32> -> vector<128x128xf32>
    %5 = vector.broadcast %2 : vector<1x128xf32> to vector<128x128xf32>
    %6 = arith.subf %5, %4 : vector<128x128xf32>
    %cst_5 = arith.constant dense<0x7F800000> : vector<128xf32>
    %7 = vector.multi_reduction <minimumf>, %6, %cst_5 [1] : vector<128x128xf32> to vector<128xf32>
    %8 = vector.shape_cast %7 : vector<128xf32> to vector<128x1xf32>
    %9 = tpu.iota {dimensions = array<i32: 1>} : vector<128x128xi32>
    %10 = vector.broadcast %8 : vector<128x1xf32> to vector<128x128xf32>
    %11 = arith.cmpf ole, %6, %10 : vector<128x128xf32>
    %c128_i32 = arith.constant 128 : i32
    %12 = vector.broadcast %c128_i32 : i32 to vector<128x128xi32>
    %13 = arith.select %11, %9, %12 : vector<128x128xi1>, vector<128x128xi32>
    %cst_6 = arith.constant dense<2147483647> : vector<128xi32>
    %14 = vector.multi_reduction <minsi>, %13, %cst_6 [1] : vector<128x128xi32> to vector<128xi32>
    %15 = vector.shape_cast %14 : vector<128xi32> to vector<128x1xi32>
    %16 = vector.broadcast %15 : vector<128x1xi32> to vector<128x128xi32>
    %17 = arith.cmpi eq, %9, %16 : vector<128x128xi32>
    %18 = arith.extui %17 : vector<128x128xi1> to vector<128x128xi32>
    %19 = arith.sitofp %18 : vector<128x128xi32> to vector<128x128xf32>
    %cst_7 = arith.constant dense<0.000000e+00> : vector<128x32xf32>
    %20 = tpu.matmul %19, %1, %cst_7 {dimension_numbers = #tpu.dot_dimension_numbers<[1], [0], [0], [1], [0, 0, 1, 1], [], []>, precision = #tpu.contract_precision<fp32>} : vector<128x128xf32>, vector<128x32xf32>, vector<128x32xf32> -> vector<128x32xf32>
    %c0_8 = arith.constant 0 : index
    %c0_9 = arith.constant 0 : index
    %21 = vector.load %arg4[%c0_8, %c0_9] : memref<128x32xf32, #tpu.memory_space<vmem>>, vector<128x32xf32>
    tpu.vector_store %arg4[%c0_8, %c0_9], %20 {strides = array<i32>} : memref<128x32xf32, #tpu.memory_space<vmem>>, vector<128x32xf32>,
    %22 = arith.subf %20, %0 : vector<128x32xf32>
    %23 = arith.mulf %22, %22 : vector<128x32xf32>
    %cst_10 = arith.constant dense<0.000000e+00> : vector<32xf32>
    %24 = vector.multi_reduction <add>, %23, %cst_10 [0] : vector<128x32xf32> to vector<32xf32>
    %25 = vector.shape_cast %24 : vector<32xf32> to vector<1x32xf32>
    %c0_11 = arith.constant 0 : index
    %c0_12 = arith.constant 0 : index
    %c0_13 = arith.constant 0 : index
    %26 = vector.load %arg5[%c0_11, %c0_12, %c0_13] : memref<1x1x32xf32, #tpu.memory_space<vmem>>, vector<1x1x32xf32>
    %27 = vector.shape_cast %26 : vector<1x1x32xf32> to vector<1x32xf32>
    %28 = vector.shape_cast %25 : vector<1x32xf32> to vector<1x1x32xf32>
    tpu.vector_store %arg5[%c0_11, %c0_12, %c0_13], %28 {strides = array<i32>} : memref<1x1x32xf32, #tpu.memory_space<vmem>>, vector<1x1x32xf32>,
    return
  }
  func.func @transform_0(%arg0: i32) -> (i32, i32) {
    %c0_i32 = arith.constant 0 : i32
    %c0_i32_0 = arith.constant 0 : i32
    return %arg0, %c0_i32 : i32, i32
  }
  func.func @transform_1(%arg0: i32) -> (i32, i32) {
    %c0_i32 = arith.constant 0 : i32
    %c0_i32_0 = arith.constant 0 : i32
    %c0_i32_1 = arith.constant 0 : i32
    return %c0_i32, %c0_i32_0 : i32, i32
  }
  func.func @transform_2(%arg0: i32) -> (i32, i32) {
    %c0_i32 = arith.constant 0 : i32
    %c0_i32_0 = arith.constant 0 : i32
    %c0_i32_1 = arith.constant 0 : i32
    return %c0_i32, %c0_i32_0 : i32, i32
  }
  func.func @transform_3(%arg0: i32) -> (i32, i32) {
    %c0_i32 = arith.constant 0 : i32
    %c0_i32_0 = arith.constant 0 : i32
    return %arg0, %c0_i32 : i32, i32
  }
  func.func @transform_4(%arg0: i32) -> (i32, i32, i32) {
    %c0_i32 = arith.constant 0 : i32
    %c0_i32_0 = arith.constant 0 : i32
    %c0_i32_1 = arith.constant 0 : i32
    return %arg0, %c0_i32, %c0_i32_0 : i32, i32, i32
  }
}

module attributes {stable_mosaic.version = 11 : i64} {
  func.func @_vq_kernel(%arg0: i32, %arg1: memref<128x32xf32, #tpu.memory_space<vmem>>, %arg2: memref<128x32xf32, #tpu.memory_space<vmem>>, %arg3: memref<1x128xf32, #tpu.memory_space<vmem>>, %arg4: memref<128x32xf32, #tpu.memory_space<vmem>>, %arg5: memref<1x1x32xf32, #tpu.memory_space<vmem>>) attributes {dimension_semantics = [#tpu.dimension_semantics<parallel>], iteration_bounds = array<i64: 1>, scalar_prefetch = 0 : i64, scratch_operands = 0 : i64, tpu.core_type = #tpu.core_type<tc>, window_params = [{transform_indices = @transform_0, window_bounds = array<i64: 128, 32>}, {pipeline_mode = #tpu.pipeline_mode<synchronous>, transform_indices = @transform_1, window_bounds = array<i64: 128, 32>}, {pipeline_mode = #tpu.pipeline_mode<synchronous>, transform_indices = @transform_2, window_bounds = array<i64: 1, 128>}, {transform_indices = @transform_3, window_bounds = array<i64: 128, 32>}, {transform_indices = @transform_4, window_bounds = array<i64: 1, 1, 32>}]} {
    %c0 = arith.constant 0 : index
    %c0_0 = arith.constant 0 : index
    %0 = vector.load %arg1[%c0, %c0_0] : memref<128x32xf32, #tpu.memory_space<vmem>>, vector<128x32xf32>
    %c0_1 = arith.constant 0 : index
    %c0_2 = arith.constant 0 : index
    %1 = vector.load %arg2[%c0_1, %c0_2] : memref<128x32xf32, #tpu.memory_space<vmem>>, vector<128x32xf32>
    %c0_3 = arith.constant 0 : index
    %c0_4 = arith.constant 0 : index
    %2 = vector.load %arg3[%c0_3, %c0_4] : memref<1x128xf32, #tpu.memory_space<vmem>>, vector<1x128xf32>
    %3 = tpu.transpose %1, [1, 0] : vector<128x32xf32> -> vector<32x128xf32>
    %cst = arith.constant dense<0.000000e+00> : vector<128x128xf32>
    %4 = tpu.matmul %0, %3, %cst {dimension_numbers = #tpu.dot_dimension_numbers<[1], [0], [0], [1], [0, 0, 1, 1], [], []>, precision = #tpu.contract_precision<fp32>} : vector<128x32xf32>, vector<32x128xf32>, vector<128x128xf32> -> vector<128x128xf32>
    %5 = vector.broadcast %2 : vector<1x128xf32> to vector<128x128xf32>
    %6 = arith.subf %5, %4 : vector<128x128xf32>
    %cst_5 = arith.constant dense<0x7F800000> : vector<128xf32>
    %7 = vector.multi_reduction <minimumf>, %6, %cst_5 [1] : vector<128x128xf32> to vector<128xf32>
    %8 = vector.shape_cast %7 : vector<128xf32> to vector<128x1xf32>
    %9 = tpu.iota {dimensions = array<i32: 1>} : vector<128x128xi32>
    %10 = vector.broadcast %8 : vector<128x1xf32> to vector<128x128xf32>
    %11 = arith.cmpf ole, %6, %10 : vector<128x128xf32>
    %c128_i32 = arith.constant 128 : i32
    %12 = vector.broadcast %c128_i32 : i32 to vector<128x128xi32>
    %13 = arith.select %11, %9, %12 : vector<128x128xi1>, vector<128x128xi32>
    %cst_6 = arith.constant dense<2147483647> : vector<128xi32>
    %14 = vector.multi_reduction <minsi>, %13, %cst_6 [1] : vector<128x128xi32> to vector<128xi32>
    %15 = vector.shape_cast %14 : vector<128xi32> to vector<128x1xi32>
    %16 = vector.broadcast %15 : vector<128x1xi32> to vector<128x128xi32>
    %17 = arith.cmpi eq, %9, %16 : vector<128x128xi32>
    %18 = arith.extui %17 : vector<128x128xi1> to vector<128x128xi32>
    %19 = arith.sitofp %18 : vector<128x128xi32> to vector<128x128xf32>
    %cst_7 = arith.constant dense<0.000000e+00> : vector<128x32xf32>
    %20 = tpu.matmul %19, %1, %cst_7 {dimension_numbers = #tpu.dot_dimension_numbers<[1], [0], [0], [1], [0, 0, 1, 1], [], []>, precision = #tpu.contract_precision<fp32>} : vector<128x128xf32>, vector<128x32xf32>, vector<128x32xf32> -> vector<128x32xf32>
    %c0_8 = arith.constant 0 : index
    %c0_9 = arith.constant 0 : index
    %21 = vector.load %arg4[%c0_8, %c0_9] : memref<128x32xf32, #tpu.memory_space<vmem>>, vector<128x32xf32>
    tpu.vector_store %arg4[%c0_8, %c0_9], %20 {strides = array<i32>} : memref<128x32xf32, #tpu.memory_space<vmem>>, vector<128x32xf32>,
    %22 = arith.subf %20, %0 : vector<128x32xf32>
    %23 = arith.mulf %22, %22 : vector<128x32xf32>
    %cst_10 = arith.constant dense<0.000000e+00> : vector<32xf32>
    %24 = vector.multi_reduction <add>, %23, %cst_10 [0] : vector<128x32xf32> to vector<32xf32>
    %25 = vector.shape_cast %24 : vector<32xf32> to vector<1x32xf32>
    %c0_11 = arith.constant 0 : index
    %c0_12 = arith.constant 0 : index
    %c0_13 = arith.constant 0 : index
    %26 = vector.load %arg5[%c0_11, %c0_12, %c0_13] : memref<1x1x32xf32, #tpu.memory_space<vmem>>, vector<1x1x32xf32>
    %27 = vector.shape_cast %26 : vector<1x1x32xf32> to vector<1x32xf32>
    %28 = vector.shape_cast %25 : vector<1x32xf32> to vector<1x1x32xf32>
    tpu.vector_store %arg5[%c0_11, %c0_12, %c0_13], %28 {strides = array<i32>} : memref<1x1x32xf32, #tpu.memory_space<vmem>>, vector<1x1x32xf32>,
    return
  }
  func.func @transform_0(%arg0: i32) -> (i32, i32) {
    %c0_i32 = arith.constant 0 : i32
    %c0_i32_0 = arith.constant 0 : i32
    return %arg0, %c0_i32 : i32, i32
  }
  func.func @transform_1(%arg0: i32) -> (i32, i32) {
    %c0_i32 = arith.constant 0 : i32
    %c0_i32_0 = arith.constant 0 : i32
    %c0_i32_1 = arith.constant 0 : i32
    return %c0_i32, %c0_i32_0 : i32, i32
  }
  func.func @transform_2(%arg0: i32) -> (i32, i32) {
    %c0_i32 = arith.constant 0 : i32
    %c0_i32_0 = arith.constant 0 : i32
    %c0_i32_1 = arith.constant 0 : i32
    return %c0_i32, %c0_i32_0 : i32, i32
  }
  func.func @transform_3(%arg0: i32) -> (i32, i32) {
    %c0_i32 = arith.constant 0 : i32
    %c0_i32_0 = arith.constant 0 : i32
    return %arg0, %c0_i32 : i32, i32
  }
  func.func @transform_4(%arg0: i32) -> (i32, i32, i32) {
    %c0_i32 = arith.constant 0 : i32
    %c0_i32_0 = arith.constant 0 : i32
    %c0_i32_1 = arith.constant 0 : i32
    return %arg0, %c0_i32, %c0_i32_0 : i32, i32, i32
  }
}

</mosaic_0001>

<bundles_post_ra>
// kernel: tpu_custom_call.1
= control target key start
LH: loop header
LB: loop body
LE: loop exit
PB: predicated region body
PF: predicated region fallthrough
CT: control target
= control target key end

     0   :  { %vm6937_vm0 = vcmask 261120   ;;  %s6856_s0 = inlined_call_operand.vmem [shape: f32[128,32], index: 0, kind: input, shape index: {}]   ;;  %s6857_s1 = inlined_call_operand.vmem [shape: f32[128,32], index: 1, kind: input, shape index: {}]   ;;  %s6858_s2 = inlined_call_operand.vmem [shape: f32[1,128], index: 2, kind: input, shape index: {}]   ;;  %s6859_s3 = inlined_call_operand.vmem [shape: f32[128,32], index: 3, kind: output, shape index: {0}]   ;;  %s6860_s4 = inlined_call_operand.hbm [shape: f32[1,1,32], index: 4, kind: output, shape index: {1}]  }
   0x1   :  { %v4939_v0 = vld [vmem:[%s6857_s1] sm:$0xff]  ;;  %v4944_v1 = vld [vmem:[%s6857_s1 + $0x8] sm:$0xff]  ;;  %v35_v2 = vld [vmem:[%s6857_s1 + $0x10] sm:$0xff] }
   0x2   :  { %6940 = vst [vmem:[#allocation5_spill] sm:$0xff] %v4939_v0  ;;  %6941 = vst [vmem:[#allocation6_spill] sm:$0xff] %v4944_v1  ;;  %v100_v3 = vsel %vm6937_vm0, %v4939_v0, 0  ;;  %v103_v4 = vsel %vm6937_vm0, %v4944_v1, 0  ;;  %v36_v5 = vld [vmem:[%s6857_s1 + $0x18] sm:$0xff]  ;;  %v106_v8 = vsel %vm6937_vm0, %v35_v2, 0 }
   0x3   :  { %v148_v6 = vand.u32 4294901760, %v100_v3  ;;  %v151_v7 = vand.u32 4294901760, %v103_v4  ;;  %v109_v9 = vsel %vm6937_vm0, %v36_v5, 0  ;;  %v37_v10 = vld [vmem:[%s6857_s1 + $0x20] sm:$0xff]  ;;  %v154_v11 = vand.u32 4294901760, %v106_v8  ;;  %v38_v13 = vld [vmem:[%s6857_s1 + $0x28] sm:$0xff] }
   0x4   :  { %v157_v12 = vand.u32 4294901760, %v109_v9  ;;  %v112_v20 = vsel %vm6937_vm0, %v37_v10, 0  ;;  %v115_v23 = vsel %vm6937_vm0, %v38_v13, 0  ;;  %v39_v28 = vld [vmem:[%s6857_s1 + $0x30] sm:$0xff]  ;;  %v40_v32 = vld [vmem:[%s6857_s1 + $0x38] sm:$0xff]  ;;  %v41_v48 = vld [vmem:[%s6857_s1 + $0x40] sm:$0xff] }
   0x5   :  { %v4964_v14 = vpack.c.bf16 %v151_v7, %v148_v6  ;;  %v4966_v15 = vsub.f32 %v100_v3, %v148_v6  ;;  %v4968_v16 = vsub.f32 %v103_v4, %v151_v7  ;;  %v4972_v18 = vsub.f32 %v106_v8, %v154_v11  ;;  %v42_v49 = vld [vmem:[%s6857_s1 + $0x48] sm:$0xff] }
   0x6   :  { %v4970_v17 = vpack.c.bf16 %v157_v12, %v154_v11  ;;  %v4974_v19 = vsub.f32 %v109_v9, %v157_v12  ;;  %v160_v24 = vand.u32 4294901760, %v112_v20  ;;  %v163_v27 = vand.u32 4294901760, %v115_v23 }
   0x7   :  { %v391_v21 = vand.u32 4294901760, %v4966_v15  ;;  %v398_v22 = vand.u32 4294901760, %v4968_v16  ;;  %4306 = vmatprep.subr.bf16.mxu1 %v4964_v14  ;;  %v6876_v25 = vand.u32 4294901760, %v4972_v18  ;;  %v118_v39 = vsel %vm6937_vm0, %v39_v28, 0 }
   0x8   :  { %v6875_v26 = vand.u32 4294901760, %v4974_v19  ;;  %4308 = vmatpush3.bf16.xpose.msra.mxu1 %v4964_v14  ;;  %v4993_v31 = vsub.f32 %v112_v20, %v160_v24  ;;  %v5005_v35 = vsub.f32 %v115_v23, %v163_v27  ;;  %v121_v43 = vsel %vm6937_vm0, %v40_v32, 0 }
   0x9   :  { %v392_v29 = vsub.f32 %v4966_v15, %v391_v21  ;;  %v399_v30 = vsub.f32 %v4968_v16, %v398_v22  ;;  %4310 = vmatprep.subr.bf16.mxu1 %v4970_v17  ;;  %v406_v33 = vsub.f32 %v4972_v18, %v6876_v25  ;;  %v166_v46 = vand.u32 4294901760, %v118_v39 }
   0xa   :  { %v413_v34 = vsub.f32 %v4974_v19, %v6875_v26  ;;  %v6874_v38 = vand.u32 4294901760, %v4993_v31  ;;  %v6873_v42 = vand.u32 4294901760, %v5005_v35  ;;  %v169_v47 = vand.u32 4294901760, %v121_v43 }
   0xb   :  { %v393_v36 = vand.u32 4294901760, %v392_v29  ;;  %v400_v37 = vand.u32 4294901760, %v399_v30  ;;  %v407_v40 = vand.u32 4294901760, %v406_v33 }
   0xc   :  { %v414_v41 = vand.u32 4294901760, %v413_v34  ;;  %v420_v45 = vsub.f32 %v4993_v31, %v6874_v38 }
   0xd   :  { %v4337_v44 = vpack.c.bf16 %v400_v37, %v393_v36 }
   0xe   :  { %10 = vsyncpa [#allocation3], 0  ;;  %v4341_v50 = vpack.c.bf16 %v414_v41, %v407_v40  ;;  %v427_v51 = vsub.f32 %v5005_v35, %v6873_v42  ;;  %v5023_v52 = vpack.c.bf16 %v163_v27, %v160_v24  ;;  %v5025_v53 = vsub.f32 %v118_v39, %v166_v46  ;;  %v43_v63 = vld [vmem:[%s6857_s1 + $0x50] sm:$0xff]  ;;  %v44_v2 = vld [vmem:[%s6857_s1 + $0x58] sm:$0xff] }
   0xf   :  { %4338 = vmatprep.subr.bf16.mxu0 %v4337_v44  ;;  %v5027_v54 = vsub.f32 %v121_v43, %v169_v47  ;;  %v421_v55 = vand.u32 4294901760, %v420_v45  ;;  %v124_v57 = vsel %vm6937_vm0, %v41_v48, 0  ;;  %v127_v58 = vsel %vm6937_vm0, %v42_v49, 0  ;;  %v45_v27 = vld [vmem:[%s6857_s1 + $0x60] sm:$0xff]  ;;  %v46_v30 = vld [vmem:[%s6857_s1 + $0x68] sm:$0xff]  ;;  %v47_v40 = vld [vmem:[%s6857_s1 + $0x70] sm:$0xff] }
  0x10   :  { %4340 = vmatpush3.bf16.xpose.msra.mxu0 %v4337_v44  ;;  %v428_v56 = vand.u32 4294901760, %v427_v51  ;;  %4312 = vmatpush3.bf16.xpose.msra.mxu1 %v4970_v17  ;;  %v6872_v59 = vand.u32 4294901760, %v5025_v53  ;;  %v172_v61 = vand.u32 4294901760, %v124_v57  ;;  %v175_v62 = vand.u32 4294901760, %v127_v58  ;;  %v17_v32 = vld [vmem:[%s6856_s0] sm:$0xff]  ;;  %v48_v41 = vld [vmem:[%s6857_s1 + $0x78] sm:$0xff] }
  0x11   :  { %4342 = vmatprep.subr.bf16.mxu0 %v4341_v50  ;;  %v6871_v60 = vand.u32 4294901760, %v5027_v54  ;;  %4314 = vmatprep.subr.bf16.mxu1 %v5023_v52  ;;  %v130_v4 = vsel %vm6937_vm0, %v43_v63, 0  ;;  %v133_v5 = vsel %vm6937_vm0, %v44_v2, 0  ;;  %v5053_v10 = vpack.c.bf16 %v169_v47, %v166_v46  ;;  %v32_v26 = vld [vmem:[%s6856_s0 + $0x78] sm:$0xff] }
  0x12   :  { %v5041_v3 = vsub.f32 %v124_v57, %v172_v61  ;;  %v4345_v6 = vpack.c.bf16 %v428_v56, %v421_v55  ;;  %v434_v7 = vsub.f32 %v5025_v53, %v6872_v59  ;;  %v5051_v9 = vsub.f32 %v127_v58, %v175_v62  ;;  %v31_v59 = vld [vmem:[%s6856_s0 + $0x70] sm:$0xff] }
  0x13   :  { %v441_v8 = vsub.f32 %v5027_v54, %v6871_v60  ;;  %v178_v11 = vand.u32 4294901760, %v130_v4  ;;  %v181_v12 = vand.u32 4294901760, %v133_v5  ;;  %v136_v37 = vsel %vm6937_vm0, %v45_v27, 0  ;;  %v30_v60 = vld [vmem:[%s6856_s0 + $0x68] sm:$0xff] }
  0x14   :  { %v6870_v13 = vand.u32 4294901760, %v5041_v3  ;;  %v435_v20 = vand.u32 4294901760, %v434_v7  ;;  %v6869_v24 = vand.u32 4294901760, %v5051_v9  ;;  %v139_v39 = vsel %vm6937_vm0, %v46_v30, 0 }
  0x15   :  { %v442_v23 = vand.u32 4294901760, %v441_v8  ;;  %v5062_v28 = vsub.f32 %v130_v4, %v178_v11  ;;  %v5064_v29 = vsub.f32 %v133_v5, %v181_v12  ;;  %v5087_v43 = vsel %vm6937_vm0, %v17_v32, 0 }
  0x16   :  { %v448_v33 = vsub.f32 %v5041_v3, %v6870_v13  ;;  %v455_v36 = vsub.f32 %v5051_v9, %v6869_v24  ;;  %v5089_v44 = vpack.c.bf16 %v175_v62, %v172_v61  ;;  %v184_v48 = vand.u32 4294901760, %v136_v37  ;;  %v29_v24 = vld [vmem:[%s6856_s0 + $0x60] sm:$0xff] }
  0x17   :  { %v4349_v34 = vpack.c.bf16 %v442_v23, %v435_v20  ;;  %v6868_v45 = vand.u32 4294901760, %v5062_v28  ;;  %v6867_v46 = vand.u32 4294901760, %v5064_v29  ;;  %v5094_v49 = vand.u32 4294901760, %v5087_v43 }
  0x18   :  { %4344 = vmatpush3.bf16.xpose.msra.mxu0 %v4341_v50  ;;  %4316 = vmatpush3.bf16.xpose.msra.mxu1 %v5023_v52  ;;  %6942 = vst [vmem:[#allocation7_spill] sm:$0xff] %v5089_v44  ;;  %v449_v47 = vand.u32 4294901760, %v448_v33  ;;  %v5098_v50 = vpack.c.bf16 %v4968_v16, %v4966_v15  ;;  %v456_v51 = vand.u32 4294901760, %v455_v36  ;;  %v187_v55 = vand.u32 4294901760, %v139_v39 }
  0x19   :  { %4346 = vmatprep.subr.bf16.mxu0 %v4345_v6  ;;  %4318 = vmatprep.subr.bf16.mxu1 %v5053_v10  ;;  %v142_v56 = vsel %vm6937_vm0, %v47_v40, 0  ;;  %v145_v57 = vsel %vm6937_vm0, %v48_v41, 0  ;;  %v5107_v58 = vpack.c.bf16 %v4974_v19, %v4972_v18  ;;  %v5111_v61 = vpack.c.bf16 %v5005_v35, %v4993_v31 }
  0x1a   :  { %3721 = vmatprep.mubr.f32.mxu0 %v5094_v49  ;;  %v5115_v62 = vpack.c.bf16 %v5027_v54, %v5025_v53  ;;  %v5119_v63 = vpack.c.bf16 %v5051_v9, %v5041_v3  ;;  %v462_v2 = vsub.f32 %v5062_v28, %v6868_v45  ;;  %v190_v4 = vand.u32 4294901760, %v142_v56  ;;  %v28_v45 = vld [vmem:[%s6856_s0 + $0x58] sm:$0xff] }
  0x1b   :  { %v193_v5 = vand.u32 4294901760, %v145_v57  ;;  %v4353_v7 = vpack.c.bf16 %v456_v51, %v449_v47  ;;  %v469_v8 = vsub.f32 %v5064_v29, %v6867_v46  ;;  %v5131_v20 = vsub.f32 %v136_v37, %v184_v48 }
  0x1c   :  { %v5133_v23 = vsub.f32 %v139_v39, %v187_v55  ;;  %v5135_v27 = vpack.c.bf16 %v181_v12, %v178_v11  ;;  %v5137_v30 = vsub.f32 %v142_v56, %v190_v4  ;;  %v463_v36 = vand.u32 4294901760, %v462_v2 }
  0x1d   :  { %v5139_v32 = vsub.f32 %v145_v57, %v193_v5  ;;  %v470_v40 = vand.u32 4294901760, %v469_v8  ;;  %v6866_v37 = vand.u32 4294901760, %v5131_v20  ;;  %v5159_v47 = vpack.c.bf16 %v187_v55, %v184_v48 }
  0x1e   :  { %6943 = vst [vmem:[#allocation8_spill] sm:$0xff] %v5135_v27  ;;  %v5143_v33 = vpack.c.bf16 %v5133_v23, %v5131_v20  ;;  %v6865_v39 = vand.u32 4294901760, %v5133_v23  ;;  %v6864_v57 = vand.u32 4294901760, %v5137_v30  ;;  %v5171_v55 = vpack.c.bf16 %v193_v5, %v190_v4  ;;  %v18_v5 = vld [vmem:[%s6856_s0 + $0x8] sm:$0xff] }
  0x1f   :  { %v5151_v11 = vpack.c.bf16 %v5139_v32, %v5137_v30  ;;  %v4357_v12 = vpack.c.bf16 %v470_v40, %v463_v36  ;;  %6944 = vst [vmem:[#allocation9_spill] sm:$0xff] %v5159_v47  ;;  %v6863_v2 = vand.u32 4294901760, %v5139_v32  ;;  %v6861_v40 = vand.u32 4294901760, %v4944_v1 }
  0x20   :  { %4348 = vmatpush3.bf16.xpose.msra.mxu0 %v4345_v6  ;;  %4320 = vmatpush3.bf16.xpose.msra.mxu1 %v5053_v10  ;;  %v5126_v6 = vpack.c.bf16 %v5064_v29, %v5062_v28  ;;  %v483_v41 = vsub.f32 %v5133_v23, %v6865_v39  ;;  %v490_v36 = vsub.f32 %v5137_v30, %v6864_v57  ;;  %v26_v57 = vld [vmem:[%s6856_s0 + $0x48] sm:$0xff]  ;;  %v27_v39 = vld [vmem:[%s6856_s0 + $0x50] sm:$0xff]  ;;  %v97_v1 = vsel %vm6937_vm0, %v32_v26, 0 }
  0x21   :  { %4350 = vmatprep.subr.bf16.mxu0 %v4349_v34  ;;  %4322 = vmatprep.subr.bf16.mxu1 %v5089_v44  ;;  %v497_v48 = vsub.f32 %v5139_v32, %v6863_v2  ;;  %v82_v46 = vsel %vm6937_vm0, %v27_v39, 0  ;;  %v88_v39 = vsel %vm6937_vm0, %v29_v24, 0  ;;  %v91_v24 = vsel %vm6937_vm0, %v30_v60, 0 }
  0x22   :  { %v484_v56 = vand.u32 4294901760, %v483_v41  ;;  %v5292_v13 = vand.u32 4294901760, %v82_v46  ;;  %v5307_v38 = vand.u32 4294901760, %v88_v39  ;;  %v5316_v25 = vand.u32 4294901760, %v91_v24 }
  0x23   :  { %v498_v41 = vand.u32 4294901760, %v497_v48  ;;  %v20_v48 = vld [vmem:[%s6856_s0 + $0x18] sm:$0xff]  ;;  %v5323_v60 = vand.u32 4294901760, %v97_v1 }
  0x24   :  { %v5217_v16 = vsel %vm6937_vm0, %v20_v48, 0 }
  0x25   :  { %6945 = vst [vmem:[#allocation10_spill] sm:$0xff] %v5323_v60 }
  0x28   :  { %4352 = vmatpush3.bf16.xpose.msra.mxu0 %v4349_v34  ;;  %4324 = vmatpush3.bf16.xpose.msra.mxu1 %v5089_v44  ;;  %v476_v34 = vsub.f32 %v5131_v20, %v6866_v37 }
  0x29   :  { %4354 = vmatprep.subr.bf16.mxu0 %v4353_v7  ;;  %4326 = vmatprep.subr.bf16.mxu1 %v5135_v27 }
  0x2a   :  { %v477_v51 = vand.u32 4294901760, %v476_v34  ;;  %v491_v34 = vand.u32 4294901760, %v490_v36 }
  0x2c   :  { %v4361_v8 = vpack.c.bf16 %v484_v56, %v477_v51  ;;  %v4365_v4 = vpack.c.bf16 %v498_v41, %v491_v34  ;;  %v5192_v56 = vsel %vm6937_vm0, %v18_v5, 0  ;;  %v21_v34 = vld [vmem:[%s6856_s0 + $0x20] sm:$0xff]  ;;  %v5230_v5 = vand.u32 4294901760, %v5217_v16 }
  0x2d   :  { %v5211_v41 = vand.u32 4294901760, %v5192_v56 }
  0x2f   :  { %v239_v26 = vsub.f32 %v5192_v56, %v5211_v41 }
  0x30   :  { %4356 = vmatpush3.bf16.xpose.msra.mxu0 %v4353_v7  ;;  %4328 = vmatpush3.bf16.xpose.msra.mxu1 %v5135_v27  ;;  %v6862_v7 = vand.u32 4294901760, %v4939_v0 }
  0x31   :  { %4358 = vmatprep.subr.bf16.mxu0 %v4357_v12  ;;  %4330 = vmatprep.subr.bf16.mxu1 %v5159_v47 }
  0x32   :  { %v5181_v51 = vpack.c.bf16 %v6861_v40, %v6862_v7  ;;  %v24_v40 = vld [vmem:[%s6856_s0 + $0x38] sm:$0xff] }
  0x38   :  { %4360 = vmatpush3.bf16.xpose.msra.mxu0 %v4357_v12  ;;  %4332 = vmatpush3.bf16.xpose.msra.mxu1 %v5159_v47  ;;  %v19_v12 = vld [vmem:[%s6856_s0 + $0x10] sm:$0xff] }
  0x39   :  { %4362 = vmatprep.subr.bf16.mxu0 %v4361_v8  ;;  %4334 = vmatprep.subr.bf16.mxu1 %v5171_v55  ;;  %v5202_v36 = vsel %vm6937_vm0, %v19_v12, 0 }
  0x3a   :  { %v5214_v15 = vand.u32 4294901760, %v5202_v36 }
  0x40   :  { %4364 = vmatpush3.bf16.xpose.msra.mxu0 %v4361_v8  ;;  %4336 = vmatpush3.bf16.xpose.msra.mxu1 %v5171_v55  ;;  %v5198_v8 = vpack.c.bf16 %v398_v22, %v391_v21  ;;  %v5220_v21 = vsel %vm6937_vm0, %v21_v34, 0  ;;  %v22_v22 = vld [vmem:[%s6856_s0 + $0x28] sm:$0xff] }
  0x41   :  { %4366 = vmatprep.subr.bf16.mxu0 %v4365_v4  ;;  %4498 = vmatprep.subr.bf16.mxu1 %v5181_v51  ;;  %v5235_v12 = vand.u32 4294901760, %v5220_v21  ;;  %v5238_v48 = vsel %vm6937_vm0, %v22_v22, 0 }
  0x42   :  { %v5252_v7 = vand.u32 4294901760, %v5238_v48 }
  0x48   :  { %4368 = vmatpush3.bf16.xpose.msra.mxu0 %v4365_v4  ;;  %v23_v4 = vld [vmem:[%s6856_s0 + $0x30] sm:$0xff] }
  0x49   :  { %4370 = vmatprep.subr.bf16.mxu0 %v5098_v50  ;;  %v5242_v34 = vsel %vm6937_vm0, %v23_v4, 0  ;;  %v5259_v4 = vsel %vm6937_vm0, %v24_v40, 0 }
  0x4a   :  { %v5256_v22 = vand.u32 4294901760, %v5242_v34  ;;  %v5272_v37 = vand.u32 4294901760, %v5259_v4 }
  0x4f   :  { %3722 = vmatmul.mubr.f32.vlgmr.msra.gmra.mrb[0].mxu0 %v5211_v41 }
  0x50   :  { %4372 = vmatpush3.bf16.xpose.msra.mxu0 %v5098_v50  ;;  %3724 = vmatprep.mubr.f32.mxu0 %v5214_v15  ;;  %v25_v50 = vld [vmem:[%s6856_s0 + $0x40] sm:$0xff] }
  0x51   :  { %4374 = vmatprep.subr.bf16.mxu0 %v5107_v58  ;;  %v5262_v2 = vsel %vm6937_vm0, %v25_v50, 0  ;;  %v79_v50 = vsel %vm6937_vm0, %v26_v57, 0  ;;  %v85_v57 = vsel %vm6937_vm0, %v28_v45, 0  ;;  %v94_v45 = vsel %vm6937_vm0, %v31_v59, 0 }
  0x52   :  { %v5277_v40 = vand.u32 4294901760, %v5262_v2  ;;  %v5303_v42 = vand.u32 4294901760, %v85_v57  ;;  %v229_v59 = vsub.f32 %v5087_v43, %v5094_v49  ;;  %v5343_v43 = vsub.f32 %v5202_v36, %v5214_v15 }
  0x53   :  { %3725 = vmatmul.mubr.f32.gmra.mrb[2].mxu0 %v5230_v5 }
  0x54   :  { %3727 = vmatprep.mubr.f32.mxu0 %v5235_v12  ;;  %v5375_v56 = vsub.f32 %v5262_v2, %v5277_v40  ;;  %v5393_v2 = vsub.f32 %v88_v39, %v5307_v38 }
  0x57   :  { %3728 = vmatmul.mubr.f32.gmra.mrb[4].mxu0 %v5252_v7 }
  0x58   :  { %4376 = vmatpush3.bf16.xpose.msra.mxu0 %v5107_v58  ;;  %3730 = vmatprep.mubr.f32.mxu0 %v5256_v22  ;;  %v5289_v58 = vand.u32 4294901760, %v79_v50 }
  0x59   :  { %4378 = vmatprep.subr.bf16.mxu0 %v5111_v61 }
  0x5a   :  { %v5380_v36 = vsub.f32 %v79_v50, %v5289_v58 }
  0x5b   :  { %3731 = vmatmul.mubr.f32.gmra.mrb[6].mxu0 %v5272_v37 }
  0x5c   :  { %3733 = vmatprep.mubr.f32.mxu0 %v5277_v40 }
  0x5f   :  { %3734 = vmatmul.mubr.f32.gmra.mrb[8].mxu0 %v5289_v58 }
  0x60   :  { %4380 = vmatpush3.bf16.xpose.msra.mxu0 %v5111_v61  ;;  %3736 = vmatprep.mubr.f32.mxu0 %v5292_v13  ;;  %v5319_v61 = vand.u32 4294901760, %v94_v45 }
  0x61   :  { %4382 = vmatprep.subr.bf16.mxu0 %v5115_v62 }
  0x63   :  { %3737 = vmatmul.mubr.f32.gmra.mrb[10].mxu0 %v5303_v42 }
  0x64   :  { %3739 = vmatprep.mubr.f32.mxu0 %v5307_v38 }
  0x67   :  { %3740 = vmatmul.mubr.f32.gmra.mrb[12].mxu0 %v5316_v25 }
  0x68   :  { %4384 = vmatpush3.bf16.xpose.msra.mxu0 %v5115_v62  ;;  %3742 = vmatprep.mubr.f32.mxu0 %v5319_v61  ;;  %v5347_v62 = vsub.f32 %v5217_v16, %v5230_v5  ;;  %v5384_v16 = vsub.f32 %v82_v46, %v5292_v13  ;;  %v5402_v46 = vsub.f32 %v94_v45, %v5319_v61  ;;  %v250_v45 = vand.u32 4294901760, %v5343_v43 }
  0x69   :  { %4386 = vmatprep.subr.bf16.mxu0 %v5119_v63 }
  0x6a   :  { %v260_v0 = vand.u32 4294901760, %v5347_v62 }
  0x6b   :  { %3743 = vmatmul.mubr.f32.gmra.mrb[14].mxu0 %v5323_v60 }
  0x6c   :  { %3777 = vmatprep.mubr.f32.mxu0 %v229_v59 }
  0x70   :  { %4388 = vmatpush3.bf16.xpose.msra.mxu0 %v5119_v63  ;;  %v5353_v63 = vsub.f32 %v5220_v21, %v5235_v12  ;;  %v5388_v21 = vsub.f32 %v85_v57, %v5303_v42 }
  0x71   :  { %4390 = vmatprep.subr.bf16.mxu0 %v5126_v6 }
  0x78   :  { %4392 = vmatpush3.bf16.xpose.msra.mxu0 %v5126_v6  ;;  %v5359_v6 = vsub.f32 %v5238_v48, %v5252_v7  ;;  %v5398_v48 = vsub.f32 %v91_v24, %v5316_v25 }
  0x79   :  { %4394 = vmatprep.subr.bf16.mxu0 %v5143_v33 }
  0x80   :  { %4396 = vmatpush3.bf16.xpose.msra.mxu0 %v5143_v33  ;;  %v5364_v33 = vsub.f32 %v5242_v34, %v5256_v22  ;;  %v5406_v34 = vsub.f32 %v97_v1, %v5323_v60  ;;  %v240_v1 = vand.u32 4294901760, %v239_v26 }
  0x81   :  { %4398 = vmatprep.subr.bf16.mxu0 %v5151_v11 }
  0x82   :  { %v241_v57 = vsub.f32 %v239_v26, %v240_v1 }
  0x84   :  { %v242_v24 = vand.u32 4294901760, %v241_v57 }
  0x88   :  { %4400 = vmatpush3.bf16.xpose.msra.mxu0 %v5151_v11  ;;  %v5369_v11 = vsub.f32 %v5259_v4, %v5272_v37  ;;  %v230_v4 = vand.u32 4294901760, %v229_v59 }
  0x89   :  { %4402 = vmatprep.subr.bf16.mxu0 %v4964_v14 }
  0x8a   :  { %v231_v50 = vsub.f32 %v229_v59, %v230_v4  ;;  %v261_v59 = vsub.f32 %v5347_v62, %v260_v0 }
  0x8c   :  { %v232_v39 = vand.u32 4294901760, %v231_v50  ;;  %v262_v50 = vand.u32 4294901760, %v261_v59  ;;  %v6951_v59 = vand.u32 4294901760, %v5027_v54 }
  0x8e   :  { %3665 = vmatprep.mubr.f32.mxu1 %v232_v39 }
  0x8f   :  { %3778 = vmatmul.mubr.f32.vlgmr.msra.gmra.mrb[0].mxu0 %v239_v26  ;;  %3666 = vmatmul.mubr.f32.vlgmr.msra.gmra.mrb[0].mxu1 %v242_v24 }
  0x90   :  { %4404 = vmatpush3.bf16.xpose.msra.mxu0 %v4964_v14  ;;  %3780 = vmatprep.mubr.f32.mxu0 %v5343_v43 }
  0x91   :  { %4406 = vmatprep.subr.bf16.mxu0 %v4970_v17  ;;  %4500 = vmatpush3.bf16.msra.mxu1 %v5181_v51 }
  0x93   :  { %3781 = vmatmul.mubr.f32.gmra.mrb[2].mxu0 %v5347_v62 }
  0x94   :  { %3783 = vmatprep.mubr.f32.mxu0 %v5353_v63 }
  0x97   :  { %3784 = vmatmul.mubr.f32.gmra.mrb[4].mxu0 %v5359_v6 }
  0x98   :  { %4408 = vmatpush3.bf16.xpose.msra.mxu0 %v4970_v17  ;;  %3786 = vmatprep.mubr.f32.mxu0 %v5364_v33 }
  0x99   :  { %4410 = vmatprep.subr.bf16.mxu0 %v5023_v52 }
  0x9b   :  { %3787 = vmatmul.mubr.f32.gmra.mrb[6].mxu0 %v5369_v11 }
  0x9c   :  { %3789 = vmatprep.mubr.f32.mxu0 %v5375_v56 }
  0x9f   :  { %3790 = vmatmul.mubr.f32.gmra.mrb[8].mxu0 %v5380_v36 }
  0xa0   :  { %4412 = vmatpush3.bf16.xpose.msra.mxu0 %v5023_v52  ;;  %3792 = vmatprep.mubr.f32.mxu0 %v5384_v16 }
  0xa1   :  { %4414 = vmatprep.subr.bf16.mxu0 %v5053_v10 }
  0xa3   :  { %3793 = vmatmul.mubr.f32.gmra.mrb[10].mxu0 %v5388_v21 }
  0xa4   :  { %3795 = vmatprep.mubr.f32.mxu0 %v5393_v2 }
  0xa7   :  { %3796 = vmatmul.mubr.f32.gmra.mrb[12].mxu0 %v5398_v48 }
  0xa8   :  { %4416 = vmatpush3.bf16.xpose.msra.mxu0 %v5053_v10  ;;  %3798 = vmatprep.mubr.f32.mxu0 %v5402_v46 }
  0xa9   :  { %4418 = vmatprep.subr.bf16.mxu0 %v5089_v44 }
  0xab   :  { %3799 = vmatmul.mubr.f32.gmra.mrb[14].mxu0 %v5406_v34 }
  0xac   :  { %3833 = vmatprep.mubr.f32.mxu0 %v230_v4  ;;  %v270_v4 = vand.u32 4294901760, %v5353_v63 }
  0xb0   :  { %4420 = vmatpush3.bf16.xpose.msra.mxu0 %v5089_v44  ;;  %v251_v44 = vsub.f32 %v5343_v43, %v250_v45  ;;  %v6949_v43 = vand.u32 4294901760, %v5005_v35 }
  0xb1   :  { %4422 = vmatprep.subr.bf16.mxu0 %v5135_v27 }
  0xb2   :  { %v252_v26 = vand.u32 4294901760, %v251_v44 }
  0xb4   :  { %3668 = vmatprep.mubr.f32.mxu1 %v252_v26 }
  0xb5   :  { %3669 = vmatmul.mubr.f32.gmra.mrb[2].mxu1 %v262_v50 }
  0xb8   :  { %4424 = vmatpush3.bf16.xpose.msra.mxu0 %v5135_v27  ;;  %v6946_v27 = vand.u32 4294901760, %v4972_v18  ;;  %v280_v18 = vand.u32 4294901760, %v5359_v6 }
  0xb9   :  { %4426 = vmatprep.subr.bf16.mxu0 %v5159_v47 }
  0xc0   :  { %4428 = vmatpush3.bf16.xpose.msra.mxu0 %v5159_v47  ;;  %v6947_v47 = vand.u32 4294901760, %v4974_v19  ;;  %v271_v19 = vsub.f32 %v5353_v63, %v270_v4  ;;  %v310_v63 = vand.u32 4294901760, %v5375_v56 }
  0xc1   :  { %4430 = vmatprep.subr.bf16.mxu0 %v5171_v55 }
  0xc2   :  { %v4437_v60 = vpack.c.bf16 %v6947_v47, %v6946_v27  ;;  %v281_v27 = vsub.f32 %v5359_v6, %v280_v18  ;;  %v290_v47 = vand.u32 4294901760, %v5364_v33  ;;  %v272_v44 = vand.u32 4294901760, %v271_v19 }
  0xc3   :  { %v311_v24 = vsub.f32 %v5375_v56, %v310_v63 }
  0xc4   :  { %v282_v57 = vand.u32 4294901760, %v281_v27  ;;  %3671 = vmatprep.mubr.f32.mxu1 %v272_v44  ;;  %v291_v39 = vsub.f32 %v5364_v33, %v290_v47  ;;  %v6952_v44 = vand.u32 4294901760, %v5041_v3  ;;  %v6954_v3 = vand.u32 4294901760, %v5062_v28  ;;  %v6963_v28 = vld [vmem:[#allocation9_spill] sm:$0xff] }
  0xc6   :  { %3672 = vmatmul.mubr.f32.gmra.mrb[4].mxu1 %v282_v57  ;;  %v292_v6 = vand.u32 4294901760, %v291_v39 }
  0xc8   :  { %4432 = vmatpush3.bf16.xpose.msra.mxu0 %v5171_v55  ;;  %3674 = vmatprep.mubr.f32.mxu1 %v292_v6  ;;  %v6958_v6 = vand.u32 4294901760, %v5137_v30 }
  0xc9   :  { %4434 = vmatprep.subr.bf16.mxu0 %v5198_v8 }
  0xcf   :  { %3834 = vmatmul.mubr.f32.vlgmr.msra.gmra.mrb[0].mxu0 %v240_v1  ;;  %v300_v1 = vand.u32 4294901760, %v5369_v11 }
  0xd0   :  { %4436 = vmatpush3.bf16.xpose.msra.mxu0 %v5198_v8  ;;  %3836 = vmatprep.mubr.f32.mxu0 %v250_v45  ;;  %v6948_v8 = vand.u32 4294901760, %v4993_v31  ;;  %v320_v31 = vand.u32 4294901760, %v5380_v36  ;;  %v330_v45 = vand.u32 4294901760, %v5384_v16 }
  0xd1   :  { %4438 = vmatprep.subr.bf16.mxu0 %v4437_v60 }
  0xd2   :  { %v4441_v62 = vpack.c.bf16 %v6949_v43, %v6948_v8  ;;  %v321_v33 = vsub.f32 %v5380_v36, %v320_v31  ;;  %v350_v36 = vand.u32 4294901760, %v5393_v2  ;;  %v6953_v8 = vand.u32 4294901760, %v5051_v9 }
  0xd3   :  { %3837 = vmatmul.mubr.f32.gmra.mrb[2].mxu0 %v260_v0  ;;  %v301_v0 = vsub.f32 %v5369_v11, %v300_v1  ;;  %v312_v11 = vand.u32 4294901760, %v311_v24  ;;  %v6955_v9 = vand.u32 4294901760, %v5064_v29 }
  0xd4   :  { %3839 = vmatprep.mubr.f32.mxu0 %v270_v4  ;;  %v340_v4 = vand.u32 4294901760, %v5388_v21  ;;  %v322_v50 = vand.u32 4294901760, %v321_v33  ;;  %v351_v27 = vsub.f32 %v5393_v2, %v350_v36  ;;  %v4449_v43 = vpack.c.bf16 %v6953_v8, %v6952_v44 }
  0xd5   :  { %v302_v35 = vand.u32 4294901760, %v301_v0  ;;  %v4453_v0 = vpack.c.bf16 %v6955_v9, %v6954_v3 }
  0xd6   :  { %v341_v56 = vsub.f32 %v5388_v21, %v340_v4  ;;  %v352_v21 = vand.u32 4294901760, %v351_v27 }
  0xd7   :  { %3840 = vmatmul.mubr.f32.gmra.mrb[4].mxu0 %v280_v18  ;;  %3675 = vmatmul.mubr.f32.gmra.mrb[6].mxu1 %v302_v35  ;;  %v331_v18 = vsub.f32 %v5384_v16, %v330_v45 }
  0xd8   :  { %4440 = vmatpush3.bf16.xpose.msra.mxu0 %v4437_v60  ;;  %3842 = vmatprep.mubr.f32.mxu0 %v290_v47  ;;  %v6950_v60 = vand.u32 4294901760, %v5025_v53  ;;  %v360_v53 = vand.u32 4294901760, %v5398_v48  ;;  %v342_v54 = vand.u32 4294901760, %v341_v56  ;;  %v370_v47 = vand.u32 4294901760, %v5402_v46 }
  0xd9   :  { %4442 = vmatprep.subr.bf16.mxu0 %v4441_v62  ;;  %3677 = vmatprep.mubr.f32.mxu1 %v312_v11  ;;  %v332_v19 = vand.u32 4294901760, %v331_v18 }
  0xda   :  { %v4445_v26 = vpack.c.bf16 %v6951_v59, %v6950_v60  ;;  %v361_v16 = vsub.f32 %v5398_v48, %v360_v53  ;;  %v371_v57 = vsub.f32 %v5402_v46, %v370_v47  ;;  %v6956_v46 = vand.u32 4294901760, %v5131_v20 }
  0xdb   :  { %3843 = vmatmul.mubr.f32.gmra.mrb[6].mxu0 %v300_v1  ;;  %3678 = vmatmul.mubr.f32.gmra.mrb[8].mxu1 %v322_v50 }
  0xdc   :  { %3845 = vmatprep.mubr.f32.mxu0 %v310_v63  ;;  %3680 = vmatprep.mubr.f32.mxu1 %v332_v19  ;;  %v362_v1 = vand.u32 4294901760, %v361_v16  ;;  %v372_v48 = vand.u32 4294901760, %v371_v57 }
  0xdf   :  { %3846 = vmatmul.mubr.f32.gmra.mrb[8].mxu0 %v320_v31  ;;  %3681 = vmatmul.mubr.f32.gmra.mrb[10].mxu1 %v342_v54  ;;  %v6959_v31 = vand.u32 4294901760, %v5139_v32 }
  0xe0   :  { %4444 = vmatpush3.bf16.xpose.msra.mxu0 %v4441_v62  ;;  %3848 = vmatprep.mubr.f32.mxu0 %v330_v45  ;;  %v380_v62 = vand.u32 4294901760, %v5406_v34 }
  0xe1   :  { %4446 = vmatprep.subr.bf16.mxu0 %v4445_v26  ;;  %3683 = vmatprep.mubr.f32.mxu1 %v352_v21  ;;  %v4461_v35 = vpack.c.bf16 %v6959_v31, %v6958_v6 }
  0xe2   :  { %v381_v2 = vsub.f32 %v5406_v34, %v380_v62  ;;  %v6957_v34 = vand.u32 4294901760, %v5133_v23 }
  0xe3   :  { %3849 = vmatmul.mubr.f32.gmra.mrb[10].mxu0 %v340_v4  ;;  %3684 = vmatmul.mubr.f32.gmra.mrb[12].mxu1 %v362_v1 }
  0xe4   :  { %3851 = vmatprep.mubr.f32.mxu0 %v350_v36  ;;  %v382_v39 = vand.u32 4294901760, %v381_v2  ;;  %3686 = vmatprep.mubr.f32.mxu1 %v372_v48  ;;  %v4457_v63 = vpack.c.bf16 %v6957_v34, %v6956_v46 }
  0xe7   :  { %3852 = vmatmul.mubr.f32.gmra.mrb[12].mxu0 %v360_v53  ;;  %3687 = vmatmul.mubr.f32.gmra.mrb[14].mxu1 %v382_v39 }
  0xe8   :  { %4448 = vmatpush3.bf16.xpose.msra.mxu0 %v4445_v26  ;;  %3854 = vmatprep.mubr.f32.mxu0 %v370_v47 }
  0xe9   :  { %4450 = vmatprep.subr.bf16.mxu0 %v4449_v43 }
  0xeb   :  { %3855 = vmatmul.mubr.f32.gmra.mrb[14].mxu0 %v380_v62 }
  0xec   :  { %3889 = vmatprep.mubr.f32.mxu0 %v5094_v49 }
  0xf0   :  { %4452 = vmatpush3.bf16.xpose.msra.mxu0 %v4449_v43 }
  0xf1   :  { %4454 = vmatprep.subr.bf16.mxu0 %v4453_v0 }
  0xf8   :  { %4456 = vmatpush3.bf16.xpose.msra.mxu0 %v4453_v0 }
  0xf9   :  { %4458 = vmatprep.subr.bf16.mxu0 %v4457_v63 }
 0x100   :  { %4460 = vmatpush3.bf16.xpose.msra.mxu0 %v4457_v63 }
 0x101   :  { %4462 = vmatprep.subr.bf16.mxu0 %v4461_v35 }
 0x108   :  { %4464 = vmatpush3.bf16.xpose.msra.mxu0 %v4461_v35 }
 0x109   :  { %4466 = vmatprep.subr.bf16.mxu0 %v4964_v14 }
 0x10f   :  { %3890 = vmatmul.mubr.f32.vlgmr.msra.gmra.mrb[0].mxu0 %v5211_v41 }
 0x110   :  { %4468 = vmatpush3.bf16.xpose.msra.mxu0 %v4964_v14  ;;  %3892 = vmatprep.mubr.f32.mxu0 %v5214_v15  ;;  %v6960_v14 = vld [vmem:[#allocation7_spill] sm:$0xff] }
 0x111   :  { %4470 = vmatprep.subr.bf16.mxu0 %v4970_v17 }
 0x113   :  { %3893 = vmatmul.mubr.f32.gmra.mrb[2].mxu0 %v5230_v5 }
 0x114   :  { %3895 = vmatprep.mubr.f32.mxu0 %v5235_v12 }
 0x117   :  { %3896 = vmatmul.mubr.f32.gmra.mrb[4].mxu0 %v5252_v7 }
 0x118   :  { %4472 = vmatpush3.bf16.xpose.msra.mxu0 %v4970_v17  ;;  %3898 = vmatprep.mubr.f32.mxu0 %v5256_v22  ;;  %v6961_v17 = vld [vmem:[#allocation10_spill] sm:$0xff] }
 0x119   :  { %4474 = vmatprep.subr.bf16.mxu0 %v5023_v52 }
 0x11b   :  { %3899 = vmatmul.mubr.f32.gmra.mrb[6].mxu0 %v5272_v37 }
 0x11c   :  { %3901 = vmatprep.mubr.f32.mxu0 %v5277_v40 }
 0x11f   :  { %3902 = vmatmul.mubr.f32.gmra.mrb[8].mxu0 %v5289_v58 }
 0x120   :  { %4476 = vmatpush3.bf16.xpose.msra.mxu0 %v5023_v52  ;;  %3904 = vmatprep.mubr.f32.mxu0 %v5292_v13  ;;  %v6962_v52 = vld [vmem:[#allocation8_spill] sm:$0xff] }
 0x121   :  { %4478 = vmatprep.subr.bf16.mxu0 %v5053_v10 }
 0x123   :  { %3905 = vmatmul.mubr.f32.gmra.mrb[10].mxu0 %v5303_v42 }
 0x124   :  { %3907 = vmatprep.mubr.f32.mxu0 %v5307_v38 }
 0x127   :  { %3908 = vmatmul.mubr.f32.gmra.mrb[12].mxu0 %v5316_v25 }
 0x128   :  { %4480 = vmatpush3.bf16.xpose.msra.mxu0 %v5053_v10  ;;  %3910 = vmatprep.mubr.f32.mxu0 %v5319_v61 }
 0x129   :  { %4482 = vmatprep.subr.bf16.mxu0 %v6960_v14 }
 0x12b   :  { %3911 = vmatmul.mubr.f32.gmra.mrb[14].mxu0 %v6961_v17 }
 0x12c   :  { %3945 = vmatprep.mubr.f32.mxu0 %v5094_v49 }
 0x130   :  { %4484 = vmatpush3.bf16.xpose.msra.mxu0 %v6960_v14 }
 0x131   :  { %4486 = vmatprep.subr.bf16.mxu0 %v6962_v52 }
 0x138   :  { %4488 = vmatpush3.bf16.xpose.msra.mxu0 %v6962_v52 }
 0x139   :  { %4490 = vmatprep.subr.bf16.mxu0 %v6963_v28 }
 0x140   :  { %4492 = vmatpush3.bf16.xpose.msra.mxu0 %v6963_v28 }
 0x141   :  { %4494 = vmatprep.subr.bf16.mxu0 %v5171_v55 }
 0x148   :  { %4496 = vmatpush3.bf16.xpose.msra.mxu0 %v5171_v55 }
 0x14f   :  { %3946 = vmatmul.mubr.f32.vlgmr.msra.gmra.mrb[0].mxu0 %v5211_v41 }
 0x150   :  { %3948 = vmatprep.mubr.f32.mxu0 %v5214_v15 }
 0x153   :  { %3949 = vmatmul.mubr.f32.gmra.mrb[2].mxu0 %v5230_v5 }
 0x154   :  { %3951 = vmatprep.mubr.f32.mxu0 %v5235_v12 }
 0x157   :  { %3952 = vmatmul.mubr.f32.gmra.mrb[4].mxu0 %v5252_v7 }
 0x158   :  { %3954 = vmatprep.mubr.f32.mxu0 %v5256_v22 }
 0x15b   :  { %3955 = vmatmul.mubr.f32.gmra.mrb[6].mxu0 %v5272_v37 }
 0x15c   :  { %3957 = vmatprep.mubr.f32.mxu0 %v5277_v40  ;;  %v3184_v40 = vld [vmem:[%s6858_s2] ss:$0 sm:$0xff] }
 0x15f   :  { %3958 = vmatmul.mubr.f32.gmra.mrb[8].mxu0 %v5289_v58 }
 0x160   :  { %3960 = vmatprep.mubr.f32.mxu0 %v5292_v13 }
 0x162   :  { %v3667_v10 = vpop.f32.mrb[0].mxu1 }
 0x163   :  { %3961 = vmatmul.mubr.f32.gmra.mrb[10].mxu0 %v5303_v42  ;;  %v234_v29 = vpop.f32.mrb[1].mxu1 }
 0x164   :  { %3963 = vmatprep.mubr.f32.mxu0 %v5307_v38 }
 0x167   :  { %3964 = vmatmul.mubr.f32.gmra.mrb[12].mxu0 %v5316_v25 }
 0x168   :  { %3966 = vmatprep.mubr.f32.mxu0 %v5319_v61 }
 0x16b   :  { %3967 = vmatmul.mubr.f32.gmra.mrb[14].mxu0 %v6961_v17 }
 0x188   :  { %v3670_v49 = vpop.f32.mrb[2].mxu1 }
 0x189   :  { %v254_v20 = vpop.f32.mrb[3].mxu1 }
 0x199   :  { %v3673_v23 = vpop.f32.mrb[4].mxu1 }
 0x19a   :  { %v274_v30 = vpop.f32.mrb[5].mxu1 }
 0x1aa   :  { %v3676_v32 = vpop.f32.mrb[6].mxu1 }
 0x1ab   :  { %v294_v37 = vpop.f32.mrb[7].mxu1 }
 0x1ae   :  { %v3679_v55 = vpop.f32.mrb[8].mxu1 }
 0x1af   :  { %v314_v13 = vpop.f32.mrb[9].mxu1 }
 0x1b2   :  { %v3682_v7 = vpop.f32.mrb[10].mxu1 }
 0x1b3   :  { %v334_v42 = vpop.f32.mrb[11].mxu1 }
 0x1b6   :  { %v3685_v41 = vpop.f32.mrb[12].mxu1 }
 0x1b7   :  { %v354_v38 = vpop.f32.mrb[13].mxu1 }
 0x1ba   :  { %v3688_v15 = vpop.f32.mrb[14].mxu1 }
 0x1bb   :  { %v374_v25 = vpop.f32.mrb[15].mxu1 }
 0x222   :  { %v3947_v5 = vpop.f32.mrb[0].mxu0 }
 0x223   :  { %v4689_v12 = vadd.f32 %v3947_v5, %v3667_v10  ;;  %v1339_v22 = vpop.f32.mrb[1].mxu0 }
 0x224   :  { %v4690_v58 = vadd.f32 %v1339_v22, %v234_v29 }
 0x225   :  { %v5532_v59 = vsub.f32 %v3184_v40, %v4689_v12 }
 0x226   :  { %v3950_v61 = vpop.f32.mrb[2].mxu0  ;;  %v5529_v24 = vsub.f32 %v3184_v40, %v4690_v58 }
 0x227   :  { %v4691_v33 = vadd.f32 %v3950_v61, %v3670_v49  ;;  %v1351_v45 = vpop.f32.mrb[3].mxu0  ;;  %v1487_v49 = vlaneseq }
 0x228   :  { %v4692_v11 = vadd.f32 %v1351_v45, %v254_v20  ;;  %1455 = vmin.xlane.f32.xlu0 %v5529_v24 }
 0x229   :  { %v5538_v36 = vsub.f32 %v3184_v40, %v4691_v33  ;;  %v5577_v20 = vand.u32 127, %v1487_v49 }
 0x22a   :  { %v3953_v60 = vpop.f32.mrb[4].mxu0  ;;  %v5534_v26 = vsub.f32 %v3184_v40, %v4692_v11 }
 0x22b   :  { %v4693_v4 = vadd.f32 %v3953_v60, %v3673_v23  ;;  %v1363_v50 = vpop.f32.mrb[5].mxu0 }
 0x22c   :  { %v4694_v18 = vadd.f32 %v1363_v50, %v274_v30  ;;  %1457 = vmin.xlane.f32.xlu0 %v5532_v59  ;;  %1459 = vmin.xlane.f32.xlu1 %v5534_v26 }
 0x22d   :  { %v5544_v47 = vsub.f32 %v3184_v40, %v4693_v4 }
 0x22e   :  { %v3956_v56 = vpop.f32.mrb[6].mxu0  ;;  %v5540_v19 = vsub.f32 %v3184_v40, %v4694_v18 }
 0x22f   :  { %v4695_v53 = vadd.f32 %v3956_v56, %v3676_v32  ;;  %v1375_v54 = vpop.f32.mrb[7].mxu0 }
 0x230   :  { %v4696_v27 = vadd.f32 %v1375_v54, %v294_v37  ;;  %1461 = vmin.xlane.f32.xlu1 %v5538_v36  ;;  %1463 = vmin.xlane.f32.xlu0 %v5540_v19 }
 0x231   :  { %v5550_v1 = vsub.f32 %v3184_v40, %v4695_v53 }
 0x232   :  { %v3959_v16 = vpop.f32.mrb[8].mxu0  ;;  %v5546_v21 = vsub.f32 %v3184_v40, %v4696_v27 }
 0x233   :  { %v4697_v44 = vadd.f32 %v3959_v16, %v3679_v55  ;;  %v1387_v8 = vpop.f32.mrb[9].mxu0 }
 0x234   :  { %v4698_v43 = vadd.f32 %v1387_v8, %v314_v13  ;;  %1465 = vmin.xlane.f32.xlu1 %v5544_v47  ;;  %1467 = vmin.xlane.f32.xlu0 %v5546_v21 }
 0x235   :  { %v5556_v9 = vsub.f32 %v3184_v40, %v4697_v44 }
 0x236   :  { %v3962_v62 = vpop.f32.mrb[10].mxu0  ;;  %v5552_v57 = vsub.f32 %v3184_v40, %v4698_v43 }
 0x237   :  { %v4699_v2 = vadd.f32 %v3962_v62, %v3682_v7  ;;  %v1399_v48 = vpop.f32.mrb[11].mxu0 }
 0x238   :  { %v4700_v39 = vadd.f32 %v1399_v48, %v334_v42  ;;  %1469 = vmin.xlane.f32.xlu1 %v5550_v1  ;;  %1471 = vmin.xlane.f32.xlu0 %v5552_v57 }
 0x239   :  { %v5562_v31 = vsub.f32 %v3184_v40, %v4699_v2 }
 0x23a   :  { %v3965_v3 = vpop.f32.mrb[12].mxu0  ;;  %v5558_v0 = vsub.f32 %v3184_v40, %v4700_v39 }
 0x23b   :  { %v4701_v46 = vadd.f32 %v3965_v3, %v3685_v41  ;;  %v1411_v34 = vpop.f32.mrb[13].mxu0 }
 0x23c   :  { %v4702_v63 = vadd.f32 %v1411_v34, %v354_v38  ;;  %1473 = vmin.xlane.f32.xlu1 %v5556_v9  ;;  %1475 = vmin.xlane.f32.xlu0 %v5558_v0 }
 0x23d   :  { %v5568_v28 = vsub.f32 %v3184_v40, %v4701_v46 }
 0x23e   :  { %v3968_v6 = vpop.f32.mrb[14].mxu0  ;;  %v5564_v35 = vsub.f32 %v3184_v40, %v4702_v63 }
 0x23f   :  { %v4703_v14 = vadd.f32 %v3968_v6, %v3688_v15  ;;  %v1423_v17 = vpop.f32.mrb[15].mxu0 }
 0x240   :  { %v4704_v52 = vadd.f32 %v1423_v17, %v374_v25  ;;  %1477 = vmin.xlane.f32.xlu1 %v5562_v31  ;;  %1479 = vmin.xlane.f32.xlu0 %v5564_v35 }
 0x241   :  { %v5574_v29 = vsub.f32 %v3184_v40, %v4703_v14 }
 0x242   :  { %v5570_v10 = vsub.f32 %v3184_v40, %v4704_v52 }
 0x244   :  { %1481 = vmin.xlane.f32.xlu1 %v5568_v28  ;;  %1483 = vmin.xlane.f32.xlu0 %v5570_v10 }
 0x248   :  { %1485 = vmin.xlane.f32.xlu1 %v5574_v29 }
 0x2b5   :  { %v1456_v23 = vpop.xlane.xlu0 %1455 }
 0x2b6   :  { %vm1489_vm1 = vcmp.le.f32.partialorder %v5529_v24, %v1456_v23 }
 0x2b7   :  { %v5581_v30 = vsel %vm1489_vm1, %v5577_v20, 128 }
 0x2b8   :  { %v1522_v32 = vshra.s32 %v5581_v30, 16 }
 0x2b9   :  { %v1458_v37 = vpop.xlane.xlu0 %1457  ;;  %v1460_v55 = vpop.xlane.xlu1 %1459 }
 0x2ba   :  { %vm1490_vm2 = vcmp.le.f32.partialorder %v5532_v59, %v1458_v37  ;;  %vm1491_vm3 = vcmp.le.f32.partialorder %v5534_v26, %v1460_v55  ;;  %v5586_v13 = vcvt.s32.f32 %v1522_v32 }
 0x2bb   :  { %v5589_v7 = vsel %vm1490_vm2, %v5577_v20, 128  ;;  %v5592_v42 = vsel %vm1491_vm3, %v5577_v20, 128 }
 0x2bc   :  { %1525 = vmin.xlane.f32.xlu0 %v5586_v13  ;;  %v1536_v41 = vshra.s32 %v5589_v7, 16  ;;  %v1550_v38 = vshra.s32 %v5592_v42, 16 }
 0x2bd   :  { %v1462_v15 = vpop.xlane.xlu1 %1461  ;;  %v1464_v25 = vpop.xlane.xlu0 %1463 }
 0x2be   :  { %vm1492_vm4 = vcmp.le.f32.partialorder %v5538_v36, %v1462_v15  ;;  %vm1493_vm5 = vcmp.le.f32.partialorder %v5540_v19, %v1464_v25  ;;  %v5599_v5 = vcvt.s32.f32 %v1536_v41  ;;  %v5601_v12 = vcvt.s32.f32 %v1550_v38  ;;  %v5716_v41 = vld [vmem:[%s6857_s1 + $0x18] sm:$0xff]  ;;  %v5722_v15 = vld [vmem:[%s6857_s1 + $0x20] sm:$0xff] }
 0x2bf   :  { %v5604_v22 = vsel %vm1492_vm4, %v5577_v20, 128  ;;  %v5607_v40 = vsel %vm1493_vm5, %v5577_v20, 128  ;;  %v6891_v38 = vand.u32 4294901760, %v5716_v41  ;;  %v6890_v25 = vand.u32 4294901760, %v5722_v15 }
 0x2c0   :  { %1539 = vmin.xlane.f32.xlu1 %v5599_v5  ;;  %1553 = vmin.xlane.f32.xlu0 %v5601_v12  ;;  %v1564_v58 = vshra.s32 %v5604_v22, 16  ;;  %v1578_v61 = vshra.s32 %v5607_v40, 16 }
 0x2c1   :  { %v1466_v24 = vpop.xlane.xlu1 %1465  ;;  %v1468_v33 = vpop.xlane.xlu0 %1467 }
 0x2c2   :  { %vm1494_vm6 = vcmp.le.f32.partialorder %v5544_v47, %v1466_v24  ;;  %vm1495_vm7 = vcmp.le.f32.partialorder %v5546_v21, %v1468_v33  ;;  %v5615_v45 = vcvt.s32.f32 %v1564_v58  ;;  %v5617_v11 = vcvt.s32.f32 %v1578_v61  ;;  %v5728_v58 = vld [vmem:[%s6857_s1 + $0x28] sm:$0xff]  ;;  %v5734_v24 = vld [vmem:[%s6857_s1 + $0x30] sm:$0xff] }
 0x2c3   :  { %v5620_v60 = vsel %vm1494_vm6, %v5577_v20, 128  ;;  %v5623_v59 = vsel %vm1495_vm7, %v5577_v20, 128  ;;  %v6889_v61 = vand.u32 4294901760, %v5728_v58  ;;  %v6888_v33 = vand.u32 4294901760, %v5734_v24 }
 0x2c4   :  { %1567 = vmin.xlane.f32.xlu1 %v5615_v45  ;;  %1581 = vmin.xlane.f32.xlu0 %v5617_v11  ;;  %v1592_v26 = vshra.s32 %v5620_v60, 16  ;;  %v1606_v4 = vshra.s32 %v5623_v59, 16 }
 0x2c5   :  { %v1470_v50 = vpop.xlane.xlu1 %1469  ;;  %v1472_v18 = vpop.xlane.xlu0 %1471 }
 0x2c6   :  { %vm1496_vm8 = vcmp.le.f32.partialorder %v5550_v1, %v1470_v50  ;;  %vm1497_vm9 = vcmp.le.f32.partialorder %v5552_v57, %v1472_v18  ;;  %v5631_v56 = vcvt.s32.f32 %v1592_v26  ;;  %v5633_v36 = vcvt.s32.f32 %v1606_v4  ;;  %v5740_v26 = vld [vmem:[%s6857_s1 + $0x38] sm:$0xff] }
 0x2c7   :  { %v5636_v19 = vsel %vm1496_vm8, %v5577_v20, 128  ;;  %v5639_v53 = vsel %vm1497_vm9, %v5577_v20, 128  ;;  %v6887_v4 = vand.u32 4294901760, %v5740_v26  ;;  %v5753_v18 = vpack.c.bf16 %v6889_v61, %v6890_v25 }
 0x2c8   :  { %1595 = vmin.xlane.f32.xlu1 %v5631_v56  ;;  %1609 = vmin.xlane.f32.xlu0 %v5633_v36  ;;  %v1620_v54 = vshra.s32 %v5636_v19, 16  ;;  %v1634_v27 = vshra.s32 %v5639_v53, 16 }
 0x2c9   :  { %v1474_v16 = vpop.xlane.xlu1 %1473  ;;  %v1476_v47 = vpop.xlane.xlu0 %1475 }
 0x2ca   :  { %vm1498_vm10 = vcmp.le.f32.partialorder %v5556_v9, %v1474_v16  ;;  %vm1499_vm11 = vcmp.le.f32.partialorder %v5558_v0, %v1476_v47  ;;  %v5647_v21 = vcvt.s32.f32 %v1620_v54  ;;  %v5649_v44 = vcvt.s32.f32 %v1634_v27 }
 0x2cb   :  { %v5652_v8 = vsel %vm1498_vm10, %v5577_v20, 128  ;;  %v5655_v43 = vsel %vm1499_vm11, %v5577_v20, 128  ;;  %v5762_v54 = vpack.c.bf16 %v6887_v4, %v6888_v33  ;;  %v1521_v27 = vand.u32 65535, %v5581_v30 }
 0x2cc   :  { %1623 = vmin.xlane.f32.xlu1 %v5647_v21  ;;  %1637 = vmin.xlane.f32.xlu0 %v5649_v44  ;;  %v1648_v62 = vshra.s32 %v5652_v8, 16  ;;  %v1662_v1 = vshra.s32 %v5655_v43, 16  ;;  %v1535_v16 = vand.u32 65535, %v5589_v7  ;;  %v1549_v47 = vand.u32 65535, %v5592_v42 }
 0x2cd   :  { %v1478_v57 = vpop.xlane.xlu1 %1477  ;;  %v1480_v2 = vpop.xlane.xlu0 %1479  ;;  %6964 = vst [vmem:[#allocation7_spill] sm:$0xff] %v5762_v54 }
 0x2ce   :  { %vm1500_vm12 = vcmp.le.f32.partialorder %v5562_v31, %v1478_v57  ;;  %vm1501_vm13 = vcmp.le.f32.partialorder %v5564_v35, %v1480_v2  ;;  %v5663_v48 = vcvt.s32.f32 %v1648_v62  ;;  %v5665_v39 = vcvt.s32.f32 %v1662_v1 }
 0x2cf   :  { %v5668_v3 = vsel %vm1500_vm12, %v5577_v20, 128  ;;  %v5671_v9 = vsel %vm1501_vm13, %v5577_v20, 128  ;;  %v1523_v1 = vcvt.s32.f32 %v1521_v27  ;;  %v1563_v2 = vand.u32 65535, %v5604_v22 }
 0x2d0   :  { %1651 = vmin.xlane.f32.xlu1 %v5663_v48  ;;  %1665 = vmin.xlane.f32.xlu0 %v5665_v39  ;;  %v1676_v0 = vshra.s32 %v5668_v3, 16  ;;  %v1690_v46 = vshra.s32 %v5671_v9, 16  ;;  %v1537_v30 = vcvt.s32.f32 %v1535_v16  ;;  %v1551_v7 = vcvt.s32.f32 %v1549_v47 }
 0x2d1   :  { %v1482_v34 = vpop.xlane.xlu1 %1481  ;;  %v1484_v63 = vpop.xlane.xlu0 %1483  ;;  %v1591_v22 = vand.u32 65535, %v5620_v60  ;;  %v1619_v60 = vand.u32 65535, %v5636_v19  ;;  %v5813_v19 = vld [vmem:[%s6857_s1 + $0x48] sm:$0xff] }
 0x2d2   :  { %vm1502_vm14 = vcmp.le.f32.partialorder %v5568_v28, %v1482_v34  ;;  %vm1503_vm15 = vcmp.le.f32.partialorder %v5570_v10, %v1484_v63  ;;  %v5679_v6 = vcvt.s32.f32 %v1676_v0  ;;  %v5681_v31 = vcvt.s32.f32 %v1690_v46 }
 0x2d3   :  { %v5684_v35 = vsel %vm1502_vm14, %v5577_v20, 128  ;;  %v5687_v14 = vsel %vm1503_vm15, %v5577_v20, 128  ;;  %v1577_v0 = vand.u32 65535, %v5607_v40  ;;  %v1605_v40 = vand.u32 65535, %v5623_v59 }
 0x2d4   :  { %1679 = vmin.xlane.f32.xlu1 %v5679_v6  ;;  %1693 = vmin.xlane.f32.xlu0 %v5681_v31  ;;  %v1704_v17 = vshra.s32 %v5684_v35, 16  ;;  %v1718_v52 = vshra.s32 %v5687_v14, 16  ;;  %v1633_v59 = vand.u32 65535, %v5639_v53  ;;  %v1593_v16 = vcvt.s32.f32 %v1591_v22 }
 0x2d5   :  { %v1486_v28 = vpop.xlane.xlu1 %1485  ;;  %v1607_v47 = vcvt.s32.f32 %v1605_v40  ;;  %v1821_v53 = vand.u32 4294901760, %v5813_v19 }
 0x2d6   :  { %vm1504_vm1 = vcmp.le.f32.partialorder %v5574_v29, %v1486_v28  ;;  %v5694_v10 = vcvt.s32.f32 %v1704_v17  ;;  %v5696_v49 = vcvt.s32.f32 %v1718_v52  ;;  %v5710_v29 = vld [vmem:[%s6857_s1 + $0x10] sm:$0xff]  ;;  %v1565_v52 = vcvt.s32.f32 %v1563_v2 }
 0x2d7   :  { %v5699_v23 = vsel %vm1504_vm1, %v5577_v20, 128  ;;  %v1800_v55 = vand.u32 4294901760, %v5710_v29  ;;  %v1579_v28 = vcvt.s32.f32 %v1577_v0 }
 0x2d8   :  { %1707 = vmin.xlane.f32.xlu1 %v5694_v10  ;;  %1721 = vmin.xlane.f32.xlu0 %v5696_v49  ;;  %v1732_v32 = vshra.s32 %v5699_v23, 16  ;;  %v1731_v33 = vand.u32 65535, %v5699_v23 }
 0x2d9   :  { %v5747_v50 = vpack.c.bf16 %v6891_v38, %v1800_v55 }
 0x2da   :  { %v5704_v37 = vcvt.s32.f32 %v1732_v32 }
 0x2db   :  { %4502 = vmatprep.subr.bf16.mxu1 %v5747_v50 }
 0x2dc   :  { %1735 = vmin.xlane.f32.xlu1 %v5704_v37  ;;  %4504 = vmatpush3.bf16.msra.mxu1 %v5747_v50 }
 0x2dd   :  { %4506 = vmatprep.subr.bf16.mxu1 %v5753_v18 }
 0x2e0   :  { %4508 = vmatpush3.bf16.msra.mxu1 %v5753_v18 }
 0x2e1   :  { %4510 = vmatprep.subr.bf16.mxu1 %v5762_v54 }
 0x2e4   :  { %4512 = vmatpush3.bf16.msra.mxu1 %v5762_v54 }
 0x349   :  { %v5770_v62 = vpop.xlane.xlu0 %1525 }
 0x34a   :  { %vm1527_vm2 = vcmp.eq.f32.partialorder %v5586_v13, %v5770_v62 }
 0x34b   :  { %v1528_v57 = vsel %vm1527_vm2, %v1523_v1, inf }
 0x34c   :  { %1529 = vmin.xlane.f32.xlu0 %v1528_v57 }
 0x34d   :  { %v5776_v46 = vpop.xlane.xlu1 %1539  ;;  %v5778_v34 = vpop.xlane.xlu0 %1553 }
 0x34e   :  { %vm1541_vm3 = vcmp.eq.f32.partialorder %v5599_v5, %v5776_v46  ;;  %vm1555_vm4 = vcmp.eq.f32.partialorder %v5601_v12, %v5778_v34 }
 0x34f   :  { %v1542_v42 = vsel %vm1541_vm3, %v1537_v30, inf  ;;  %v1556_v13 = vsel %vm1555_vm4, %v1551_v7, inf  ;;  %v1621_v30 = vcvt.s32.f32 %v1619_v60  ;;  %v1635_v7 = vcvt.s32.f32 %v1633_v59  ;;  %v5854_v59 = vld [vmem:[%s6857_s1 + $0x60] sm:$0xff] }
 0x350   :  { %1543 = vmin.xlane.f32.xlu1 %v1542_v42  ;;  %1557 = vmin.xlane.f32.xlu0 %v1556_v13  ;;  %v5825_v42 = vld [vmem:[%s6857_s1 + $0x50] sm:$0xff] }
 0x351   :  { %v5786_v63 = vpop.xlane.xlu1 %1567  ;;  %v5788_v17 = vpop.xlane.xlu0 %1581  ;;  %v1824_v13 = vand.u32 4294901760, %v5825_v42 }
 0x352   :  { %vm1569_vm5 = vcmp.eq.f32.partialorder %v5615_v45, %v5786_v63  ;;  %vm1583_vm6 = vcmp.eq.f32.partialorder %v5617_v11, %v5788_v17  ;;  %v5807_v45 = vld [vmem:[%s6857_s1 + $0x40] sm:$0xff] }
 0x353   :  { %v1570_v5 = vsel %vm1569_vm5, %v1565_v52, inf  ;;  %v1584_v12 = vsel %vm1583_vm6, %v1579_v28, inf  ;;  %v1818_v11 = vand.u32 4294901760, %v5807_v45 }
 0x354   :  { %1571 = vmin.xlane.f32.xlu1 %v1570_v5  ;;  %1585 = vmin.xlane.f32.xlu0 %v1584_v12 }
 0x355   :  { %v5796_v32 = vpop.xlane.xlu1 %1595  ;;  %v5798_v27 = vpop.xlane.xlu0 %1609  ;;  %v5842_v52 = vpack.c.bf16 %v1821_v53, %v1818_v11 }
 0x356   :  { %vm1597_vm7 = vcmp.eq.f32.partialorder %v5631_v56, %v5796_v32  ;;  %vm1611_vm8 = vcmp.eq.f32.partialorder %v5633_v36, %v5798_v27  ;;  %v1647_v56 = vand.u32 65535, %v5652_v8  ;;  %v1661_v36 = vand.u32 65535, %v5655_v43  ;;  %v5835_v8 = vld [vmem:[%s6857_s1 + $0x58] sm:$0xff] }
 0x357   :  { %v1598_v1 = vsel %vm1597_vm7, %v1593_v16, inf  ;;  %v1612_v57 = vsel %vm1611_vm8, %v1607_v47, inf  ;;  %v1827_v43 = vand.u32 4294901760, %v5835_v8  ;;  %6965 = vst [vmem:[#allocation10_spill] sm:$0xff] %v5842_v52  ;;  %4514 = vmatprep.subr.bf16.mxu1 %v5842_v52  ;;  %v1830_v16 = vand.u32 4294901760, %v5854_v59 }
 0x358   :  { %1599 = vmin.xlane.f32.xlu1 %v1598_v1  ;;  %1613 = vmin.xlane.f32.xlu0 %v1612_v57  ;;  %v1649_v12 = vcvt.s32.f32 %v1647_v56  ;;  %v1663_v60 = vcvt.s32.f32 %v1661_v36 }
 0x359   :  { %v5818_v2 = vpop.xlane.xlu1 %1623  ;;  %v5820_v0 = vpop.xlane.xlu0 %1637  ;;  %4516 = vmatpush3.bf16.msra.mxu1 %v5842_v52  ;;  %v5872_v57 = vpack.c.bf16 %v1827_v43, %v1824_v13 }
 0x35a   :  { %vm1625_vm9 = vcmp.eq.f32.partialorder %v5647_v21, %v5818_v2  ;;  %vm1639_vm10 = vcmp.eq.f32.partialorder %v5649_v44, %v5820_v0  ;;  %v1675_v21 = vand.u32 65535, %v5668_v3  ;;  %v1689_v44 = vand.u32 65535, %v5671_v9  ;;  %v5865_v3 = vld [vmem:[%s6857_s1 + $0x68] sm:$0xff] }
 0x35b   :  { %v1626_v22 = vsel %vm1625_vm9, %v1621_v30, inf  ;;  %v1640_v40 = vsel %vm1639_vm10, %v1635_v7, inf  ;;  %v1833_v9 = vand.u32 4294901760, %v5865_v3  ;;  %6966 = vst [vmem:[#allocation8_spill] sm:$0xff] %v5872_v57  ;;  %4518 = vmatprep.subr.bf16.mxu1 %v5872_v57 }
 0x35c   :  { %1627 = vmin.xlane.f32.xlu1 %v1626_v22  ;;  %1641 = vmin.xlane.f32.xlu0 %v1640_v40  ;;  %v1677_v30 = vcvt.s32.f32 %v1675_v21  ;;  %v1691_v7 = vcvt.s32.f32 %v1689_v44  ;;  %v5884_v22 = vld [vmem:[%s6857_s1 + $0x70] sm:$0xff] }
 0x35d   :  { %v5846_v28 = vpop.xlane.xlu1 %1651  ;;  %v5848_v5 = vpop.xlane.xlu0 %1665  ;;  %v1836_v40 = vand.u32 4294901760, %v5884_v22  ;;  %4520 = vmatpush3.bf16.msra.mxu1 %v5872_v57 }
 0x35e   :  { %vm1653_vm11 = vcmp.eq.f32.partialorder %v5663_v48, %v5846_v28  ;;  %vm1667_vm12 = vcmp.eq.f32.partialorder %v5665_v39, %v5848_v5  ;;  %v1703_v48 = vand.u32 65535, %v5684_v35  ;;  %v1717_v39 = vand.u32 65535, %v5687_v14  ;;  %v5890_v35 = vld [vmem:[%s6857_s1 + $0x78] sm:$0xff] }
 0x35f   :  { %v1654_v47 = vsel %vm1653_vm11, %v1649_v12, inf  ;;  %v1668_v1 = vsel %vm1667_vm12, %v1663_v60, inf  ;;  %v1839_v14 = vand.u32 4294901760, %v5890_v35  ;;  %v5902_v12 = vpack.c.bf16 %v1833_v9, %v1830_v16  ;;  %v4866_v60 = vld [vmem:[%s6857_s1] sm:$0xff] }
 0x360   :  { %1655 = vmin.xlane.f32.xlu1 %v1654_v47  ;;  %1669 = vmin.xlane.f32.xlu0 %v1668_v1  ;;  %v6968_v47 = vld [vmem:[#allocation5_spill] sm:$0xff]  ;;  %v1705_v38 = vcvt.s32.f32 %v1703_v48 }
 0x361   :  { %v5876_v56 = vpop.xlane.xlu1 %1679  ;;  %v5878_v36 = vpop.xlane.xlu0 %1693  ;;  %6967 = vst [vmem:[#allocation9_spill] sm:$0xff] %v5902_v12  ;;  %v6969_v1 = vand.u32 4294901760, %v6968_v47  ;;  %v1719_v47 = vcvt.s32.f32 %v1717_v39  ;;  %4522 = vmatprep.subr.bf16.mxu1 %v5902_v12  ;;  %v5934_v48 = vpack.c.bf16 %v1839_v14, %v1836_v40 }
 0x362   :  { %vm1681_vm13 = vcmp.eq.f32.partialorder %v5679_v6, %v5876_v56  ;;  %vm1695_vm14 = vcmp.eq.f32.partialorder %v5681_v31, %v5878_v36  ;;  %v4867_v31 = vld [vmem:[%s6857_s1 + $0x8] sm:$0xff]  ;;  %4524 = vmatpush3.bf16.msra.mxu1 %v5902_v12 }
 0x363   :  { %v1682_v21 = vsel %vm1681_vm13, %v1677_v30, inf  ;;  %v1696_v44 = vsel %vm1695_vm14, %v1691_v7, inf  ;;  %v5909_v6 = vsub.f32 %v4866_v60, %v6969_v1  ;;  %v6971_v30 = vld [vmem:[#allocation6_spill] sm:$0xff]  ;;  %6974 = vst [vmem:[#allocation11_spill] sm:$0xff] %v5934_v48  ;;  %4526 = vmatprep.subr.bf16.mxu1 %v5934_v48 }
 0x364   :  { %1683 = vmin.xlane.f32.xlu1 %v1682_v21  ;;  %1697 = vmin.xlane.f32.xlu0 %v1696_v44  ;;  %v6972_v7 = vand.u32 4294901760, %v6971_v30 }
 0x365   :  { %6970 = vst [vmem:[#allocation5_spill] sm:$0xff] %v5909_v6  ;;  %v5919_v61 = vpop.xlane.xlu1 %1707  ;;  %v5921_v25 = vpop.xlane.xlu0 %1721  ;;  %v6901_v21 = vand.u32 4294901760, %v5909_v6 }
 0x366   :  { %v5916_v4 = vsub.f32 %v4867_v31, %v6972_v7  ;;  %vm1709_vm15 = vcmp.eq.f32.partialorder %v5694_v10, %v5919_v61  ;;  %vm1723_vm1 = vcmp.eq.f32.partialorder %v5696_v49, %v5921_v25  ;;  %v1733_v49 = vcvt.s32.f32 %v1731_v33  ;;  %4528 = vmatpush3.bf16.msra.mxu1 %v5934_v48 }
 0x367   :  { %v1710_v44 = vsel %vm1709_vm15, %v1705_v38, inf  ;;  %v1724_v23 = vsel %vm1723_vm1, %v1719_v47, inf  ;;  %v2038_v39 = vsub.f32 %v5909_v6, %v6901_v21  ;;  %v5955_v33 = vsub.f32 %v5807_v45, %v1818_v11 }
 0x368   :  { %6973 = vst [vmem:[#allocation6_spill] sm:$0xff] %v5916_v4  ;;  %1711 = vmin.xlane.f32.xlu1 %v1710_v44  ;;  %1725 = vmin.xlane.f32.xlu0 %v1724_v23  ;;  %v6900_v10 = vand.u32 4294901760, %v5916_v4  ;;  %v5973_v45 = vsub.f32 %v5825_v42, %v1824_v13  ;;  %v5978_v11 = vsub.f32 %v5835_v8, %v1827_v43  ;;  %v1686_v21 = vcvt.f32.s32 %v5876_v56 }
 0x369   :  { %v5940_v60 = vpop.xlane.xlu1 %1735  ;;  %v2039_v38 = vand.u32 4294901760, %v2038_v39  ;;  %6975 = vst [vmem:[#allocation12_spill] sm:$0xff] %v5955_v33  ;;  %v6899_v47 = vand.u32 4294901760, %v5955_v33  ;;  %v5993_v13 = vsub.f32 %v5854_v59, %v1830_v16  ;;  %v5998_v8 = vsub.f32 %v5865_v3, %v1833_v9 }
 0x36a   :  { %vm1737_vm2 = vcmp.eq.f32.partialorder %v5704_v37, %v5940_v60  ;;  %v2045_v1 = vsub.f32 %v5916_v4, %v6900_v10  ;;  %v5960_v37 = vsub.f32 %v5813_v19, %v1821_v53  ;;  %6977 = vst [vmem:[#allocation14_spill] sm:$0xff] %v5973_v45  ;;  %6978 = vst [vmem:[#allocation15_spill] sm:$0xff] %v5978_v11  ;;  %v1728_v56 = vcvt.f32.s32 %v5921_v25 }
 0x36b   :  { %v1738_v31 = vsel %vm1737_vm2, %v1733_v49, inf  ;;  %v2094_v23 = vsub.f32 %v5955_v33, %v6899_v47  ;;  %v6897_v49 = vand.u32 4294901760, %v5973_v45  ;;  %6979 = vst [vmem:[#allocation16_spill] sm:$0xff] %v5993_v13  ;;  %6980 = vst [vmem:[#allocation17_spill] sm:$0xff] %v5998_v8  ;;  %v6010_v59 = vsub.f32 %v5884_v22, %v1836_v40 }
 0x36c   :  { %1739 = vmin.xlane.f32.xlu1 %v1738_v31  ;;  %v2046_v30 = vand.u32 4294901760, %v2045_v1  ;;  %6976 = vst [vmem:[#allocation13_spill] sm:$0xff] %v5960_v37  ;;  %v6898_v44 = vand.u32 4294901760, %v5960_v37  ;;  %v6015_v16 = vsub.f32 %v5890_v35, %v1839_v14  ;;  %v1742_v25 = vcvt.f32.s32 %v5940_v60 }
 0x36d   :  { %v2095_v19 = vand.u32 4294901760, %v2094_v23  ;;  %v2108_v31 = vsub.f32 %v5973_v45, %v6897_v49  ;;  %v6892_v23 = vand.u32 4294901760, %v5993_v13  ;;  %6981 = vst [vmem:[#allocation18_spill] sm:$0xff] %v6010_v59 }
 0x36e   :  { %v5949_v7 = vpack.c.bf16 %v2046_v30, %v2039_v38  ;;  %v2101_v39 = vsub.f32 %v5960_v37, %v6898_v44  ;;  %v6896_v38 = vand.u32 4294901760, %v5978_v11  ;;  %6982 = vst [vmem:[#allocation19_spill] sm:$0xff] %v6015_v16  ;;  %v1588_v44 = vcvt.f32.s32 %v5788_v17 }
 0x36f   :  { %v2109_v43 = vand.u32 4294901760, %v2108_v31  ;;  %v6893_v31 = vand.u32 4294901760, %v6010_v59  ;;  %v1644_v17 = vcvt.f32.s32 %v5820_v0 }
 0x370   :  { %4530 = vmatprep.subr.bf16.mxu1 %v5949_v7  ;;  %v2102_v53 = vand.u32 4294901760, %v2101_v39  ;;  %v2115_v42 = vsub.f32 %v5978_v11, %v6896_v38  ;;  %v6895_v39 = vand.u32 4294901760, %v5998_v8 }
 0x371   :  { %v2136_v22 = vsub.f32 %v6010_v59, %v6893_v31  ;;  %v6042_v31 = vpack.c.bf16 %v5978_v11, %v5973_v45 }
 0x372   :  { %v5982_v1 = vpack.c.bf16 %v2102_v53, %v2095_v19  ;;  %v2116_v30 = vand.u32 4294901760, %v2115_v42  ;;  %v2122_v53 = vsub.f32 %v5993_v13, %v6892_v23  ;;  %v2129_v3 = vsub.f32 %v5998_v8, %v6895_v39 }
 0x373   :  { %v6894_v42 = vand.u32 4294901760, %v6015_v16  ;;  %v2137_v14 = vand.u32 4294901760, %v2136_v22  ;;  %v1532_v22 = vcvt.f32.s32 %v5770_v62  ;;  %v6983_v39 = vand.u32 4294901760, %v5716_v41 }
 0x374   :  { %v6002_v19 = vpack.c.bf16 %v2116_v30, %v2109_v43  ;;  %v2123_v9 = vand.u32 4294901760, %v2122_v53  ;;  %v2130_v43 = vand.u32 4294901760, %v2129_v3  ;;  %v6034_v53 = vpack.c.bf16 %v5916_v4, %v5909_v6 }
 0x375   :  { %v2143_v40 = vsub.f32 %v6015_v16, %v6894_v42  ;;  %v6038_v3 = vpack.c.bf16 %v5960_v37, %v5955_v33  ;;  %v6059_v42 = vsub.f32 %v5710_v29, %v1800_v55  ;;  %v6064_v38 = vsub.f32 %v5716_v41, %v6983_v39 }
 0x376   :  { %v6028_v35 = vpack.c.bf16 %v2130_v43, %v2123_v9  ;;  %v6046_v9 = vpack.c.bf16 %v5998_v8, %v5993_v13  ;;  %v6050_v43 = vpack.c.bf16 %v6015_v16, %v6010_v59  ;;  %v1533_v49 = vshll.u32 %v1532_v22, 16 }
 0x377   :  { %v2144_v30 = vand.u32 4294901760, %v2143_v40  ;;  %v1546_v40 = vcvt.f32.s32 %v5776_v46  ;;  %v1602_v62 = vcvt.f32.s32 %v5796_v32  ;;  %v1616_v46 = vcvt.f32.s32 %v5798_v27 }
 0x378   :  { %v6985_v29 = vand.u32 4294901760, %v5728_v58  ;;  %v1658_v32 = vcvt.f32.s32 %v5846_v28  ;;  %v1672_v27 = vcvt.f32.s32 %v5848_v5  ;;  %v6109_v5 = vshll.u32 %v1686_v21, 16 }
 0x379   :  { %v6030_v23 = vpack.c.bf16 %v2144_v30, %v2137_v14  ;;  %v1560_v14 = vcvt.f32.s32 %v5778_v34  ;;  %v1574_v30 = vcvt.f32.s32 %v5786_v63  ;;  %v1630_v34 = vcvt.f32.s32 %v5818_v2 }
 0x37a   :  { %v6984_v63 = vand.u32 4294901760, %v5722_v15  ;;  %v6078_v55 = vsub.f32 %v5728_v58, %v6985_v29  ;;  %v1547_v41 = vshll.u32 %v1546_v40, 16  ;;  %v6902_v2 = vand.u32 4294901760, %v6059_v42 }
 0x37b   :  { %v1561_v39 = vshll.u32 %v1560_v14, 16  ;;  %v1575_v22 = vshll.u32 %v1574_v30, 16  ;;  %v1700_v58 = vcvt.f32.s32 %v5878_v36  ;;  %v6089_v40 = vshll.u32 %v1616_v46, 16 }
 0x37c   :  { %v6073_v47 = vsub.f32 %v5722_v15, %v6984_v63  ;;  %v1589_v15 = vshll.u32 %v1588_v44, 16  ;;  %v6085_v63 = vshll.u32 %v1602_v62, 16  ;;  %v6091_v14 = vshll.u32 %v1630_v34, 16 }
 0x37d   :  { %v6095_v30 = vshll.u32 %v1644_v17, 16  ;;  %v6097_v29 = vshll.u32 %v1658_v32, 16  ;;  %v1714_v44 = vcvt.f32.s32 %v5919_v61  ;;  %v6100_v10 = vshll.u32 %v1672_v27, 16 }
 0x37e   :  { %v2052_v36 = vsub.f32 %v6059_v42, %v6902_v2  ;;  %v6986_v46 = vand.u32 4294901760, %v6064_v38  ;;  %v6111_v17 = vshll.u32 %v1700_v58, 16  ;;  %v6987_v61 = vand.u32 4294901760, %v5734_v24 }
 0x37f   :  { %v6988_v2 = vand.u32 4294901760, %v6073_v47  ;;  %v6989_v21 = vand.u32 4294901760, %v6078_v55  ;;  %v6910_v59 = vmov 0.0  }
 0x380   :  { %v2059_v34 = vsub.f32 %v6064_v38, %v6986_v46  ;;  %v6118_v27 = vsub.f32 %v5734_v24, %v6987_v61  ;;  %v6132_v46 = vshll.u32 %v1714_v44, 16  ;;  %v6136_v61 = vshll.u32 %v1728_v56, 16 }
 0x381   :  { %v2066_v16 = vsub.f32 %v6073_v47, %v6988_v2  ;;  %v2073_v58 = vsub.f32 %v6078_v55, %v6989_v21  ;;  %v2053_v21 = vand.u32 4294901760, %v2052_v36 }
 0x382   :  { %v2060_v8 = vand.u32 4294901760, %v2059_v34 }
 0x383   :  { %v2067_v11 = vand.u32 4294901760, %v2066_v16  ;;  %v2074_v45 = vand.u32 4294901760, %v2073_v58 }
 0x3d9   :  { %v1530_v0 = vpop.xlane.xlu0 %1529 }
 0x3da   :  { %v1531_v62 = vcvt.f32.s32 %v1530_v0 }
 0x3dc   :  { %v6113_v32 = vadd.s32 %v1533_v49, %v1531_v62  ;;  %v6990_v49 = vand.u32 4294901760, %v5740_v26 }
 0x3dd   :  { %v1544_v0 = vpop.xlane.xlu1 %1543  ;;  %v1558_v28 = vpop.xlane.xlu0 %1557 }
 0x3de   :  { %v6130_v62 = vsub.f32 %v5740_v26, %v6990_v49  ;;  %vm1745_vm3 = vcmp.eq.s32.totalorder %v5577_v20, %v6113_v32  ;;  %v1545_v24 = vcvt.f32.s32 %v1544_v0  ;;  %v1559_v60 = vcvt.f32.s32 %v1558_v28 }
 0x3df   :  { %v3185_v2 = vsel %vm1745_vm3, 1.0, %v6910_v59  ;;  %v6912_v49 = vand.u32 4294901760, %v6118_v27  ;;  %v6149_v0 = vshll.u32 %v1742_v25, 16  ;;  %v6165_v25 = vpack.c.bf16 %v2060_v8, %v2053_v21 }
 0x3e0   :  { %v6142_v13 = vsub.f32 %v3185_v2, %v3185_v2  ;;  %v6144_v26 = vadd.s32 %v1547_v41, %v1545_v24  ;;  %v6146_v44 = vadd.s32 %v1561_v39, %v1559_v60  ;;  %v6181_v8 = vpack.c.bf16 %v2074_v45, %v2067_v11 }
 0x3e1   :  { %v1572_v28 = vpop.xlane.xlu1 %1571  ;;  %v1586_v56 = vpop.xlane.xlu0 %1585  ;;  %v2080_v2 = vsub.f32 %v6118_v27, %v6912_v49  ;;  %v6991_v21 = vand.u32 4294901760, %v6130_v62 }
 0x3e2   :  { %vm1746_vm4 = vcmp.eq.s32.totalorder %v5577_v20, %v6144_v26  ;;  %vm1747_vm5 = vcmp.eq.s32.totalorder %v5577_v20, %v6146_v44  ;;  %v1573_v41 = vcvt.f32.s32 %v1572_v28  ;;  %v1587_v36 = vcvt.f32.s32 %v1586_v56 }
 0x3e3   :  { %v3186_v39 = vsel %vm1746_vm4, 1.0, %v6910_v59  ;;  %v3187_v16 = vsel %vm1747_vm5, 1.0, %v6910_v59  ;;  %v6913_v34 = vand.u32 4294901760, %v6142_v13 }
 0x3e4   :  { %v6167_v58 = vsub.f32 %v3186_v39, %v3186_v39  ;;  %v6169_v24 = vadd.s32 %v1575_v22, %v1573_v41  ;;  %v6171_v60 = vadd.s32 %v1589_v15, %v1587_v36  ;;  %v6176_v28 = vsub.f32 %v3187_v16, %v3187_v16 }
 0x3e5   :  { %v1600_v56 = vpop.xlane.xlu1 %1599  ;;  %v1614_v37 = vpop.xlane.xlu0 %1613  ;;  %v1877_v59 = vsub.f32 %v6142_v13, %v6913_v34  ;;  %v2087_v22 = vsub.f32 %v6130_v62, %v6991_v21  ;;  %v6992_v36 = vmov 0.0   ;;  %v2081_v34 = vand.u32 4294901760, %v2080_v2 }
 0x3e6   :  { %v6920_v15 = vand.u32 4294901760, %v6167_v58  ;;  %vm1748_vm6 = vcmp.eq.s32.totalorder %v5577_v20, %v6169_v24  ;;  %vm1749_vm7 = vcmp.eq.s32.totalorder %v5577_v20, %v6171_v60  ;;  %v1601_v41 = vcvt.f32.s32 %v1600_v56  ;;  %v4870_v60 = vld [vmem:[%s6856_s0 + $0x18] sm:$0xff] }
 0x3e7   :  { %v3188_v39 = vsel %vm1748_vm6, 1.0, %v6992_v36  ;;  %v3189_v45 = vsel %vm1749_vm7, 1.0, %v6992_v36  ;;  %v1615_v11 = vcvt.f32.s32 %v1614_v37  ;;  %v1878_v16 = vand.u32 4294901760, %v1877_v59 }
 0x3e8   :  { %v6199_v21 = vsub.f32 %v3188_v39, %v3188_v39  ;;  %v6202_v49 = vadd.s32 %v6085_v63, %v1601_v41  ;;  %v1887_v56 = vsub.f32 %v6167_v58, %v6920_v15  ;;  %v6207_v33 = vsub.f32 %v3189_v45, %v3189_v45 }
 0x3e9   :  { %v6210_v4 = vadd.s32 %v6089_v40, %v1615_v11  ;;  %4001 = vmatprep.mubr.f32.mxu1 %v1878_v16  ;;  %v1628_v6 = vpop.xlane.xlu1 %1627  ;;  %v1642_v48 = vpop.xlane.xlu0 %1641  ;;  %v6919_v37 = vand.u32 4294901760, %v6176_v28  ;;  %v2088_v59 = vand.u32 4294901760, %v2087_v22 }
 0x3ea   :  { %vm1750_vm8 = vcmp.eq.s32.totalorder %v5577_v20, %v6202_v49  ;;  %v1629_v63 = vcvt.f32.s32 %v1628_v6  ;;  %v1643_v41 = vcvt.f32.s32 %v1642_v48  ;;  %v1888_v39 = vand.u32 4294901760, %v1887_v56 }
 0x3eb   :  { %v3190_v2 = vsel %vm1750_vm8, 1.0, %v6992_v36  ;;  %vm1751_vm9 = vcmp.eq.s32.totalorder %v5577_v20, %v6210_v4  ;;  %v1897_v40 = vsub.f32 %v6176_v28, %v6919_v37  ;;  %v6923_v22 = vand.u32 4294901760, %v6199_v21  ;;  %v4868_v4 = vld [vmem:[%s6856_s0 + $0x8] sm:$0xff] }
 0x3ec   :  { %v6225_v45 = vsub.f32 %v3190_v2, %v3190_v2  ;;  %v3191_v6 = vsel %vm1751_vm9, 1.0, %v6992_v36  ;;  %v6232_v48 = vadd.s32 %v6091_v14, %v1629_v63  ;;  %v6235_v11 = vadd.s32 %v6095_v30, %v1643_v41  ;;  %4002 = vmatmul.mubr.f32.vlgmr.msra.gmra.mrb[16].mxu1 %v1888_v39 }
 0x3ed   :  { %v6237_v16 = vsub.f32 %v3191_v6, %v3191_v6  ;;  %4532 = vmatpush3.bf16.msra.mxu1 %v5949_v7  ;;  %v1656_v56 = vpop.xlane.xlu1 %1655  ;;  %v1898_v37 = vand.u32 4294901760, %v1897_v40  ;;  %v1670_v2 = vpop.xlane.xlu0 %1669  ;;  %v1907_v15 = vsub.f32 %v6199_v21, %v6923_v22  ;;  %v6931_v12 = vand.u32 4294901760, %v6207_v33 }
 0x3ee   :  { %vm1752_vm10 = vcmp.eq.s32.totalorder %v5577_v20, %v6232_v48  ;;  %vm1753_vm11 = vcmp.eq.s32.totalorder %v5577_v20, %v6235_v11  ;;  %v1657_v14 = vcvt.f32.s32 %v1656_v56  ;;  %v1671_v30 = vcvt.f32.s32 %v1670_v2  ;;  %4534 = vmatprep.subr.bf16.mxu1 %v6165_v25 }
 0x3ef   :  { %v3192_v7 = vsel %vm1752_vm10, 1.0, %v6992_v36  ;;  %v3193_v63 = vsel %vm1753_vm11, 1.0, %v6992_v36  ;;  %4004 = vmatprep.mubr.f32.mxu1 %v1898_v37  ;;  %v1908_v41 = vand.u32 4294901760, %v1907_v15  ;;  %v1917_v39 = vsub.f32 %v6207_v33, %v6931_v12 }
 0x3f0   :  { %v6260_v40 = vsub.f32 %v3192_v7, %v3192_v7  ;;  %v6263_v6 = vadd.s32 %v6097_v29, %v1657_v14  ;;  %v6266_v56 = vadd.s32 %v6100_v10, %v1671_v30  ;;  %v4541_v2 = vpack.c.bf16 %v2088_v59, %v2081_v34 }
 0x3f1   :  { %v6268_v22 = vsub.f32 %v3193_v63, %v3193_v63  ;;  %4005 = vmatmul.mubr.f32.gmra.mrb[18].mxu1 %v1908_v41  ;;  %v1684_v57 = vpop.xlane.xlu1 %1683  ;;  %v1918_v52 = vand.u32 4294901760, %v1917_v39  ;;  %v1698_v37 = vpop.xlane.xlu0 %1697  ;;  %v6930_v15 = vand.u32 4294901760, %v6225_v45  ;;  %v6932_v54 = vand.u32 4294901760, %v6237_v16 }
 0x3f2   :  { %6993 = vst [vmem:[#allocation20_spill] sm:$0xff] %v6260_v40  ;;  %vm1754_vm12 = vcmp.eq.s32.totalorder %v5577_v20, %v6263_v6  ;;  %vm1755_vm13 = vcmp.eq.s32.totalorder %v5577_v20, %v6266_v56  ;;  %4536 = vmatpush3.bf16.msra.mxu1 %v6165_v25  ;;  %v1685_v10 = vcvt.f32.s32 %v1684_v57  ;;  %v1699_v29 = vcvt.f32.s32 %v1698_v37  ;;  %v4871_v56 = vld [vmem:[%s6856_s0 + $0x10] sm:$0xff] }
 0x3f3   :  { %v3194_v34 = vsel %vm1754_vm12, 1.0, %v6992_v36  ;;  %v3195_v59 = vsel %vm1755_vm13, 1.0, %v6992_v36  ;;  %4007 = vmatprep.mubr.f32.mxu1 %v1918_v52  ;;  %4538 = vmatprep.subr.bf16.mxu1 %v6181_v8  ;;  %v1927_v14 = vsub.f32 %v6225_v45, %v6930_v15  ;;  %v1937_v57 = vsub.f32 %v6237_v16, %v6932_v54 }
 0x3f4   :  { %v6292_v25 = vsub.f32 %v3194_v34, %v3194_v34  ;;  %v6294_v30 = vsub.f32 %v3195_v59, %v3195_v59  ;;  %v6297_v7 = vadd.s32 %v6109_v5, %v1685_v10  ;;  %v6300_v63 = vadd.s32 %v6111_v17, %v1699_v29 }
 0x3f5   :  { %v1928_v52 = vand.u32 4294901760, %v1927_v14  ;;  %v1712_v41 = vpop.xlane.xlu1 %1711  ;;  %v1938_v39 = vand.u32 4294901760, %v1937_v57  ;;  %v1726_v37 = vpop.xlane.xlu0 %1725  ;;  %v6933_v15 = vand.u32 4294901760, %v6260_v40  ;;  %v1956_v12 = vand.u32 4294901760, %v6268_v22 }
 0x3f6   :  { %vm1756_vm14 = vcmp.eq.s32.totalorder %v5577_v20, %v6297_v7  ;;  %vm1757_vm15 = vcmp.eq.s32.totalorder %v5577_v20, %v6300_v63  ;;  %4540 = vmatpush3.bf16.msra.mxu1 %v6181_v8  ;;  %v1713_v5 = vcvt.f32.s32 %v1712_v41  ;;  %v1727_v10 = vcvt.f32.s32 %v1726_v37 }
 0x3f7   :  { %v3196_v17 = vsel %vm1756_vm14, 1.0, %v6992_v36  ;;  %v3197_v29 = vsel %vm1757_vm15, 1.0, %v6992_v36  ;;  %4008 = vmatmul.mubr.f32.gmra.mrb[20].mxu1 %v1928_v52  ;;  %4542 = vmatprep.subr.bf16.mxu1 %v4541_v2  ;;  %v1947_v34 = vsub.f32 %v6260_v40, %v6933_v15  ;;  %v1957_v8 = vsub.f32 %v6268_v22, %v1956_v12 }
 0x3f8   :  { %v6323_v59 = vsub.f32 %v3196_v17, %v3196_v17  ;;  %v6325_v14 = vsub.f32 %v3197_v29, %v3197_v29  ;;  %v6328_v57 = vadd.s32 %v6132_v46, %v1713_v5  ;;  %4010 = vmatprep.mubr.f32.mxu1 %v1938_v39  ;;  %v6331_v41 = vadd.s32 %v6136_v61, %v1727_v10 }
 0x3f9   :  { %v1948_v52 = vand.u32 4294901760, %v1947_v34  ;;  %v1740_v37 = vpop.xlane.xlu1 %1739  ;;  %v1958_v54 = vand.u32 4294901760, %v1957_v8  ;;  %v6936_v15 = vand.u32 4294901760, %v6292_v25  ;;  %v1976_v40 = vand.u32 4294901760, %v6294_v30 }
 0x3fa   :  { %vm1758_vm1 = vcmp.eq.s32.totalorder %v5577_v20, %v6328_v57  ;;  %vm1759_vm2 = vcmp.eq.s32.totalorder %v5577_v20, %v6331_v41  ;;  %4544 = vmatpush3.bf16.msra.mxu1 %v4541_v2  ;;  %v1741_v46 = vcvt.f32.s32 %v1740_v37  ;;  %v1986_v39 = vand.u32 4294901760, %v6323_v59  ;;  %v4872_v57 = vld [vmem:[%s6856_s0 + $0x28] sm:$0xff] }
 0x3fb   :  { %v3198_v61 = vsel %vm1758_vm1, 1.0, %v6992_v36  ;;  %v3199_v5 = vsel %vm1759_vm2, 1.0, %v6992_v36  ;;  %4011 = vmatmul.mubr.f32.gmra.mrb[22].mxu1 %v1948_v52  ;;  %4546 = vmatprep.subr.bf16.mxu1 %v5982_v1  ;;  %v1967_v2 = vsub.f32 %v6292_v25, %v6936_v15  ;;  %v1977_v10 = vsub.f32 %v6294_v30, %v1976_v40 }
 0x3fc   :  { %v6355_v17 = vsub.f32 %v3198_v61, %v3198_v61  ;;  %v6357_v29 = vsub.f32 %v3199_v5, %v3199_v5  ;;  %v6360_v34 = vadd.s32 %v6149_v0, %v1741_v46  ;;  %4013 = vmatprep.mubr.f32.mxu1 %v1958_v54  ;;  %v1987_v8 = vsub.f32 %v6323_v59, %v1986_v39 }
 0x3fd   :  { %v1968_v52 = vand.u32 4294901760, %v1967_v2  ;;  %v1978_v37 = vand.u32 4294901760, %v1977_v10  ;;  %v1996_v15 = vand.u32 4294901760, %v6325_v14 }
 0x3fe   :  { %vm1760_vm0 = vcmp.eq.s32.totalorder %v5577_v20, %v6360_v34  ;;  %4548 = vmatpush3.bf16.msra.mxu1 %v5982_v1  ;;  %v2006_v61 = vand.u32 4294901760, %v6355_v17  ;;  %v2016_v5 = vand.u32 4294901760, %v6357_v29  ;;  %v1988_v0 = vand.u32 4294901760, %v1987_v8  ;;  %v4869_v20 = vld [vmem:[%s6856_s0] sm:$0xff] }
 0x3ff   :  { %v3200_v54 = vsel %vm1760_vm0, 1.0, %v6992_v36  ;;  %4014 = vmatmul.mubr.f32.gmra.mrb[24].mxu1 %v1968_v52  ;;  %4550 = vmatprep.subr.bf16.mxu1 %v6002_v19  ;;  %v1997_v46 = vsub.f32 %v6325_v14, %v1996_v15 }
 0x400   :  { %v6379_v2 = vsub.f32 %v3200_v54, %v3200_v54  ;;  %4016 = vmatprep.mubr.f32.mxu1 %v1978_v37  ;;  %v2007_v1 = vsub.f32 %v6355_v17, %v2006_v61  ;;  %v2017_v10 = vsub.f32 %v6357_v29, %v2016_v5 }
 0x401   :  { %v1998_v36 = vand.u32 4294901760, %v1997_v46 }
 0x402   :  { %4552 = vmatpush3.bf16.msra.mxu1 %v6002_v19  ;;  %v2026_v8 = vand.u32 4294901760, %v6379_v2  ;;  %v2008_v52 = vand.u32 4294901760, %v2007_v1  ;;  %v2018_v54 = vand.u32 4294901760, %v2017_v10  ;;  %v6938_v19 = vmov 1.0   ;;  %v6999_v1 = vld [vmem:[#allocation11_spill] sm:$0xff]  ;;  %v7000_v10 = vld [vmem:[#allocation5_spill] sm:$0xff] }
 0x403   :  { %4017 = vmatmul.mubr.f32.gmra.mrb[26].mxu1 %v1988_v0  ;;  %4554 = vmatprep.subr.bf16.mxu1 %v6028_v35  ;;  %v4565_v0 = vpack.c.bf16 %v6064_v38, %v6059_v42 }
 0x404   :  { %4019 = vmatprep.mubr.f32.mxu1 %v1998_v36  ;;  %v2027_v37 = vsub.f32 %v6379_v2, %v2026_v8  ;;  %v7001_v36 = vand.u32 4294901760, %v7000_v10  ;;  %v7008_v10 = vand.u32 4294901760, %v6176_v28 }
 0x406   :  { %4556 = vmatpush3.bf16.msra.mxu1 %v6028_v35  ;;  %v2028_v46 = vand.u32 4294901760, %v2027_v37  ;;  %v4573_v35 = vpack.c.bf16 %v6130_v62, %v6118_v27 }
 0x407   :  { %4020 = vmatmul.mubr.f32.gmra.mrb[28].mxu1 %v2008_v52  ;;  %4558 = vmatprep.subr.bf16.mxu1 %v6030_v23  ;;  %v7002_v52 = vld [vmem:[#allocation6_spill] sm:$0xff] }
 0x408   :  { %4022 = vmatprep.mubr.f32.mxu1 %v2018_v54  ;;  %v7003_v54 = vand.u32 4294901760, %v7002_v52  ;;  %v7010_v52 = vand.u32 4294901760, %v6078_v55 }
 0x40a   :  { %4560 = vmatpush3.bf16.msra.mxu1 %v6030_v23  ;;  %v4569_v23 = vpack.c.bf16 %v6078_v55, %v6073_v47  ;;  %v4625_v37 = vpack.c.bf16 %v7003_v54, %v7001_v36  ;;  %v7009_v36 = vand.u32 4294901760, %v6073_v47  ;;  %v7011_v54 = vand.u32 4294901760, %v6199_v21  ;;  %v7017_v55 = vld [vmem:[#allocation12_spill] sm:$0xff] }
 0x40b   :  { %4023 = vmatmul.mubr.f32.gmra.mrb[30].mxu1 %v2028_v46  ;;  %4562 = vmatprep.subr.bf16.mxu1 %v6034_v53  ;;  %v7004_v46 = vand.u32 4294901760, %v6142_v13  ;;  %v7016_v47 = vand.u32 4294901760, %v6237_v16 }
 0x40c   :  { %4057 = vmatprep.mubr.msk.f32.mxu1 %vm1745_vm3, %v6938_v19 }
 0x40f   :  { %4058 = vmatmul.mubr.msk.f32.vlgmr.msra.gmra.mrb[16].mxu1 %vm1746_vm4, %v6938_v19 }
 0x410   :  { %4564 = vmatpush3.bf16.msra.mxu1 %v6034_v53  ;;  %4060 = vmatprep.mubr.msk.f32.mxu1 %vm1747_vm5, %v6938_v19  ;;  %v6995_v53 = vld [vmem:[#allocation20_spill] sm:$0xff] }
 0x411   :  { %4566 = vmatprep.subr.bf16.mxu1 %v4565_v0 }
 0x413   :  { %4061 = vmatmul.mubr.msk.f32.gmra.mrb[18].mxu1 %vm1748_vm6, %v6938_v19 }
 0x414   :  { %4568 = vmatpush3.bf16.msra.mxu1 %v4565_v0  ;;  %4063 = vmatprep.mubr.msk.f32.mxu1 %vm1749_vm7, %v6938_v19  ;;  %v7005_v0 = vand.u32 4294901760, %v6059_v42  ;;  %v7013_v42 = vand.u32 4294901760, %v6118_v27  ;;  %v7022_v27 = vld [vmem:[#allocation14_spill] sm:$0xff] }
 0x415   :  { %4570 = vmatprep.subr.bf16.mxu1 %v4569_v23 }
 0x417   :  { %4064 = vmatmul.mubr.msk.f32.gmra.mrb[20].mxu1 %vm1750_vm8, %v6938_v19 }
 0x418   :  { %4572 = vmatpush3.bf16.msra.mxu1 %v4569_v23  ;;  %4066 = vmatprep.mubr.msk.f32.mxu1 %vm1751_vm9, %v6938_v19  ;;  %v7006_v23 = vand.u32 4294901760, %v6064_v38  ;;  %v7012_v38 = vand.u32 4294901760, %v6207_v33 }
 0x419   :  { %4574 = vmatprep.subr.bf16.mxu1 %v4573_v35 }
 0x41b   :  { %4067 = vmatmul.mubr.msk.f32.gmra.mrb[22].mxu1 %vm1752_vm10, %v6938_v19 }
 0x41c   :  { %4576 = vmatpush3.bf16.msra.mxu1 %v4573_v35  ;;  %4069 = vmatprep.mubr.msk.f32.mxu1 %vm1753_vm11, %v6938_v19  ;;  %v4629_v35 = vpack.c.bf16 %v7006_v23, %v7005_v0  ;;  %v7021_v0 = vand.u32 4294901760, %v6995_v53 }
 0x41d   :  { %4578 = vmatprep.subr.bf16.mxu1 %v6038_v3 }
 0x41f   :  { %4070 = vmatmul.mubr.msk.f32.gmra.mrb[24].mxu1 %vm1754_vm12, %v6938_v19 }
 0x420   :  { %4580 = vmatpush3.bf16.msra.mxu1 %v6038_v3  ;;  %4072 = vmatprep.mubr.msk.f32.mxu1 %vm1755_vm13, %v6938_v19  ;;  %v6996_v3 = vld [vmem:[#allocation10_spill] sm:$0xff] }
 0x421   :  { %4582 = vmatprep.subr.bf16.mxu1 %v6042_v31 }
 0x423   :  { %4073 = vmatmul.mubr.msk.f32.gmra.mrb[26].mxu1 %vm1756_vm14, %v6938_v19 }
 0x424   :  { %4584 = vmatpush3.bf16.msra.mxu1 %v6042_v31  ;;  %4075 = vmatprep.mubr.msk.f32.mxu1 %vm1757_vm15, %v6938_v19  ;;  %v6994_v31 = vld [vmem:[#allocation7_spill] sm:$0xff] }
 0x425   :  { %4586 = vmatprep.subr.bf16.mxu1 %v6046_v9 }
 0x427   :  { %4076 = vmatmul.mubr.msk.f32.gmra.mrb[28].mxu1 %vm1758_vm1, %v6938_v19 }
 0x428   :  { %4588 = vmatpush3.bf16.msra.mxu1 %v6046_v9  ;;  %4078 = vmatprep.mubr.msk.f32.mxu1 %vm1759_vm2, %v6938_v19  ;;  %v6997_v9 = vld [vmem:[#allocation8_spill] sm:$0xff] }
 0x429   :  { %4590 = vmatprep.subr.bf16.mxu1 %v6050_v43 }
 0x42b   :  { %4079 = vmatmul.mubr.msk.f32.gmra.mrb[30].mxu1 %vm1760_vm0, %v6938_v19  ;;  %v7007_v19 = vand.u32 4294901760, %v6167_v58 }
 0x42c   :  { %4592 = vmatpush3.bf16.msra.mxu1 %v6050_v43  ;;  %4113 = vmatprep.mubr.f32.mxu1 %v6142_v13  ;;  %v6998_v43 = vld [vmem:[#allocation9_spill] sm:$0xff]  ;;  %v4633_v13 = vpack.c.bf16 %v7010_v52, %v7009_v36 }
 0x42d   :  { %4594 = vmatprep.subr.bf16.mxu1 %v5181_v51  ;;  %v7029_v36 = vld [vmem:[#allocation17_spill] sm:$0xff] }
 0x42e   :  { %v7030_v52 = vand.u32 4294901760, %v7029_v36 }
 0x42f   :  { %4114 = vmatmul.mubr.f32.vlgmr.msra.gmra.mrb[16].mxu1 %v6167_v58  ;;  %v7014_v58 = vand.u32 4294901760, %v6130_v62  ;;  %v7023_v62 = vand.u32 4294901760, %v7022_v27 }
 0x430   :  { %4596 = vmatpush3.bf16.msra.mxu1 %v5181_v51  ;;  %4116 = vmatprep.mubr.f32.mxu1 %v6176_v28 }
 0x431   :  { %4598 = vmatprep.subr.bf16.mxu1 %v5747_v50  ;;  %v4637_v28 = vpack.c.bf16 %v7014_v58, %v7013_v42  ;;  %v4875_v42 = vld [vmem:[%s6856_s0 + $0x30] sm:$0xff] }
 0x433   :  { %4117 = vmatmul.mubr.f32.gmra.mrb[18].mxu1 %v6199_v21  ;;  %v7018_v21 = vand.u32 4294901760, %v7017_v55 }
 0x434   :  { %4600 = vmatpush3.bf16.msra.mxu1 %v5747_v50  ;;  %4119 = vmatprep.mubr.f32.mxu1 %v6207_v33 }
 0x435   :  { %4602 = vmatprep.subr.bf16.mxu1 %v5753_v18 }
 0x437   :  { %4120 = vmatmul.mubr.f32.gmra.mrb[20].mxu1 %v6225_v45 }
 0x438   :  { %4604 = vmatpush3.bf16.msra.mxu1 %v5753_v18  ;;  %4122 = vmatprep.mubr.f32.mxu1 %v6237_v16 }
 0x439   :  { %4606 = vmatprep.subr.bf16.mxu1 %v6994_v31 }
 0x43b   :  { %4123 = vmatmul.mubr.f32.gmra.mrb[22].mxu1 %v6995_v53  ;;  %v7027_v53 = vld [vmem:[#allocation16_spill] sm:$0xff] }
 0x43c   :  { %4608 = vmatpush3.bf16.msra.mxu1 %v6994_v31  ;;  %4125 = vmatprep.mubr.f32.mxu1 %v6268_v22 }
 0x43d   :  { %4610 = vmatprep.subr.bf16.mxu1 %v6996_v3 }
 0x43f   :  { %4126 = vmatmul.mubr.f32.gmra.mrb[24].mxu1 %v6292_v25 }
 0x440   :  { %4612 = vmatpush3.bf16.msra.mxu1 %v6996_v3  ;;  %4128 = vmatprep.mubr.f32.mxu1 %v6294_v30 }
 0x441   :  { %4614 = vmatprep.subr.bf16.mxu1 %v6997_v9 }
 0x443   :  { %4129 = vmatmul.mubr.f32.gmra.mrb[26].mxu1 %v6323_v59 }
 0x444   :  { %4616 = vmatpush3.bf16.msra.mxu1 %v6997_v9  ;;  %4131 = vmatprep.mubr.f32.mxu1 %v6325_v14 }
 0x445   :  { %4618 = vmatprep.subr.bf16.mxu1 %v6998_v43 }
 0x447   :  { %4132 = vmatmul.mubr.f32.gmra.mrb[28].mxu1 %v6355_v17 }
 0x448   :  { %4620 = vmatpush3.bf16.msra.mxu1 %v6998_v43  ;;  %4134 = vmatprep.mubr.f32.mxu1 %v6357_v29  ;;  %v4873_v29 = vld [vmem:[%s6856_s0 + $0x20] sm:$0xff] }
 0x449   :  { %4622 = vmatprep.subr.bf16.mxu1 %v6999_v1 }
 0x44b   :  { %4135 = vmatmul.mubr.f32.gmra.mrb[30].mxu1 %v6379_v2 }
 0x44c   :  { %4624 = vmatpush3.bf16.msra.mxu1 %v6999_v1  ;;  %4169 = vmatprep.mubr.f32.mxu1 %v7004_v46 }
 0x44d   :  { %4626 = vmatprep.subr.bf16.mxu1 %v4625_v37 }
 0x44f   :  { %4170 = vmatmul.mubr.f32.vlgmr.msra.gmra.mrb[16].mxu1 %v7007_v19  ;;  %v7015_v19 = vand.u32 4294901760, %v6225_v45  ;;  %v7024_v45 = vld [vmem:[#allocation15_spill] sm:$0xff] }
 0x450   :  { %4628 = vmatpush3.bf16.msra.mxu1 %v4625_v37  ;;  %4172 = vmatprep.mubr.f32.mxu1 %v7008_v10  ;;  %v7019_v37 = vld [vmem:[#allocation13_spill] sm:$0xff]  ;;  %v7025_v23 = vand.u32 4294901760, %v7024_v45  ;;  %v7028_v10 = vand.u32 4294901760, %v7027_v53 }
 0x451   :  { %4630 = vmatprep.subr.bf16.mxu1 %v4629_v35  ;;  %v7020_v46 = vand.u32 4294901760, %v7019_v37 }
 0x452   :  { %v4645_v16 = vpack.c.bf16 %v7025_v23, %v7023_v62  ;;  %v4649_v22 = vpack.c.bf16 %v7030_v52, %v7028_v10  ;;  %v4877_v62 = vld [vmem:[%s6856_s0 + $0x40] sm:$0xff]  ;;  %v4878_v52 = vld [vmem:[%s6856_s0 + $0x58] sm:$0xff] }
 0x453   :  { %4173 = vmatmul.mubr.f32.gmra.mrb[18].mxu1 %v7011_v54  ;;  %v4641_v33 = vpack.c.bf16 %v7020_v46, %v7018_v21  ;;  %v4876_v46 = vld [vmem:[%s6856_s0 + $0x48] sm:$0xff] }
 0x454   :  { %4632 = vmatpush3.bf16.msra.mxu1 %v4629_v35  ;;  %4175 = vmatprep.mubr.f32.mxu1 %v7012_v38  ;;  %v7026_v35 = vand.u32 4294901760, %v6292_v25 }
 0x455   :  { %4634 = vmatprep.subr.bf16.mxu1 %v4633_v13 }
 0x457   :  { %4176 = vmatmul.mubr.f32.gmra.mrb[20].mxu1 %v7015_v19 }
 0x458   :  { %4636 = vmatpush3.bf16.msra.mxu1 %v4633_v13  ;;  %4178 = vmatprep.mubr.f32.mxu1 %v7016_v47  ;;  %v7033_v13 = vld [vmem:[#allocation19_spill] sm:$0xff] }
 0x459   :  { %4638 = vmatprep.subr.bf16.mxu1 %v4637_v28  ;;  %v7034_v54 = vand.u32 4294901760, %v7033_v13  ;;  %v4879_v13 = vld [vmem:[%s6856_s0 + $0x50] sm:$0xff] }
 0x45b   :  { %4179 = vmatmul.mubr.f32.gmra.mrb[22].mxu1 %v7021_v0 }
 0x45c   :  { %4640 = vmatpush3.bf16.msra.mxu1 %v4637_v28  ;;  %4181 = vmatprep.mubr.f32.mxu1 %v1956_v12  ;;  %v7031_v12 = vld [vmem:[#allocation18_spill] sm:$0xff] }
 0x45d   :  { %4642 = vmatprep.subr.bf16.mxu1 %v4641_v33  ;;  %v7032_v25 = vand.u32 4294901760, %v7031_v12 }
 0x45f   :  { %4182 = vmatmul.mubr.f32.gmra.mrb[24].mxu1 %v7026_v35  ;;  %v4653_v30 = vpack.c.bf16 %v7034_v54, %v7032_v25 }
 0x460   :  { %4644 = vmatpush3.bf16.msra.mxu1 %v4641_v33  ;;  %4184 = vmatprep.mubr.f32.mxu1 %v1976_v40  ;;  %v7035_v40 = vmov 1.0  }
 0x461   :  { %4646 = vmatprep.subr.bf16.mxu1 %v4645_v16 }
 0x463   :  { %4185 = vmatmul.mubr.f32.gmra.mrb[26].mxu1 %v1986_v39 }
 0x464   :  { %4648 = vmatpush3.bf16.msra.mxu1 %v4645_v16  ;;  %4187 = vmatprep.mubr.f32.mxu1 %v1996_v15 }
 0x465   :  { %4650 = vmatprep.subr.bf16.mxu1 %v4649_v22 }
 0x467   :  { %4188 = vmatmul.mubr.f32.gmra.mrb[28].mxu1 %v2006_v61 }
 0x468   :  { %4652 = vmatpush3.bf16.msra.mxu1 %v4649_v22  ;;  %4190 = vmatprep.mubr.f32.mxu1 %v2016_v5 }
 0x469   :  { %4654 = vmatprep.subr.bf16.mxu1 %v4653_v30 }
 0x46b   :  { %4191 = vmatmul.mubr.f32.gmra.mrb[30].mxu1 %v2026_v8 }
 0x46c   :  { %4656 = vmatpush3.bf16.msra.mxu1 %v4653_v30  ;;  %4225 = vmatprep.mubr.msk.f32.mxu1 %vm1745_vm3, %v7035_v40 }
 0x46d   :  { %4658 = vmatprep.subr.bf16.mxu1 %v5181_v51 }
 0x46f   :  { %4226 = vmatmul.mubr.msk.f32.vlgmr.msra.gmra.mrb[16].mxu1 %vm1746_vm4, %v7035_v40 }
 0x470   :  { %4660 = vmatpush3.bf16.msra.mxu1 %v5181_v51  ;;  %4228 = vmatprep.mubr.msk.f32.mxu1 %vm1747_vm5, %v7035_v40 }
 0x471   :  { %4662 = vmatprep.subr.bf16.mxu1 %v5747_v50 }
 0x473   :  { %4229 = vmatmul.mubr.msk.f32.gmra.mrb[18].mxu1 %vm1748_vm6, %v7035_v40 }
 0x474   :  { %4664 = vmatpush3.bf16.msra.mxu1 %v5747_v50  ;;  %4231 = vmatprep.mubr.msk.f32.mxu1 %vm1749_vm7, %v7035_v40 }
 0x475   :  { %4666 = vmatprep.subr.bf16.mxu1 %v5753_v18 }
 0x477   :  { %4232 = vmatmul.mubr.msk.f32.gmra.mrb[20].mxu1 %vm1750_vm8, %v7035_v40 }
 0x478   :  { %4668 = vmatpush3.bf16.msra.mxu1 %v5753_v18  ;;  %4234 = vmatprep.mubr.msk.f32.mxu1 %vm1751_vm9, %v7035_v40 }
 0x479   :  { %4670 = vmatprep.subr.bf16.mxu1 %v6994_v31 }
 0x47b   :  { %4235 = vmatmul.mubr.msk.f32.gmra.mrb[22].mxu1 %vm1752_vm10, %v7035_v40 }
 0x47c   :  { %4672 = vmatpush3.bf16.msra.mxu1 %v6994_v31  ;;  %4237 = vmatprep.mubr.msk.f32.mxu1 %vm1753_vm11, %v7035_v40 }
 0x47d   :  { %4674 = vmatprep.subr.bf16.mxu1 %v6996_v3 }
 0x47f   :  { %4238 = vmatmul.mubr.msk.f32.gmra.mrb[24].mxu1 %vm1754_vm12, %v7035_v40 }
 0x480   :  { %4676 = vmatpush3.bf16.msra.mxu1 %v6996_v3  ;;  %4240 = vmatprep.mubr.msk.f32.mxu1 %vm1755_vm13, %v7035_v40 }
 0x481   :  { %4678 = vmatprep.subr.bf16.mxu1 %v6997_v9 }
 0x483   :  { %4241 = vmatmul.mubr.msk.f32.gmra.mrb[26].mxu1 %vm1756_vm14, %v7035_v40 }
 0x484   :  { %4680 = vmatpush3.bf16.msra.mxu1 %v6997_v9  ;;  %4243 = vmatprep.mubr.msk.f32.mxu1 %vm1757_vm15, %v7035_v40  ;;  %v4874_v9 = vld [vmem:[%s6856_s0 + $0x38] sm:$0xff] }
 0x485   :  { %4682 = vmatprep.subr.bf16.mxu1 %v6998_v43 }
 0x487   :  { %4244 = vmatmul.mubr.msk.f32.gmra.mrb[28].mxu1 %vm1758_vm1, %v7035_v40 }
 0x488   :  { %4684 = vmatpush3.bf16.msra.mxu1 %v6998_v43  ;;  %4246 = vmatprep.mubr.msk.f32.mxu1 %vm1759_vm2, %v7035_v40 }
 0x489   :  { %4686 = vmatprep.subr.bf16.mxu1 %v6999_v1 }
 0x48b   :  { %4247 = vmatmul.mubr.msk.f32.gmra.mrb[30].mxu1 %vm1760_vm0, %v7035_v40 }
 0x48c   :  { %4688 = vmatpush3.bf16.msra.mxu1 %v6999_v1  ;;  %4281 = vmatprep.mubr.msk.f32.mxu1 %vm1745_vm3, %v7035_v40  ;;  %vm7036_vm3 = vcmask 261120  }
 0x48f   :  { %4282 = vmatmul.mubr.msk.f32.vlgmr.msra.gmra.mrb[16].mxu1 %vm1746_vm4, %v7035_v40  ;;  %vm7037_vm4 = vmmov %vm7036_vm3 }
 0x490   :  { %4284 = vmatprep.mubr.msk.f32.mxu1 %vm1747_vm5, %v7035_v40 }
 0x493   :  { %4285 = vmatmul.mubr.msk.f32.gmra.mrb[18].mxu1 %vm1748_vm6, %v7035_v40 }
 0x494   :  { %4287 = vmatprep.mubr.msk.f32.mxu1 %vm1749_vm7, %v7035_v40 }
 0x497   :  { %4288 = vmatmul.mubr.msk.f32.gmra.mrb[20].mxu1 %vm1750_vm8, %v7035_v40 }
 0x498   :  { %4290 = vmatprep.mubr.msk.f32.mxu1 %vm1751_vm9, %v7035_v40 }
 0x49b   :  { %4291 = vmatmul.mubr.msk.f32.gmra.mrb[22].mxu1 %vm1752_vm10, %v7035_v40 }
 0x49c   :  { %4293 = vmatprep.mubr.msk.f32.mxu1 %vm1753_vm11, %v7035_v40 }
 0x49f   :  { %4294 = vmatmul.mubr.msk.f32.gmra.mrb[24].mxu1 %vm1754_vm12, %v7035_v40 }
 0x4a0   :  { %4296 = vmatprep.mubr.msk.f32.mxu1 %vm1755_vm13, %v7035_v40 }
 0x4a3   :  { %4297 = vmatmul.mubr.msk.f32.gmra.mrb[26].mxu1 %vm1756_vm14, %v7035_v40 }
 0x4a4   :  { %4299 = vmatprep.mubr.msk.f32.mxu1 %vm1757_vm15, %v7035_v40 }
 0x4a7   :  { %4300 = vmatmul.mubr.msk.f32.gmra.mrb[28].mxu1 %vm1758_vm1, %v7035_v40 }
 0x4a8   :  { %4302 = vmatprep.mubr.msk.f32.mxu1 %vm1759_vm2, %v7035_v40 }
 0x4ab   :  { %4303 = vmatmul.mubr.msk.f32.gmra.mrb[30].mxu1 %vm1760_vm0, %v7035_v40  ;;  %vm7038_vm0 = vmmov %vm7036_vm3 }
 0x4ac   :  { %vm7039_vm5 = vmmov %vm7038_vm0 }
 0x4ad   :  { %vm7040_vm6 = vmmov %vm7038_vm0 }
 0x4ae   :  { %vm7041_vm7 = vmmov %vm7038_vm0 }
 0x4af   :  { %vm7042_vm8 = vmmov %vm7038_vm0 }
 0x4b0   :  { %vm7043_vm9 = vmmov %vm7038_vm0 }
 0x4b1   :  { %vm7044_vm10 = vmmov %vm7038_vm0 }
 0x4b2   :  { %vm7045_vm11 = vmmov %vm7038_vm0 }
 0x4b3   :  { %vm7046_vm12 = vmmov %vm7038_vm0 }
 0x4b4   :  { %vm7047_vm13 = vmmov %vm7038_vm0 }
 0x4b5   :  { %vm7048_vm14 = vmmov %vm7038_vm0 }
 0x4b6   :  { %vm7049_vm15 = vmmov %vm7038_vm0 }
 0x4b7   :  { %vm7050_vm1 = vmmov %vm7038_vm0 }
 0x4b8   :  { %vm7051_vm2 = vmmov %vm7038_vm0 }
 0x562   :  { %v4283_v51 = vpop.f32.mrb[16].mxu1 }
 0x563   :  { %3080 = vst.msk [vmem:[%s6859_s3 + $0x8] sm:$0xff] %vm7036_vm3, %v4283_v51  ;;  %v3096_v50 = vsub.f32 %v4283_v51, %v4868_v4  ;;  %v2985_v18 = vpop.f32.mrb[17].mxu1  ;;  %vm7052_vm3 = vmmov %vm7038_vm0 }
 0x564   :  { %3079 = vst.msk [vmem:[%s6859_s3] sm:$0xff] %vm7037_vm4, %v2985_v18  ;;  %v3095_v32 = vsub.f32 %v2985_v18, %v4869_v20  ;;  %vm7053_vm4 = vmmov %vm7038_vm0  ;;  %v4880_v20 = vld [vmem:[%s6856_s0 + $0x68] sm:$0xff] }
 0x565   :  { %v3112_v26 = vmul.f32 %v3096_v50, %v3096_v50 }
 0x566   :  { %v3111_v44 = vmul.f32 %v3095_v32, %v3095_v32  ;;  %v4286_v49 = vpop.f32.mrb[18].mxu1 }
 0x567   :  { %v3128_v24 = vsel %vm7038_vm0, %v3112_v26, 0.0  ;;  %3082 = vst.msk [vmem:[%s6859_s3 + $0x18] sm:$0xff] %vm7039_vm5, %v4286_v49  ;;  %v3098_v48 = vsub.f32 %v4286_v49, %v4870_v60  ;;  %v2997_v11 = vpop.f32.mrb[19].mxu1  ;;  %vm7054_vm5 = vmmov %vm7038_vm0  ;;  %v4881_v49 = vld [vmem:[%s6856_s0 + $0x60] sm:$0xff] }
 0x568   :  { %v3127_v6 = vsel %vm7040_vm6, %v3111_v44, 0.0  ;;  %3081 = vst.msk [vmem:[%s6859_s3 + $0x10] sm:$0xff] %vm7041_vm7, %v2997_v11  ;;  %v3097_v15 = vsub.f32 %v2997_v11, %v4871_v56  ;;  %vm7055_vm6 = vmmov %vm7038_vm0 }
 0x569   :  { %v3129_v7 = vadd.f32 %v3128_v24, %v3127_v6  ;;  %v3114_v63 = vmul.f32 %v3098_v48, %v3098_v48  ;;  %vm7056_vm7 = vmmov %vm7038_vm0 }
 0x56a   :  { %v3113_v59 = vmul.f32 %v3097_v15, %v3097_v15  ;;  %v4289_v14 = vpop.f32.mrb[20].mxu1 }
 0x56b   :  { %3084 = vst.msk [vmem:[%s6859_s3 + $0x28] sm:$0xff] %vm7042_vm8, %v4289_v14  ;;  %v3100_v41 = vsub.f32 %v4289_v14, %v4872_v57  ;;  %v3009_v39 = vpop.f32.mrb[21].mxu1  ;;  %v3132_v5 = vsel %vm7045_vm11, %v3114_v63, 0.0  ;;  %vm7057_vm8 = vmmov %vm7038_vm0  ;;  %v4883_v57 = vld [vmem:[%s6856_s0 + $0x70] sm:$0xff] }
 0x56c   :  { %v3130_v17 = vsel %vm7043_vm9, %v3113_v59, 0.0  ;;  %3083 = vst.msk [vmem:[%s6859_s3 + $0x20] sm:$0xff] %vm7044_vm10, %v3009_v39  ;;  %v3099_v34 = vsub.f32 %v3009_v39, %v4873_v29  ;;  %vm7058_vm9 = vmmov %vm7038_vm0 }
 0x56d   :  { %v3131_v61 = vadd.f32 %v3130_v17, %v3129_v7  ;;  %v3116_v2 = vmul.f32 %v3100_v41, %v3100_v41  ;;  %vm7059_vm10 = vmmov %vm7038_vm0  ;;  %v4882_v7 = vld [vmem:[%s6856_s0 + $0x78] sm:$0xff] }
 0x56e   :  { %v3115_v8 = vmul.f32 %v3099_v34, %v3099_v34  ;;  %v4292_v31 = vpop.f32.mrb[22].mxu1  ;;  %vm7060_vm11 = vmmov %vm7038_vm0 }
 0x56f   :  { %v3133_v3 = vadd.f32 %v3132_v5, %v3131_v61  ;;  %3086 = vst.msk [vmem:[%s6859_s3 + $0x38] sm:$0xff] %vm7046_vm12, %v4292_v31  ;;  %v3102_v43 = vsub.f32 %v4292_v31, %v4874_v9  ;;  %v3021_v1 = vpop.f32.mrb[23].mxu1  ;;  %v3136_v19 = vsel %vm7049_vm15, %v3116_v2, 0.0  ;;  %vm7061_vm12 = vmmov %vm7038_vm0 }
 0x570   :  { %v3134_v38 = vsel %vm7047_vm13, %v3115_v8, 0.0  ;;  %3085 = vst.msk [vmem:[%s6859_s3 + $0x30] sm:$0xff] %vm7048_vm14, %v3021_v1  ;;  %v3101_v58 = vsub.f32 %v3021_v1, %v4875_v42  ;;  %vm7062_vm13 = vmmov %vm7038_vm0 }
 0x571   :  { %v3135_v28 = vadd.f32 %v3134_v38, %v3133_v3  ;;  %v3118_v47 = vmul.f32 %v3102_v43, %v3102_v43  ;;  %vm7063_vm14 = vmmov %vm7038_vm0 }
 0x572   :  { %v3117_v55 = vmul.f32 %v3101_v58, %v3101_v58  ;;  %v4295_v21 = vpop.f32.mrb[24].mxu1  ;;  %vm7064_vm15 = vmmov %vm7038_vm0 }
 0x573   :  { %v3137_v37 = vadd.f32 %v3136_v19, %v3135_v28  ;;  %3088 = vst.msk [vmem:[%s6859_s3 + $0x48] sm:$0xff] %vm7050_vm1, %v4295_v21  ;;  %v3104_v33 = vsub.f32 %v4295_v21, %v4876_v46  ;;  %v3033_v0 = vpop.f32.mrb[25].mxu1  ;;  %v3140_v16 = vsel %vm7053_vm4, %v3118_v47, 0.0  ;;  %vm7065_vm1 = vmmov %vm7038_vm0 }
 0x574   :  { %v3138_v27 = vsel %vm7051_vm2, %v3117_v55, 0.0  ;;  %3087 = vst.msk [vmem:[%s6859_s3 + $0x40] sm:$0xff] %vm7052_vm3, %v3033_v0  ;;  %v3103_v45 = vsub.f32 %v3033_v0, %v4877_v62  ;;  %vm7066_vm2 = vmmov %vm7038_vm0  ;;  %vm3164_vm3 = vcmask 253952  }
 0x575   :  { %v3139_v23 = vadd.f32 %v3138_v27, %v3137_v37  ;;  %v3120_v35 = vmul.f32 %v3104_v33, %v3104_v33 }
 0x576   :  { %v3119_v53 = vmul.f32 %v3103_v45, %v3103_v45  ;;  %v4298_v10 = vpop.f32.mrb[26].mxu1 }
 0x577   :  { %v3141_v36 = vadd.f32 %v3140_v16, %v3139_v23  ;;  %3090 = vst.msk [vmem:[%s6859_s3 + $0x58] sm:$0xff] %vm7038_vm0, %v4298_v10  ;;  %v3106_v22 = vsub.f32 %v4298_v10, %v4878_v52  ;;  %v3045_v12 = vpop.f32.mrb[27].mxu1  ;;  %v3144_v40 = vsel %vm7056_vm7, %v3120_v35, 0.0 }
 0x578   :  { %v3142_v25 = vsel %vm7054_vm5, %v3119_v53, 0.0  ;;  %3089 = vst.msk [vmem:[%s6859_s3 + $0x50] sm:$0xff] %vm7055_vm6, %v3045_v12  ;;  %v3105_v54 = vsub.f32 %v3045_v12, %v4879_v13 }
 0x579   :  { %v3143_v30 = vadd.f32 %v3142_v25, %v3141_v36  ;;  %v3122_v51 = vmul.f32 %v3106_v22, %v3106_v22 }
 0x57a   :  { %v3121_v4 = vmul.f32 %v3105_v54, %v3105_v54  ;;  %v4301_v50 = vpop.f32.mrb[28].mxu1 }
 0x57b   :  { %v3145_v18 = vadd.f32 %v3144_v40, %v3143_v30  ;;  %3092 = vst.msk [vmem:[%s6859_s3 + $0x68] sm:$0xff] %vm7057_vm8, %v4301_v50  ;;  %v3108_v32 = vsub.f32 %v4301_v50, %v4880_v20  ;;  %v3057_v26 = vpop.f32.mrb[29].mxu1  ;;  %v3148_v48 = vsel %vm7060_vm11, %v3122_v51, 0.0 }
 0x57c   :  { %v3146_v44 = vsel %vm7058_vm9, %v3121_v4, 0.0  ;;  %3091 = vst.msk [vmem:[%s6859_s3 + $0x60] sm:$0xff] %vm7059_vm10, %v3057_v26  ;;  %v3107_v24 = vsub.f32 %v3057_v26, %v4881_v49 }
 0x57d   :  { %v3147_v60 = vadd.f32 %v3146_v44, %v3145_v18  ;;  %v3124_v11 = vmul.f32 %v3108_v32, %v3108_v32 }
 0x57e   :  { %v3123_v6 = vmul.f32 %v3107_v24, %v3107_v24  ;;  %v4304_v56 = vpop.f32.mrb[30].mxu1 }
 0x57f   :  { %v3149_v15 = vadd.f32 %v3148_v48, %v3147_v60  ;;  %3094 = vst.msk [vmem:[%s6859_s3 + $0x78] sm:$0xff] %vm7061_vm12, %v4304_v56  ;;  %v3110_v63 = vsub.f32 %v4304_v56, %v4882_v7  ;;  %v3069_v59 = vpop.f32.mrb[31].mxu1  ;;  %v3152_v17 = vsel %vm7064_vm15, %v3124_v11, 0.0 }
 0x580   :  { %v3150_v14 = vsel %vm7062_vm13, %v3123_v6, 0.0  ;;  %3093 = vst.msk [vmem:[%s6859_s3 + $0x70] sm:$0xff] %vm7063_vm14, %v3069_v59  ;;  %v3109_v41 = vsub.f32 %v3069_v59, %v4883_v57  ;;  %s4910_s3 = smov [#allocation2]  }
 0x581   :  { %v3151_v39 = vadd.f32 %v3150_v14, %v3149_v15  ;;  %v3126_v29 = vmul.f32 %v3110_v63, %v3110_v63  ;;  %s3174_s14 = sshll.u32 %s4910_s3, 4  ;;  %s3175_s14 = int_to_ptr.vmem [resolvable:$true] %s3174_s14 }
 0x582   :  { %v3125_v34 = vmul.f32 %v3109_v41, %v3109_v41  ;;  %s4884_s0 = scalar_lea.vmem %s3175_s14, 16  ;;  %s4888_s15 = scalar_lea.vmem %s3175_s14, 32 }
 0x583   :  { %v3153_v61 = vadd.f32 %v3152_v17, %v3151_v39  ;;  %v3156_v8 = vsel %vm7066_vm2, %v3126_v29, 0.0  ;;  %p4885_p0 = scmp.ne.s32.totalorder %s3175_s14, %s4884_s0  ;;  %p4889_p1 = scmp.lt.s32.totalorder %s3175_s14, %s3175_s14 }
 0x584   :  { %v3154_v5 = vsel %vm7065_vm1, %v3125_v34, 0.0  ;;  %p4890_p2 = scmp.lt.s32.totalorder %s4888_s15, %s4884_s0 }
 0x585   :  { %v3155_v2 = vadd.f32 %v3154_v5, %v3153_v61 }
 0x586   :  { %p4891_p3 = por %p4890_p2, %p4889_p1 }
 0x587   :  { %v3157_v31 = vadd.f32 %v3156_v8, %v3155_v2 }
 0x588   :  { %p4892_p4 = pnand %p4891_p3, %p4885_p0 }
 0x589   :  { %v3158_v3 = vrot.slane %v3157_v31, 4 }
 0x58b   :  { %v3159_v9 = vadd.f32 %v3158_v3, %v3157_v31 }
 0x58d   :  { %v3160_v43 = vrot.slane %v3159_v9, 2 }
 0x58f   :  { %v3161_v1 = vadd.f32 %v3160_v43, %v3159_v9 }
 0x591   :  { %v3162_v38 = vrot.slane %v3161_v1, 1 }
 0x593   :  { %v3163_v42 = vadd.f32 %v3162_v38, %v3161_v1 }
 0x595   :  { %3165 = vst.msk [vmem:[#allocation2] sm:$0x1] %vm3164_vm3, %v3163_v42 }
 0x596   :  { %4895 = shalt.err (!%p4892_p4)
}
 0x597   :  { %s4896_s18 = scalar_lea.hbm %s6860_s4, 16 }
 0x598   :  { %p4897_p5 = scmp.ne.s32.totalorder %s6860_s4, %s4896_s18  ;;  %p4900_p6 = scmp.lt.u32.totalorder %s4896_s18, %s6860_s4 }
 0x59a   :  { %p4902_p7 = pnand %p4900_p6, %p4897_p5 }
 0x59c   :  { %4905 = shalt.err (!%p4902_p7)
}
 0x59d   :  { %3177 = dma.vmem_to_hbm [thread:$0]  %s3175_s14, 16, %s6860_s4, [#allocation3]  }
 0x59e   :  { %4906 = dma.done.wait [#allocation3], 16  }
 0x59f   :  { %4907 = vsyncadd [#allocation3], 4294967280 }
 0x5a0   :  { %3183 = vsyncpa [#allocation3], 1 }

// kernel: tpu_custom_call.1
= control target key start
LH: loop header
LB: loop body
LE: loop exit
PB: predicated region body
PF: predicated region fallthrough
CT: control target
= control target key end

     0   :  { %vm6937_vm0 = vcmask 261120   ;;  %s6856_s0 = inlined_call_operand.vmem [shape: f32[128,32], index: 0, kind: input, shape index: {}]   ;;  %s6857_s1 = inlined_call_operand.vmem [shape: f32[128,32], index: 1, kind: input, shape index: {}]   ;;  %s6858_s2 = inlined_call_operand.vmem [shape: f32[1,128], index: 2, kind: input, shape index: {}]   ;;  %s6859_s3 = inlined_call_operand.vmem [shape: f32[128,32], index: 3, kind: output, shape index: {0}]   ;;  %s6860_s4 = inlined_call_operand.hbm [shape: f32[1,1,32], index: 4, kind: output, shape index: {1}]  }
   0x1   :  { %v4939_v0 = vld [vmem:[%s6857_s1] sm:$0xff]  ;;  %v4944_v1 = vld [vmem:[%s6857_s1 + $0x8] sm:$0xff]  ;;  %v35_v2 = vld [vmem:[%s6857_s1 + $0x10] sm:$0xff] }
   0x2   :  { %6940 = vst [vmem:[#allocation5_spill] sm:$0xff] %v4939_v0  ;;  %6941 = vst [vmem:[#allocation6_spill] sm:$0xff] %v4944_v1  ;;  %v100_v3 = vsel %vm6937_vm0, %v4939_v0, 0  ;;  %v103_v4 = vsel %vm6937_vm0, %v4944_v1, 0  ;;  %v36_v5 = vld [vmem:[%s6857_s1 + $0x18] sm:$0xff]  ;;  %v106_v8 = vsel %vm6937_vm0, %v35_v2, 0 }
   0x3   :  { %v148_v6 = vand.u32 4294901760, %v100_v3  ;;  %v151_v7 = vand.u32 4294901760, %v103_v4  ;;  %v109_v9 = vsel %vm6937_vm0, %v36_v5, 0  ;;  %v37_v10 = vld [vmem:[%s6857_s1 + $0x20] sm:$0xff]  ;;  %v154_v11 = vand.u32 4294901760, %v106_v8  ;;  %v38_v13 = vld [vmem:[%s6857_s1 + $0x28] sm:$0xff] }
   0x4   :  { %v157_v12 = vand.u32 4294901760, %v109_v9  ;;  %v112_v20 = vsel %vm6937_vm0, %v37_v10, 0  ;;  %v115_v23 = vsel %vm6937_vm0, %v38_v13, 0  ;;  %v39_v28 = vld [vmem:[%s6857_s1 + $0x30] sm:$0xff]  ;;  %v40_v32 = vld [vmem:[%s6857_s1 + $0x38] sm:$0xff]  ;;  %v41_v48 = vld [vmem:[%s6857_s1 + $0x40] sm:$0xff] }
   0x5   :  { %v4964_v14 = vpack.c.bf16 %v151_v7, %v148_v6  ;;  %v4966_v15 = vsub.f32 %v100_v3, %v148_v6  ;;  %v4968_v16 = vsub.f32 %v103_v4, %v151_v7  ;;  %v4972_v18 = vsub.f32 %v106_v8, %v154_v11  ;;  %v42_v49 = vld [vmem:[%s6857_s1 + $0x48] sm:$0xff] }
   0x6   :  { %v4970_v17 = vpack.c.bf16 %v157_v12, %v154_v11  ;;  %v4974_v19 = vsub.f32 %v109_v9, %v157_v12  ;;  %v160_v24 = vand.u32 4294901760, %v112_v20  ;;  %v163_v27 = vand.u32 4294901760, %v115_v23 }
   0x7   :  { %v391_v21 = vand.u32 4294901760, %v4966_v15  ;;  %v398_v22 = vand.u32 4294901760, %v4968_v16  ;;  %4306 = vmatprep.subr.bf16.mxu1 %v4964_v14  ;;  %v6876_v25 = vand.u32 4294901760, %v4972_v18  ;;  %v118_v39 = vsel %vm6937_vm0, %v39_v28, 0 }
   0x8   :  { %v6875_v26 = vand.u32 4294901760, %v4974_v19  ;;  %4308 = vmatpush3.bf16.xpose.msra.mxu1 %v4964_v14  ;;  %v4993_v31 = vsub.f32 %v112_v20, %v160_v24  ;;  %v5005_v35 = vsub.f32 %v115_v23, %v163_v27  ;;  %v121_v43 = vsel %vm6937_vm0, %v40_v32, 0 }
   0x9   :  { %v392_v29 = vsub.f32 %v4966_v15, %v391_v21  ;;  %v399_v30 = vsub.f32 %v4968_v16, %v398_v22  ;;  %4310 = vmatprep.subr.bf16.mxu1 %v4970_v17  ;;  %v406_v33 = vsub.f32 %v4972_v18, %v6876_v25  ;;  %v166_v46 = vand.u32 4294901760, %v118_v39 }
   0xa   :  { %v413_v34 = vsub.f32 %v4974_v19, %v6875_v26  ;;  %v6874_v38 = vand.u32 4294901760, %v4993_v31  ;;  %v6873_v42 = vand.u32 4294901760, %v5005_v35  ;;  %v169_v47 = vand.u32 4294901760, %v121_v43 }
   0xb   :  { %v393_v36 = vand.u32 4294901760, %v392_v29  ;;  %v400_v37 = vand.u32 4294901760, %v399_v30  ;;  %v407_v40 = vand.u32 4294901760, %v406_v33 }
   0xc   :  { %v414_v41 = vand.u32 4294901760, %v413_v34  ;;  %v420_v45 = vsub.f32 %v4993_v31, %v6874_v38 }
   0xd   :  { %v4337_v44 = vpack.c.bf16 %v400_v37, %v393_v36 }
   0xe   :  { %10 = vsyncpa [#allocation3], 0  ;;  %v4341_v50 = vpack.c.bf16 %v414_v41, %v407_v40  ;;  %v427_v51 = vsub.f32 %v5005_v35, %v6873_v42  ;;  %v5023_v52 = vpack.c.bf16 %v163_v27, %v160_v24  ;;  %v5025_v53 = vsub.f32 %v118_v39, %v166_v46  ;;  %v43_v63 = vld [vmem:[%s6857_s1 + $0x50] sm:$0xff]  ;;  %v44_v2 = vld [vmem:[%s6857_s1 + $0x58] sm:$0xff] }
   0xf   :  { %4338 = vmatprep.subr.bf16.mxu0 %v4337_v44  ;;  %v5027_v54 = vsub.f32 %v121_v43, %v169_v47  ;;  %v421_v55 = vand.u32 4294901760, %v420_v45  ;;  %v124_v57 = vsel %vm6937_vm0, %v41_v48, 0  ;;  %v127_v58 = vsel %vm6937_vm0, %v42_v49, 0  ;;  %v45_v27 = vld [vmem:[%s6857_s1 + $0x60] sm:$0xff]  ;;  %v46_v30 = vld [vmem:[%s6857_s1 + $0x68] sm:$0xff]  ;;  %v47_v40 = vld [vmem:[%s6857_s1 + $0x70] sm:$0xff] }
  0x10   :  { %4340 = vmatpush3.bf16.xpose.msra.mxu0 %v4337_v44  ;;  %v428_v56 = vand.u32 4294901760, %v427_v51  ;;  %4312 = vmatpush3.bf16.xpose.msra.mxu1 %v4970_v17  ;;  %v6872_v59 = vand.u32 4294901760, %v5025_v53  ;;  %v172_v61 = vand.u32 4294901760, %v124_v57  ;;  %v175_v62 = vand.u32 4294901760, %v127_v58  ;;  %v17_v32 = vld [vmem:[%s6856_s0] sm:$0xff]  ;;  %v48_v41 = vld [vmem:[%s6857_s1 + $0x78] sm:$0xff] }
  0x11   :  { %4342 = vmatprep.subr.bf16.mxu0 %v4341_v50  ;;  %v6871_v60 = vand.u32 4294901760, %v5027_v54  ;;  %4314 = vmatprep.subr.bf16.mxu1 %v5023_v52  ;;  %v130_v4 = vsel %vm6937_vm0, %v43_v63, 0  ;;  %v133_v5 = vsel %vm6937_vm0, %v44_v2, 0  ;;  %v5053_v10 = vpack.c.bf16 %v169_v47, %v166_v46  ;;  %v32_v26 = vld [vmem:[%s6856_s0 + $0x78] sm:$0xff] }
  0x12   :  { %v5041_v3 = vsub.f32 %v124_v57, %v172_v61  ;;  %v4345_v6 = vpack.c.bf16 %v428_v56, %v421_v55  ;;  %v434_v7 = vsub.f32 %v5025_v53, %v6872_v59  ;;  %v5051_v9 = vsub.f32 %v127_v58, %v175_v62  ;;  %v31_v59 = vld [vmem:[%s6856_s0 + $0x70] sm:$0xff] }
  0x13   :  { %v441_v8 = vsub.f32 %v5027_v54, %v6871_v60  ;;  %v178_v11 = vand.u32 4294901760, %v130_v4  ;;  %v181_v12 = vand.u32 4294901760, %v133_v5  ;;  %v136_v37 = vsel %vm6937_vm0, %v45_v27, 0  ;;  %v30_v60 = vld [vmem:[%s6856_s0 + $0x68] sm:$0xff] }
  0x14   :  { %v6870_v13 = vand.u32 4294901760, %v5041_v3  ;;  %v435_v20 = vand.u32 4294901760, %v434_v7  ;;  %v6869_v24 = vand.u32 4294901760, %v5051_v9  ;;  %v139_v39 = vsel %vm6937_vm0, %v46_v30, 0 }
  0x15   :  { %v442_v23 = vand.u32 4294901760, %v441_v8  ;;  %v5062_v28 = vsub.f32 %v130_v4, %v178_v11  ;;  %v5064_v29 = vsub.f32 %v133_v5, %v181_v12  ;;  %v5087_v43 = vsel %vm6937_vm0, %v17_v32, 0 }
  0x16   :  { %v448_v33 = vsub.f32 %v5041_v3, %v6870_v13  ;;  %v455_v36 = vsub.f32 %v5051_v9, %v6869_v24  ;;  %v5089_v44 = vpack.c.bf16 %v175_v62, %v172_v61  ;;  %v184_v48 = vand.u32 4294901760, %v136_v37  ;;  %v29_v24 = vld [vmem:[%s6856_s0 + $0x60] sm:$0xff] }
  0x17   :  { %v4349_v34 = vpack.c.bf16 %v442_v23, %v435_v20  ;;  %v6868_v45 = vand.u32 4294901760, %v5062_v28  ;;  %v6867_v46 = vand.u32 4294901760, %v5064_v29  ;;  %v5094_v49 = vand.u32 4294901760, %v5087_v43 }
  0x18   :  { %4344 = vmatpush3.bf16.xpose.msra.mxu0 %v4341_v50  ;;  %4316 = vmatpush3.bf16.xpose.msra.mxu1 %v5023_v52  ;;  %6942 = vst [vmem:[#allocation7_spill] sm:$0xff] %v5089_v44  ;;  %v449_v47 = vand.u32 4294901760, %v448_v33  ;;  %v5098_v50 = vpack.c.bf16 %v4968_v16, %v4966_v15  ;;  %v456_v51 = vand.u32 4294901760, %v455_v36  ;;  %v187_v55 = vand.u32 4294901760, %v139_v39 }
  0x19   :  { %4346 = vmatprep.subr.bf16.mxu0 %v4345_v6  ;;  %4318 = vmatprep.subr.bf16.mxu1 %v5053_v10  ;;  %v142_v56 = vsel %vm6937_vm0, %v47_v40, 0  ;;  %v145_v57 = vsel %vm6937_vm0, %v48_v41, 0  ;;  %v5107_v58 = vpack.c.bf16 %v4974_v19, %v4972_v18  ;;  %v5111_v61 = vpack.c.bf16 %v5005_v35, %v4993_v31 }
  0x1a   :  { %3721 = vmatprep.mubr.f32.mxu0 %v5094_v49  ;;  %v5115_v62 = vpack.c.bf16 %v5027_v54, %v5025_v53  ;;  %v5119_v63 = vpack.c.bf16 %v5051_v9, %v5041_v3  ;;  %v462_v2 = vsub.f32 %v5062_v28, %v6868_v45  ;;  %v190_v4 = vand.u32 4294901760, %v142_v56  ;;  %v28_v45 = vld [vmem:[%s6856_s0 + $0x58] sm:$0xff] }
  0x1b   :  { %v193_v5 = vand.u32 4294901760, %v145_v57  ;;  %v4353_v7 = vpack.c.bf16 %v456_v51, %v449_v47  ;;  %v469_v8 = vsub.f32 %v5064_v29, %v6867_v46  ;;  %v5131_v20 = vsub.f32 %v136_v37, %v184_v48 }
  0x1c   :  { %v5133_v23 = vsub.f32 %v139_v39, %v187_v55  ;;  %v5135_v27 = vpack.c.bf16 %v181_v12, %v178_v11  ;;  %v5137_v30 = vsub.f32 %v142_v56, %v190_v4  ;;  %v463_v36 = vand.u32 4294901760, %v462_v2 }
  0x1d   :  { %v5139_v32 = vsub.f32 %v145_v57, %v193_v5  ;;  %v470_v40 = vand.u32 4294901760, %v469_v8  ;;  %v6866_v37 = vand.u32 4294901760, %v5131_v20  ;;  %v5159_v47 = vpack.c.bf16 %v187_v55, %v184_v48 }
  0x1e   :  { %6943 = vst [vmem:[#allocation8_spill] sm:$0xff] %v5135_v27  ;;  %v5143_v33 = vpack.c.bf16 %v5133_v23, %v5131_v20  ;;  %v6865_v39 = vand.u32 4294901760, %v5133_v23  ;;  %v6864_v57 = vand.u32 4294901760, %v5137_v30  ;;  %v5171_v55 = vpack.c.bf16 %v193_v5, %v190_v4  ;;  %v18_v5 = vld [vmem:[%s6856_s0 + $0x8] sm:$0xff] }
  0x1f   :  { %v5151_v11 = vpack.c.bf16 %v5139_v32, %v5137_v30  ;;  %v4357_v12 = vpack.c.bf16 %v470_v40, %v463_v36  ;;  %6944 = vst [vmem:[#allocation9_spill] sm:$0xff] %v5159_v47  ;;  %v6863_v2 = vand.u32 4294901760, %v5139_v32  ;;  %v6861_v40 = vand.u32 4294901760, %v4944_v1 }
  0x20   :  { %4348 = vmatpush3.bf16.xpose.msra.mxu0 %v4345_v6  ;;  %4320 = vmatpush3.bf16.xpose.msra.mxu1 %v5053_v10  ;;  %v5126_v6 = vpack.c.bf16 %v5064_v29, %v5062_v28  ;;  %v483_v41 = vsub.f32 %v5133_v23, %v6865_v39  ;;  %v490_v36 = vsub.f32 %v5137_v30, %v6864_v57  ;;  %v26_v57 = vld [vmem:[%s6856_s0 + $0x48] sm:$0xff]  ;;  %v27_v39 = vld [vmem:[%s6856_s0 + $0x50] sm:$0xff]  ;;  %v97_v1 = vsel %vm6937_vm0, %v32_v26, 0 }
  0x21   :  { %4350 = vmatprep.subr.bf16.mxu0 %v4349_v34  ;;  %4322 = vmatprep.subr.bf16.mxu1 %v5089_v44  ;;  %v497_v48 = vsub.f32 %v5139_v32, %v6863_v2  ;;  %v82_v46 = vsel %vm6937_vm0, %v27_v39, 0  ;;  %v88_v39 = vsel %vm6937_vm0, %v29_v24, 0  ;;  %v91_v24 = vsel %vm6937_vm0, %v30_v60, 0 }
  0x22   :  { %v484_v56 = vand.u32 4294901760, %v483_v41  ;;  %v5292_v13 = vand.u32 4294901760, %v82_v46  ;;  %v5307_v38 = vand.u32 4294901760, %v88_v39  ;;  %v5316_v25 = vand.u32 4294901760, %v91_v24 }
  0x23   :  { %v498_v41 = vand.u32 4294901760, %v497_v48  ;;  %v20_v48 = vld [vmem:[%s6856_s0 + $0x18] sm:$0xff]  ;;  %v5323_v60 = vand.u32 4294901760, %v97_v1 }
  0x24   :  { %v5217_v16 = vsel %vm6937_vm0, %v20_v48, 0 }
  0x25   :  { %6945 = vst [vmem:[#allocation10_spill] sm:$0xff] %v5323_v60 }
  0x28   :  { %4352 = vmatpush3.bf16.xpose.msra.mxu0 %v4349_v34  ;;  %4324 = vmatpush3.bf16.xpose.msra.mxu1 %v5089_v44  ;;  %v476_v34 = vsub.f32 %v5131_v20, %v6866_v37 }
  0x29   :  { %4354 = vmatprep.subr.bf16.mxu0 %v4353_v7  ;;  %4326 = vmatprep.subr.bf16.mxu1 %v5135_v27 }
  0x2a   :  { %v477_v51 = vand.u32 4294901760, %v476_v34  ;;  %v491_v34 = vand.u32 4294901760, %v490_v36 }
  0x2c   :  { %v4361_v8 = vpack.c.bf16 %v484_v56, %v477_v51  ;;  %v4365_v4 = vpack.c.bf16 %v498_v41, %v491_v34  ;;  %v5192_v56 = vsel %vm6937_vm0, %v18_v5, 0  ;;  %v21_v34 = vld [vmem:[%s6856_s0 + $0x20] sm:$0xff]  ;;  %v5230_v5 = vand.u32 4294901760, %v5217_v16 }
  0x2d   :  { %v5211_v41 = vand.u32 4294901760, %v5192_v56 }
  0x2f   :  { %v239_v26 = vsub.f32 %v5192_v56, %v5211_v41 }
  0x30   :  { %4356 = vmatpush3.bf16.xpose.msra.mxu0 %v4353_v7  ;;  %4328 = vmatpush3.bf16.xpose.msra.mxu1 %v5135_v27  ;;  %v6862_v7 = vand.u32 4294901760, %v4939_v0 }
  0x31   :  { %4358 = vmatprep.subr.bf16.mxu0 %v4357_v12  ;;  %4330 = vmatprep.subr.bf16.mxu1 %v5159_v47 }
  0x32   :  { %v5181_v51 = vpack.c.bf16 %v6861_v40, %v6862_v7  ;;  %v24_v40 = vld [vmem:[%s6856_s0 + $0x38] sm:$0xff] }
  0x38   :  { %4360 = vmatpush3.bf16.xpose.msra.mxu0 %v4357_v12  ;;  %4332 = vmatpush3.bf16.xpose.msra.mxu1 %v5159_v47  ;;  %v19_v12 = vld [vmem:[%s6856_s0 + $0x10] sm:$0xff] }
  0x39   :  { %4362 = vmatprep.subr.bf16.mxu0 %v4361_v8  ;;  %4334 = vmatprep.subr.bf16.mxu1 %v5171_v55  ;;  %v5202_v36 = vsel %vm6937_vm0, %v19_v12, 0 }
  0x3a   :  { %v5214_v15 = vand.u32 4294901760, %v5202_v36 }
  0x40   :  { %4364 = vmatpush3.bf16.xpose.msra.mxu0 %v4361_v8  ;;  %4336 = vmatpush3.bf16.xpose.msra.mxu1 %v5171_v55  ;;  %v5198_v8 = vpack.c.bf16 %v398_v22, %v391_v21  ;;  %v5220_v21 = vsel %vm6937_vm0, %v21_v34, 0  ;;  %v22_v22 = vld [vmem:[%s6856_s0 + $0x28] sm:$0xff] }
  0x41   :  { %4366 = vmatprep.subr.bf16.mxu0 %v4365_v4  ;;  %4498 = vmatprep.subr.bf16.mxu1 %v5181_v51  ;;  %v5235_v12 = vand.u32 4294901760, %v5220_v21  ;;  %v5238_v48 = vsel %vm6937_vm0, %v22_v22, 0 }
  0x42   :  { %v5252_v7 = vand.u32 4294901760, %v5238_v48 }
  0x48   :  { %4368 = vmatpush3.bf16.xpose.msra.mxu0 %v4365_v4  ;;  %v23_v4 = vld [vmem:[%s6856_s0 + $0x30] sm:$0xff] }
  0x49   :  { %4370 = vmatprep.subr.bf16.mxu0 %v5098_v50  ;;  %v5242_v34 = vsel %vm6937_vm0, %v23_v4, 0  ;;  %v5259_v4 = vsel %vm6937_vm0, %v24_v40, 0 }
  0x4a   :  { %v5256_v22 = vand.u32 4294901760, %v5242_v34  ;;  %v5272_v37 = vand.u32 4294901760, %v5259_v4 }
  0x4f   :  { %3722 = vmatmul.mubr.f32.vlgmr.msra.gmra.mrb[0].mxu0 %v5211_v41 }
  0x50   :  { %4372 = vmatpush3.bf16.xpose.msra.mxu0 %v5098_v50  ;;  %3724 = vmatprep.mubr.f32.mxu0 %v5214_v15  ;;  %v25_v50 = vld [vmem:[%s6856_s0 + $0x40] sm:$0xff] }
  0x51   :  { %4374 = vmatprep.subr.bf16.mxu0 %v5107_v58  ;;  %v5262_v2 = vsel %vm6937_vm0, %v25_v50, 0  ;;  %v79_v50 = vsel %vm6937_vm0, %v26_v57, 0  ;;  %v85_v57 = vsel %vm6937_vm0, %v28_v45, 0  ;;  %v94_v45 = vsel %vm6937_vm0, %v31_v59, 0 }
  0x52   :  { %v5277_v40 = vand.u32 4294901760, %v5262_v2  ;;  %v5303_v42 = vand.u32 4294901760, %v85_v57  ;;  %v229_v59 = vsub.f32 %v5087_v43, %v5094_v49  ;;  %v5343_v43 = vsub.f32 %v5202_v36, %v5214_v15 }
  0x53   :  { %3725 = vmatmul.mubr.f32.gmra.mrb[2].mxu0 %v5230_v5 }
  0x54   :  { %3727 = vmatprep.mubr.f32.mxu0 %v5235_v12  ;;  %v5375_v56 = vsub.f32 %v5262_v2, %v5277_v40  ;;  %v5393_v2 = vsub.f32 %v88_v39, %v5307_v38 }
  0x57   :  { %3728 = vmatmul.mubr.f32.gmra.mrb[4].mxu0 %v5252_v7 }
  0x58   :  { %4376 = vmatpush3.bf16.xpose.msra.mxu0 %v5107_v58  ;;  %3730 = vmatprep.mubr.f32.mxu0 %v5256_v22  ;;  %v5289_v58 = vand.u32 4294901760, %v79_v50 }
  0x59   :  { %4378 = vmatprep.subr.bf16.mxu0 %v5111_v61 }
  0x5a   :  { %v5380_v36 = vsub.f32 %v79_v50, %v5289_v58 }
  0x5b   :  { %3731 = vmatmul.mubr.f32.gmra.mrb[6].mxu0 %v5272_v37 }
  0x5c   :  { %3733 = vmatprep.mubr.f32.mxu0 %v5277_v40 }
  0x5f   :  { %3734 = vmatmul.mubr.f32.gmra.mrb[8].mxu0 %v5289_v58 }
  0x60   :  { %4380 = vmatpush3.bf16.xpose.msra.mxu0 %v5111_v61  ;;  %3736 = vmatprep.mubr.f32.mxu0 %v5292_v13  ;;  %v5319_v61 = vand.u32 4294901760, %v94_v45 }
  0x61   :  { %4382 = vmatprep.subr.bf16.mxu0 %v5115_v62 }
  0x63   :  { %3737 = vmatmul.mubr.f32.gmra.mrb[10].mxu0 %v5303_v42 }
  0x64   :  { %3739 = vmatprep.mubr.f32.mxu0 %v5307_v38 }
  0x67   :  { %3740 = vmatmul.mubr.f32.gmra.mrb[12].mxu0 %v5316_v25 }
  0x68   :  { %4384 = vmatpush3.bf16.xpose.msra.mxu0 %v5115_v62  ;;  %3742 = vmatprep.mubr.f32.mxu0 %v5319_v61  ;;  %v5347_v62 = vsub.f32 %v5217_v16, %v5230_v5  ;;  %v5384_v16 = vsub.f32 %v82_v46, %v5292_v13  ;;  %v5402_v46 = vsub.f32 %v94_v45, %v5319_v61  ;;  %v250_v45 = vand.u32 4294901760, %v5343_v43 }
  0x69   :  { %4386 = vmatprep.subr.bf16.mxu0 %v5119_v63 }
  0x6a   :  { %v260_v0 = vand.u32 4294901760, %v5347_v62 }
  0x6b   :  { %3743 = vmatmul.mubr.f32.gmra.mrb[14].mxu0 %v5323_v60 }
  0x6c   :  { %3777 = vmatprep.mubr.f32.mxu0 %v229_v59 }
  0x70   :  { %4388 = vmatpush3.bf16.xpose.msra.mxu0 %v5119_v63  ;;  %v5353_v63 = vsub.f32 %v5220_v21, %v5235_v12  ;;  %v5388_v21 = vsub.f32 %v85_v57, %v5303_v42 }
  0x71   :  { %4390 = vmatprep.subr.bf16.mxu0 %v5126_v6 }
  0x78   :  { %4392 = vmatpush3.bf16.xpose.msra.mxu0 %v5126_v6  ;;  %v5359_v6 = vsub.f32 %v5238_v48, %v5252_v7  ;;  %v5398_v48 = vsub.f32 %v91_v24, %v5316_v25 }
  0x79   :  { %4394 = vmatprep.subr.bf16.mxu0 %v5143_v33 }
  0x80   :  { %4396 = vmatpush3.bf16.xpose.msra.mxu0 %v5143_v33  ;;  %v5364_v33 = vsub.f32 %v5242_v34, %v5256_v22  ;;  %v5406_v34 = vsub.f32 %v97_v1, %v5323_v60  ;;  %v240_v1 = vand.u32 4294901760, %v239_v26 }
  0x81   :  { %4398 = vmatprep.subr.bf16.mxu0 %v5151_v11 }
  0x82   :  { %v241_v57 = vsub.f32 %v239_v26, %v240_v1 }
  0x84   :  { %v242_v24 = vand.u32 4294901760, %v241_v57 }
  0x88   :  { %4400 = vmatpush3.bf16.xpose.msra.mxu0 %v5151_v11  ;;  %v5369_v11 = vsub.f32 %v5259_v4, %v5272_v37  ;;  %v230_v4 = vand.u32 4294901760, %v229_v59 }
  0x89   :  { %4402 = vmatprep.subr.bf16.mxu0 %v4964_v14 }
  0x8a   :  { %v231_v50 = vsub.f32 %v229_v59, %v230_v4  ;;  %v261_v59 = vsub.f32 %v5347_v62, %v260_v0 }
  0x8c   :  { %v232_v39 = vand.u32 4294901760, %v231_v50  ;;  %v262_v50 = vand.u32 4294901760, %v261_v59  ;;  %v6951_v59 = vand.u32 4294901760, %v5027_v54 }
  0x8e   :  { %3665 = vmatprep.mubr.f32.mxu1 %v232_v39 }
  0x8f   :  { %3778 = vmatmul.mubr.f32.vlgmr.msra.gmra.mrb[0].mxu0 %v239_v26  ;;  %3666 = vmatmul.mubr.f32.vlgmr.msra.gmra.mrb[0].mxu1 %v242_v24 }
  0x90   :  { %4404 = vmatpush3.bf16.xpose.msra.mxu0 %v4964_v14  ;;  %3780 = vmatprep.mubr.f32.mxu0 %v5343_v43 }
  0x91   :  { %4406 = vmatprep.subr.bf16.mxu0 %v4970_v17  ;;  %4500 = vmatpush3.bf16.msra.mxu1 %v5181_v51 }
  0x93   :  { %3781 = vmatmul.mubr.f32.gmra.mrb[2].mxu0 %v5347_v62 }
  0x94   :  { %3783 = vmatprep.mubr.f32.mxu0 %v5353_v63 }
  0x97   :  { %3784 = vmatmul.mubr.f32.gmra.mrb[4].mxu0 %v5359_v6 }
  0x98   :  { %4408 = vmatpush3.bf16.xpose.msra.mxu0 %v4970_v17  ;;  %3786 = vmatprep.mubr.f32.mxu0 %v5364_v33 }
  0x99   :  { %4410 = vmatprep.subr.bf16.mxu0 %v5023_v52 }
  0x9b   :  { %3787 = vmatmul.mubr.f32.gmra.mrb[6].mxu0 %v5369_v11 }
  0x9c   :  { %3789 = vmatprep.mubr.f32.mxu0 %v5375_v56 }
  0x9f   :  { %3790 = vmatmul.mubr.f32.gmra.mrb[8].mxu0 %v5380_v36 }
  0xa0   :  { %4412 = vmatpush3.bf16.xpose.msra.mxu0 %v5023_v52  ;;  %3792 = vmatprep.mubr.f32.mxu0 %v5384_v16 }
  0xa1   :  { %4414 = vmatprep.subr.bf16.mxu0 %v5053_v10 }
  0xa3   :  { %3793 = vmatmul.mubr.f32.gmra.mrb[10].mxu0 %v5388_v21 }
  0xa4   :  { %3795 = vmatprep.mubr.f32.mxu0 %v5393_v2 }
  0xa7   :  { %3796 = vmatmul.mubr.f32.gmra.mrb[12].mxu0 %v5398_v48 }
  0xa8   :  { %4416 = vmatpush3.bf16.xpose.msra.mxu0 %v5053_v10  ;;  %3798 = vmatprep.mubr.f32.mxu0 %v5402_v46 }
  0xa9   :  { %4418 = vmatprep.subr.bf16.mxu0 %v5089_v44 }
  0xab   :  { %3799 = vmatmul.mubr.f32.gmra.mrb[14].mxu0 %v5406_v34 }
  0xac   :  { %3833 = vmatprep.mubr.f32.mxu0 %v230_v4  ;;  %v270_v4 = vand.u32 4294901760, %v5353_v63 }
  0xb0   :  { %4420 = vmatpush3.bf16.xpose.msra.mxu0 %v5089_v44  ;;  %v251_v44 = vsub.f32 %v5343_v43, %v250_v45  ;;  %v6949_v43 = vand.u32 4294901760, %v5005_v35 }
  0xb1   :  { %4422 = vmatprep.subr.bf16.mxu0 %v5135_v27 }
  0xb2   :  { %v252_v26 = vand.u32 4294901760, %v251_v44 }
  0xb4   :  { %3668 = vmatprep.mubr.f32.mxu1 %v252_v26 }
  0xb5   :  { %3669 = vmatmul.mubr.f32.gmra.mrb[2].mxu1 %v262_v50 }
  0xb8   :  { %4424 = vmatpush3.bf16.xpose.msra.mxu0 %v5135_v27  ;;  %v6946_v27 = vand.u32 4294901760, %v4972_v18  ;;  %v280_v18 = vand.u32 4294901760, %v5359_v6 }
  0xb9   :  { %4426 = vmatprep.subr.bf16.mxu0 %v5159_v47 }
  0xc0   :  { %4428 = vmatpush3.bf16.xpose.msra.mxu0 %v5159_v47  ;;  %v6947_v47 = vand.u32 4294901760, %v4974_v19  ;;  %v271_v19 = vsub.f32 %v5353_v63, %v270_v4  ;;  %v310_v63 = vand.u32 4294901760, %v5375_v56 }
  0xc1   :  { %4430 = vmatprep.subr.bf16.mxu0 %v5171_v55 }
  0xc2   :  { %v4437_v60 = vpack.c.bf16 %v6947_v47, %v6946_v27  ;;  %v281_v27 = vsub.f32 %v5359_v6, %v280_v18  ;;  %v290_v47 = vand.u32 4294901760, %v5364_v33  ;;  %v272_v44 = vand.u32 4294901760, %v271_v19 }
  0xc3   :  { %v311_v24 = vsub.f32 %v5375_v56, %v310_v63 }
  0xc4   :  { %v282_v57 = vand.u32 4294901760, %v281_v27  ;;  %3671 = vmatprep.mubr.f32.mxu1 %v272_v44  ;;  %v291_v39 = vsub.f32 %v5364_v33, %v290_v47  ;;  %v6952_v44 = vand.u32 4294901760, %v5041_v3  ;;  %v6954_v3 = vand.u32 4294901760, %v5062_v28  ;;  %v6963_v28 = vld [vmem:[#allocation9_spill] sm:$0xff] }
  0xc6   :  { %3672 = vmatmul.mubr.f32.gmra.mrb[4].mxu1 %v282_v57  ;;  %v292_v6 = vand.u32 4294901760, %v291_v39 }
  0xc8   :  { %4432 = vmatpush3.bf16.xpose.msra.mxu0 %v5171_v55  ;;  %3674 = vmatprep.mubr.f32.mxu1 %v292_v6  ;;  %v6958_v6 = vand.u32 4294901760, %v5137_v30 }
  0xc9   :  { %4434 = vmatprep.subr.bf16.mxu0 %v5198_v8 }
  0xcf   :  { %3834 = vmatmul.mubr.f32.vlgmr.msra.gmra.mrb[0].mxu0 %v240_v1  ;;  %v300_v1 = vand.u32 4294901760, %v5369_v11 }
  0xd0   :  { %4436 = vmatpush3.bf16.xpose.msra.mxu0 %v5198_v8  ;;  %3836 = vmatprep.mubr.f32.mxu0 %v250_v45  ;;  %v6948_v8 = vand.u32 4294901760, %v4993_v31  ;;  %v320_v31 = vand.u32 4294901760, %v5380_v36  ;;  %v330_v45 = vand.u32 4294901760, %v5384_v16 }
  0xd1   :  { %4438 = vmatprep.subr.bf16.mxu0 %v4437_v60 }
  0xd2   :  { %v4441_v62 = vpack.c.bf16 %v6949_v43, %v6948_v8  ;;  %v321_v33 = vsub.f32 %v5380_v36, %v320_v31  ;;  %v350_v36 = vand.u32 4294901760, %v5393_v2  ;;  %v6953_v8 = vand.u32 4294901760, %v5051_v9 }
  0xd3   :  { %3837 = vmatmul.mubr.f32.gmra.mrb[2].mxu0 %v260_v0  ;;  %v301_v0 = vsub.f32 %v5369_v11, %v300_v1  ;;  %v312_v11 = vand.u32 4294901760, %v311_v24  ;;  %v6955_v9 = vand.u32 4294901760, %v5064_v29 }
  0xd4   :  { %3839 = vmatprep.mubr.f32.mxu0 %v270_v4  ;;  %v340_v4 = vand.u32 4294901760, %v5388_v21  ;;  %v322_v50 = vand.u32 4294901760, %v321_v33  ;;  %v351_v27 = vsub.f32 %v5393_v2, %v350_v36  ;;  %v4449_v43 = vpack.c.bf16 %v6953_v8, %v6952_v44 }
  0xd5   :  { %v302_v35 = vand.u32 4294901760, %v301_v0  ;;  %v4453_v0 = vpack.c.bf16 %v6955_v9, %v6954_v3 }
  0xd6   :  { %v341_v56 = vsub.f32 %v5388_v21, %v340_v4  ;;  %v352_v21 = vand.u32 4294901760, %v351_v27 }
  0xd7   :  { %3840 = vmatmul.mubr.f32.gmra.mrb[4].mxu0 %v280_v18  ;;  %3675 = vmatmul.mubr.f32.gmra.mrb[6].mxu1 %v302_v35  ;;  %v331_v18 = vsub.f32 %v5384_v16, %v330_v45 }
  0xd8   :  { %4440 = vmatpush3.bf16.xpose.msra.mxu0 %v4437_v60  ;;  %3842 = vmatprep.mubr.f32.mxu0 %v290_v47  ;;  %v6950_v60 = vand.u32 4294901760, %v5025_v53  ;;  %v360_v53 = vand.u32 4294901760, %v5398_v48  ;;  %v342_v54 = vand.u32 4294901760, %v341_v56  ;;  %v370_v47 = vand.u32 4294901760, %v5402_v46 }
  0xd9   :  { %4442 = vmatprep.subr.bf16.mxu0 %v4441_v62  ;;  %3677 = vmatprep.mubr.f32.mxu1 %v312_v11  ;;  %v332_v19 = vand.u32 4294901760, %v331_v18 }
  0xda   :  { %v4445_v26 = vpack.c.bf16 %v6951_v59, %v6950_v60  ;;  %v361_v16 = vsub.f32 %v5398_v48, %v360_v53  ;;  %v371_v57 = vsub.f32 %v5402_v46, %v370_v47  ;;  %v6956_v46 = vand.u32 4294901760, %v5131_v20 }
  0xdb   :  { %3843 = vmatmul.mubr.f32.gmra.mrb[6].mxu0 %v300_v1  ;;  %3678 = vmatmul.mubr.f32.gmra.mrb[8].mxu1 %v322_v50 }
  0xdc   :  { %3845 = vmatprep.mubr.f32.mxu0 %v310_v63  ;;  %3680 = vmatprep.mubr.f32.mxu1 %v332_v19  ;;  %v362_v1 = vand.u32 4294901760, %v361_v16  ;;  %v372_v48 = vand.u32 4294901760, %v371_v57 }
  0xdf   :  { %3846 = vmatmul.mubr.f32.gmra.mrb[8].mxu0 %v320_v31  ;;  %3681 = vmatmul.mubr.f32.gmra.mrb[10].mxu1 %v342_v54  ;;  %v6959_v31 = vand.u32 4294901760, %v5139_v32 }
  0xe0   :  { %4444 = vmatpush3.bf16.xpose.msra.mxu0 %v4441_v62  ;;  %3848 = vmatprep.mubr.f32.mxu0 %v330_v45  ;;  %v380_v62 = vand.u32 4294901760, %v5406_v34 }
  0xe1   :  { %4446 = vmatprep.subr.bf16.mxu0 %v4445_v26  ;;  %3683 = vmatprep.mubr.f32.mxu1 %v352_v21  ;;  %v4461_v35 = vpack.c.bf16 %v6959_v31, %v6958_v6 }
  0xe2   :  { %v381_v2 = vsub.f32 %v5406_v34, %v380_v62  ;;  %v6957_v34 = vand.u32 4294901760, %v5133_v23 }
  0xe3   :  { %3849 = vmatmul.mubr.f32.gmra.mrb[10].mxu0 %v340_v4  ;;  %3684 = vmatmul.mubr.f32.gmra.mrb[12].mxu1 %v362_v1 }
  0xe4   :  { %3851 = vmatprep.mubr.f32.mxu0 %v350_v36  ;;  %v382_v39 = vand.u32 4294901760, %v381_v2  ;;  %3686 = vmatprep.mubr.f32.mxu1 %v372_v48  ;;  %v4457_v63 = vpack.c.bf16 %v6957_v34, %v6956_v46 }
  0xe7   :  { %3852 = vmatmul.mubr.f32.gmra.mrb[12].mxu0 %v360_v53  ;;  %3687 = vmatmul.mubr.f32.gmra.mrb[14].mxu1 %v382_v39 }
  0xe8   :  { %4448 = vmatpush3.bf16.xpose.msra.mxu0 %v4445_v26  ;;  %3854 = vmatprep.mubr.f32.mxu0 %v370_v47 }
  0xe9   :  { %4450 = vmatprep.subr.bf16.mxu0 %v4449_v43 }
  0xeb   :  { %3855 = vmatmul.mubr.f32.gmra.mrb[14].mxu0 %v380_v62 }
  0xec   :  { %3889 = vmatprep.mubr.f32.mxu0 %v5094_v49 }
  0xf0   :  { %4452 = vmatpush3.bf16.xpose.msra.mxu0 %v4449_v43 }
  0xf1   :  { %4454 = vmatprep.subr.bf16.mxu0 %v4453_v0 }
  0xf8   :  { %4456 = vmatpush3.bf16.xpose.msra.mxu0 %v4453_v0 }
  0xf9   :  { %4458 = vmatprep.subr.bf16.mxu0 %v4457_v63 }
 0x100   :  { %4460 = vmatpush3.bf16.xpose.msra.mxu0 %v4457_v63 }
 0x101   :  { %4462 = vmatprep.subr.bf16.mxu0 %v4461_v35 }
 0x108   :  { %4464 = vmatpush3.bf16.xpose.msra.mxu0 %v4461_v35 }
 0x109   :  { %4466 = vmatprep.subr.bf16.mxu0 %v4964_v14 }
 0x10f   :  { %3890 = vmatmul.mubr.f32.vlgmr.msra.gmra.mrb[0].mxu0 %v5211_v41 }
 0x110   :  { %4468 = vmatpush3.bf16.xpose.msra.mxu0 %v4964_v14  ;;  %3892 = vmatprep.mubr.f32.mxu0 %v5214_v15  ;;  %v6960_v14 = vld [vmem:[#allocation7_spill] sm:$0xff] }
 0x111   :  { %4470 = vmatprep.subr.bf16.mxu0 %v4970_v17 }
 0x113   :  { %3893 = vmatmul.mubr.f32.gmra.mrb[2].mxu0 %v5230_v5 }
 0x114   :  { %3895 = vmatprep.mubr.f32.mxu0 %v5235_v12 }
 0x117   :  { %3896 = vmatmul.mubr.f32.gmra.mrb[4].mxu0 %v5252_v7 }
 0x118   :  { %4472 = vmatpush3.bf16.xpose.msra.mxu0 %v4970_v17  ;;  %3898 = vmatprep.mubr.f32.mxu0 %v5256_v22  ;;  %v6961_v17 = vld [vmem:[#allocation10_spill] sm:$0xff] }
 0x119   :  { %4474 = vmatprep.subr.bf16.mxu0 %v5023_v52 }
 0x11b   :  { %3899 = vmatmul.mubr.f32.gmra.mrb[6].mxu0 %v5272_v37 }
 0x11c   :  { %3901 = vmatprep.mubr.f32.mxu0 %v5277_v40 }
 0x11f   :  { %3902 = vmatmul.mubr.f32.gmra.mrb[8].mxu0 %v5289_v58 }
 0x120   :  { %4476 = vmatpush3.bf16.xpose.msra.mxu0 %v5023_v52  ;;  %3904 = vmatprep.mubr.f32.mxu0 %v5292_v13  ;;  %v6962_v52 = vld [vmem:[#allocation8_spill] sm:$0xff] }
 0x121   :  { %4478 = vmatprep.subr.bf16.mxu0 %v5053_v10 }
 0x123   :  { %3905 = vmatmul.mubr.f32.gmra.mrb[10].mxu0 %v5303_v42 }
 0x124   :  { %3907 = vmatprep.mubr.f32.mxu0 %v5307_v38 }
 0x127   :  { %3908 = vmatmul.mubr.f32.gmra.mrb[12].mxu0 %v5316_v25 }
 0x128   :  { %4480 = vmatpush3.bf16.xpose.msra.mxu0 %v5053_v10  ;;  %3910 = vmatprep.mubr.f32.mxu0 %v5319_v61 }
 0x129   :  { %4482 = vmatprep.subr.bf16.mxu0 %v6960_v14 }
 0x12b   :  { %3911 = vmatmul.mubr.f32.gmra.mrb[14].mxu0 %v6961_v17 }
 0x12c   :  { %3945 = vmatprep.mubr.f32.mxu0 %v5094_v49 }
 0x130   :  { %4484 = vmatpush3.bf16.xpose.msra.mxu0 %v6960_v14 }
 0x131   :  { %4486 = vmatprep.subr.bf16.mxu0 %v6962_v52 }
 0x138   :  { %4488 = vmatpush3.bf16.xpose.msra.mxu0 %v6962_v52 }
 0x139   :  { %4490 = vmatprep.subr.bf16.mxu0 %v6963_v28 }
 0x140   :  { %4492 = vmatpush3.bf16.xpose.msra.mxu0 %v6963_v28 }
 0x141   :  { %4494 = vmatprep.subr.bf16.mxu0 %v5171_v55 }
 0x148   :  { %4496 = vmatpush3.bf16.xpose.msra.mxu0 %v5171_v55 }
 0x14f   :  { %3946 = vmatmul.mubr.f32.vlgmr.msra.gmra.mrb[0].mxu0 %v5211_v41 }
 0x150   :  { %3948 = vmatprep.mubr.f32.mxu0 %v5214_v15 }
 0x153   :  { %3949 = vmatmul.mubr.f32.gmra.mrb[2].mxu0 %v5230_v5 }
 0x154   :  { %3951 = vmatprep.mubr.f32.mxu0 %v5235_v12 }
 0x157   :  { %3952 = vmatmul.mubr.f32.gmra.mrb[4].mxu0 %v5252_v7 }
 0x158   :  { %3954 = vmatprep.mubr.f32.mxu0 %v5256_v22 }
 0x15b   :  { %3955 = vmatmul.mubr.f32.gmra.mrb[6].mxu0 %v5272_v37 }
 0x15c   :  { %3957 = vmatprep.mubr.f32.mxu0 %v5277_v40  ;;  %v3184_v40 = vld [vmem:[%s6858_s2] ss:$0 sm:$0xff] }
 0x15f   :  { %3958 = vmatmul.mubr.f32.gmra.mrb[8].mxu0 %v5289_v58 }
 0x160   :  { %3960 = vmatprep.mubr.f32.mxu0 %v5292_v13 }
 0x162   :  { %v3667_v10 = vpop.f32.mrb[0].mxu1 }
 0x163   :  { %3961 = vmatmul.mubr.f32.gmra.mrb[10].mxu0 %v5303_v42  ;;  %v234_v29 = vpop.f32.mrb[1].mxu1 }
 0x164   :  { %3963 = vmatprep.mubr.f32.mxu0 %v5307_v38 }
 0x167   :  { %3964 = vmatmul.mubr.f32.gmra.mrb[12].mxu0 %v5316_v25 }
 0x168   :  { %3966 = vmatprep.mubr.f32.mxu0 %v5319_v61 }
 0x16b   :  { %3967 = vmatmul.mubr.f32.gmra.mrb[14].mxu0 %v6961_v17 }
 0x188   :  { %v3670_v49 = vpop.f32.mrb[2].mxu1 }
 0x189   :  { %v254_v20 = vpop.f32.mrb[3].mxu1 }
 0x199   :  { %v3673_v23 = vpop.f32.mrb[4].mxu1 }
 0x19a   :  { %v274_v30 = vpop.f32.mrb[5].mxu1 }
 0x1aa   :  { %v3676_v32 = vpop.f32.mrb[6].mxu1 }
 0x1ab   :  { %v294_v37 = vpop.f32.mrb[7].mxu1 }
 0x1ae   :  { %v3679_v55 = vpop.f32.mrb[8].mxu1 }
 0x1af   :  { %v314_v13 = vpop.f32.mrb[9].mxu1 }
 0x1b2   :  { %v3682_v7 = vpop.f32.mrb[10].mxu1 }
 0x1b3   :  { %v334_v42 = vpop.f32.mrb[11].mxu1 }
 0x1b6   :  { %v3685_v41 = vpop.f32.mrb[12].mxu1 }
 0x1b7   :  { %v354_v38 = vpop.f32.mrb[13].mxu1 }
 0x1ba   :  { %v3688_v15 = vpop.f32.mrb[14].mxu1 }
 0x1bb   :  { %v374_v25 = vpop.f32.mrb[15].mxu1 }
 0x222   :  { %v3947_v5 = vpop.f32.mrb[0].mxu0 }
 0x223   :  { %v4689_v12 = vadd.f32 %v3947_v5, %v3667_v10  ;;  %v1339_v22 = vpop.f32.mrb[1].mxu0 }
 0x224   :  { %v4690_v58 = vadd.f32 %v1339_v22, %v234_v29 }
 0x225   :  { %v5532_v59 = vsub.f32 %v3184_v40, %v4689_v12 }
 0x226   :  { %v3950_v61 = vpop.f32.mrb[2].mxu0  ;;  %v5529_v24 = vsub.f32 %v3184_v40, %v4690_v58 }
 0x227   :  { %v4691_v33 = vadd.f32 %v3950_v61, %v3670_v49  ;;  %v1351_v45 = vpop.f32.mrb[3].mxu0  ;;  %v1487_v49 = vlaneseq }
 0x228   :  { %v4692_v11 = vadd.f32 %v1351_v45, %v254_v20  ;;  %1455 = vmin.xlane.f32.xlu0 %v5529_v24 }
 0x229   :  { %v5538_v36 = vsub.f32 %v3184_v40, %v4691_v33  ;;  %v5577_v20 = vand.u32 127, %v1487_v49 }
 0x22a   :  { %v3953_v60 = vpop.f32.mrb[4].mxu0  ;;  %v5534_v26 = vsub.f32 %v3184_v40, %v4692_v11 }
 0x22b   :  { %v4693_v4 = vadd.f32 %v3953_v60, %v3673_v23  ;;  %v1363_v50 = vpop.f32.mrb[5].mxu0 }
 0x22c   :  { %v4694_v18 = vadd.f32 %v1363_v50, %v274_v30  ;;  %1457 = vmin.xlane.f32.xlu0 %v5532_v59  ;;  %1459 = vmin.xlane.f32.xlu1 %v5534_v26 }
 0x22d   :  { %v5544_v47 = vsub.f32 %v3184_v40, %v4693_v4 }
 0x22e   :  { %v3956_v56 = vpop.f32.mrb[6].mxu0  ;;  %v5540_v19 = vsub.f32 %v3184_v40, %v4694_v18 }
 0x22f   :  { %v4695_v53 = vadd.f32 %v3956_v56, %v3676_v32  ;;  %v1375_v54 = vpop.f32.mrb[7].mxu0 }
 0x230   :  { %v4696_v27 = vadd.f32 %v1375_v54, %v294_v37  ;;  %1461 = vmin.xlane.f32.xlu1 %v5538_v36  ;;  %1463 = vmin.xlane.f32.xlu0 %v5540_v19 }
 0x231   :  { %v5550_v1 = vsub.f32 %v3184_v40, %v4695_v53 }
 0x232   :  { %v3959_v16 = vpop.f32.mrb[8].mxu0  ;;  %v5546_v21 = vsub.f32 %v3184_v40, %v4696_v27 }
 0x233   :  { %v4697_v44 = vadd.f32 %v3959_v16, %v3679_v55  ;;  %v1387_v8 = vpop.f32.mrb[9].mxu0 }
 0x234   :  { %v4698_v43 = vadd.f32 %v1387_v8, %v314_v13  ;;  %1465 = vmin.xlane.f32.xlu1 %v5544_v47  ;;  %1467 = vmin.xlane.f32.xlu0 %v5546_v21 }
 0x235   :  { %v5556_v9 = vsub.f32 %v3184_v40, %v4697_v44 }
 0x236   :  { %v3962_v62 = vpop.f32.mrb[10].mxu0  ;;  %v5552_v57 = vsub.f32 %v3184_v40, %v4698_v43 }
 0x237   :  { %v4699_v2 = vadd.f32 %v3962_v62, %v3682_v7  ;;  %v1399_v48 = vpop.f32.mrb[11].mxu0 }
 0x238   :  { %v4700_v39 = vadd.f32 %v1399_v48, %v334_v42  ;;  %1469 = vmin.xlane.f32.xlu1 %v5550_v1  ;;  %1471 = vmin.xlane.f32.xlu0 %v5552_v57 }
 0x239   :  { %v5562_v31 = vsub.f32 %v3184_v40, %v4699_v2 }
 0x23a   :  { %v3965_v3 = vpop.f32.mrb[12].mxu0  ;;  %v5558_v0 = vsub.f32 %v3184_v40, %v4700_v39 }
 0x23b   :  { %v4701_v46 = vadd.f32 %v3965_v3, %v3685_v41  ;;  %v1411_v34 = vpop.f32.mrb[13].mxu0 }
 0x23c   :  { %v4702_v63 = vadd.f32 %v1411_v34, %v354_v38  ;;  %1473 = vmin.xlane.f32.xlu1 %v5556_v9  ;;  %1475 = vmin.xlane.f32.xlu0 %v5558_v0 }
 0x23d   :  { %v5568_v28 = vsub.f32 %v3184_v40, %v4701_v46 }
 0x23e   :  { %v3968_v6 = vpop.f32.mrb[14].mxu0  ;;  %v5564_v35 = vsub.f32 %v3184_v40, %v4702_v63 }
 0x23f   :  { %v4703_v14 = vadd.f32 %v3968_v6, %v3688_v15  ;;  %v1423_v17 = vpop.f32.mrb[15].mxu0 }
 0x240   :  { %v4704_v52 = vadd.f32 %v1423_v17, %v374_v25  ;;  %1477 = vmin.xlane.f32.xlu1 %v5562_v31  ;;  %1479 = vmin.xlane.f32.xlu0 %v5564_v35 }
 0x241   :  { %v5574_v29 = vsub.f32 %v3184_v40, %v4703_v14 }
 0x242   :  { %v5570_v10 = vsub.f32 %v3184_v40, %v4704_v52 }
 0x244   :  { %1481 = vmin.xlane.f32.xlu1 %v5568_v28  ;;  %1483 = vmin.xlane.f32.xlu0 %v5570_v10 }
 0x248   :  { %1485 = vmin.xlane.f32.xlu1 %v5574_v29 }
 0x2b5   :  { %v1456_v23 = vpop.xlane.xlu0 %1455 }
 0x2b6   :  { %vm1489_vm1 = vcmp.le.f32.partialorder %v5529_v24, %v1456_v23 }
 0x2b7   :  { %v5581_v30 = vsel %vm1489_vm1, %v5577_v20, 128 }
 0x2b8   :  { %v1522_v32 = vshra.s32 %v5581_v30, 16 }
 0x2b9   :  { %v1458_v37 = vpop.xlane.xlu0 %1457  ;;  %v1460_v55 = vpop.xlane.xlu1 %1459 }
 0x2ba   :  { %vm1490_vm2 = vcmp.le.f32.partialorder %v5532_v59, %v1458_v37  ;;  %vm1491_vm3 = vcmp.le.f32.partialorder %v5534_v26, %v1460_v55  ;;  %v5586_v13 = vcvt.s32.f32 %v1522_v32 }
 0x2bb   :  { %v5589_v7 = vsel %vm1490_vm2, %v5577_v20, 128  ;;  %v5592_v42 = vsel %vm1491_vm3, %v5577_v20, 128 }
 0x2bc   :  { %1525 = vmin.xlane.f32.xlu0 %v5586_v13  ;;  %v1536_v41 = vshra.s32 %v5589_v7, 16  ;;  %v1550_v38 = vshra.s32 %v5592_v42, 16 }
 0x2bd   :  { %v1462_v15 = vpop.xlane.xlu1 %1461  ;;  %v1464_v25 = vpop.xlane.xlu0 %1463 }
 0x2be   :  { %vm1492_vm4 = vcmp.le.f32.partialorder %v5538_v36, %v1462_v15  ;;  %vm1493_vm5 = vcmp.le.f32.partialorder %v5540_v19, %v1464_v25  ;;  %v5599_v5 = vcvt.s32.f32 %v1536_v41  ;;  %v5601_v12 = vcvt.s32.f32 %v1550_v38  ;;  %v5716_v41 = vld [vmem:[%s6857_s1 + $0x18] sm:$0xff]  ;;  %v5722_v15 = vld [vmem:[%s6857_s1 + $0x20] sm:$0xff] }
 0x2bf   :  { %v5604_v22 = vsel %vm1492_vm4, %v5577_v20, 128  ;;  %v5607_v40 = vsel %vm1493_vm5, %v5577_v20, 128  ;;  %v6891_v38 = vand.u32 4294901760, %v5716_v41  ;;  %v6890_v25 = vand.u32 4294901760, %v5722_v15 }
 0x2c0   :  { %1539 = vmin.xlane.f32.xlu1 %v5599_v5  ;;  %1553 = vmin.xlane.f32.xlu0 %v5601_v12  ;;  %v1564_v58 = vshra.s32 %v5604_v22, 16  ;;  %v1578_v61 = vshra.s32 %v5607_v40, 16 }
 0x2c1   :  { %v1466_v24 = vpop.xlane.xlu1 %1465  ;;  %v1468_v33 = vpop.xlane.xlu0 %1467 }
 0x2c2   :  { %vm1494_vm6 = vcmp.le.f32.partialorder %v5544_v47, %v1466_v24  ;;  %vm1495_vm7 = vcmp.le.f32.partialorder %v5546_v21, %v1468_v33  ;;  %v5615_v45 = vcvt.s32.f32 %v1564_v58  ;;  %v5617_v11 = vcvt.s32.f32 %v1578_v61  ;;  %v5728_v58 = vld [vmem:[%s6857_s1 + $0x28] sm:$0xff]  ;;  %v5734_v24 = vld [vmem:[%s6857_s1 + $0x30] sm:$0xff] }
 0x2c3   :  { %v5620_v60 = vsel %vm1494_vm6, %v5577_v20, 128  ;;  %v5623_v59 = vsel %vm1495_vm7, %v5577_v20, 128  ;;  %v6889_v61 = vand.u32 4294901760, %v5728_v58  ;;  %v6888_v33 = vand.u32 4294901760, %v5734_v24 }
 0x2c4   :  { %1567 = vmin.xlane.f32.xlu1 %v5615_v45  ;;  %1581 = vmin.xlane.f32.xlu0 %v5617_v11  ;;  %v1592_v26 = vshra.s32 %v5620_v60, 16  ;;  %v1606_v4 = vshra.s32 %v5623_v59, 16 }
 0x2c5   :  { %v1470_v50 = vpop.xlane.xlu1 %1469  ;;  %v1472_v18 = vpop.xlane.xlu0 %1471 }
 0x2c6   :  { %vm1496_vm8 = vcmp.le.f32.partialorder %v5550_v1, %v1470_v50  ;;  %vm1497_vm9 = vcmp.le.f32.partialorder %v5552_v57, %v1472_v18  ;;  %v5631_v56 = vcvt.s32.f32 %v1592_v26  ;;  %v5633_v36 = vcvt.s32.f32 %v1606_v4  ;;  %v5740_v26 = vld [vmem:[%s6857_s1 + $0x38] sm:$0xff] }
 0x2c7   :  { %v5636_v19 = vsel %vm1496_vm8, %v5577_v20, 128  ;;  %v5639_v53 = vsel %vm1497_vm9, %v5577_v20, 128  ;;  %v6887_v4 = vand.u32 4294901760, %v5740_v26  ;;  %v5753_v18 = vpack.c.bf16 %v6889_v61, %v6890_v25 }
 0x2c8   :  { %1595 = vmin.xlane.f32.xlu1 %v5631_v56  ;;  %1609 = vmin.xlane.f32.xlu0 %v5633_v36  ;;  %v1620_v54 = vshra.s32 %v5636_v19, 16  ;;  %v1634_v27 = vshra.s32 %v5639_v53, 16 }
 0x2c9   :  { %v1474_v16 = vpop.xlane.xlu1 %1473  ;;  %v1476_v47 = vpop.xlane.xlu0 %1475 }
 0x2ca   :  { %vm1498_vm10 = vcmp.le.f32.partialorder %v5556_v9, %v1474_v16  ;;  %vm1499_vm11 = vcmp.le.f32.partialorder %v5558_v0, %v1476_v47  ;;  %v5647_v21 = vcvt.s32.f32 %v1620_v54  ;;  %v5649_v44 = vcvt.s32.f32 %v1634_v27 }
 0x2cb   :  { %v5652_v8 = vsel %vm1498_vm10, %v5577_v20, 128  ;;  %v5655_v43 = vsel %vm1499_vm11, %v5577_v20, 128  ;;  %v5762_v54 = vpack.c.bf16 %v6887_v4, %v6888_v33  ;;  %v1521_v27 = vand.u32 65535, %v5581_v30 }
 0x2cc   :  { %1623 = vmin.xlane.f32.xlu1 %v5647_v21  ;;  %1637 = vmin.xlane.f32.xlu0 %v5649_v44  ;;  %v1648_v62 = vshra.s32 %v5652_v8, 16  ;;  %v1662_v1 = vshra.s32 %v5655_v43, 16  ;;  %v1535_v16 = vand.u32 65535, %v5589_v7  ;;  %v1549_v47 = vand.u32 65535, %v5592_v42 }
 0x2cd   :  { %v1478_v57 = vpop.xlane.xlu1 %1477  ;;  %v1480_v2 = vpop.xlane.xlu0 %1479  ;;  %6964 = vst [vmem:[#allocation7_spill] sm:$0xff] %v5762_v54 }
 0x2ce   :  { %vm1500_vm12 = vcmp.le.f32.partialorder %v5562_v31, %v1478_v57  ;;  %vm1501_vm13 = vcmp.le.f32.partialorder %v5564_v35, %v1480_v2  ;;  %v5663_v48 = vcvt.s32.f32 %v1648_v62  ;;  %v5665_v39 = vcvt.s32.f32 %v1662_v1 }
 0x2cf   :  { %v5668_v3 = vsel %vm1500_vm12, %v5577_v20, 128  ;;  %v5671_v9 = vsel %vm1501_vm13, %v5577_v20, 128  ;;  %v1523_v1 = vcvt.s32.f32 %v1521_v27  ;;  %v1563_v2 = vand.u32 65535, %v5604_v22 }
 0x2d0   :  { %1651 = vmin.xlane.f32.xlu1 %v5663_v48  ;;  %1665 = vmin.xlane.f32.xlu0 %v5665_v39  ;;  %v1676_v0 = vshra.s32 %v5668_v3, 16  ;;  %v1690_v46 = vshra.s32 %v5671_v9, 16  ;;  %v1537_v30 = vcvt.s32.f32 %v1535_v16  ;;  %v1551_v7 = vcvt.s32.f32 %v1549_v47 }
 0x2d1   :  { %v1482_v34 = vpop.xlane.xlu1 %1481  ;;  %v1484_v63 = vpop.xlane.xlu0 %1483  ;;  %v1591_v22 = vand.u32 65535, %v5620_v60  ;;  %v1619_v60 = vand.u32 65535, %v5636_v19  ;;  %v5813_v19 = vld [vmem:[%s6857_s1 + $0x48] sm:$0xff] }
 0x2d2   :  { %vm1502_vm14 = vcmp.le.f32.partialorder %v5568_v28, %v1482_v34  ;;  %vm1503_vm15 = vcmp.le.f32.partialorder %v5570_v10, %v1484_v63  ;;  %v5679_v6 = vcvt.s32.f32 %v1676_v0  ;;  %v5681_v31 = vcvt.s32.f32 %v1690_v46 }
 0x2d3   :  { %v5684_v35 = vsel %vm1502_vm14, %v5577_v20, 128  ;;  %v5687_v14 = vsel %vm1503_vm15, %v5577_v20, 128  ;;  %v1577_v0 = vand.u32 65535, %v5607_v40  ;;  %v1605_v40 = vand.u32 65535, %v5623_v59 }
 0x2d4   :  { %1679 = vmin.xlane.f32.xlu1 %v5679_v6  ;;  %1693 = vmin.xlane.f32.xlu0 %v5681_v31  ;;  %v1704_v17 = vshra.s32 %v5684_v35, 16  ;;  %v1718_v52 = vshra.s32 %v5687_v14, 16  ;;  %v1633_v59 = vand.u32 65535, %v5639_v53  ;;  %v1593_v16 = vcvt.s32.f32 %v1591_v22 }
 0x2d5   :  { %v1486_v28 = vpop.xlane.xlu1 %1485  ;;  %v1607_v47 = vcvt.s32.f32 %v1605_v40  ;;  %v1821_v53 = vand.u32 4294901760, %v5813_v19 }
 0x2d6   :  { %vm1504_vm1 = vcmp.le.f32.partialorder %v5574_v29, %v1486_v28  ;;  %v5694_v10 = vcvt.s32.f32 %v1704_v17  ;;  %v5696_v49 = vcvt.s32.f32 %v1718_v52  ;;  %v5710_v29 = vld [vmem:[%s6857_s1 + $0x10] sm:$0xff]  ;;  %v1565_v52 = vcvt.s32.f32 %v1563_v2 }
 0x2d7   :  { %v5699_v23 = vsel %vm1504_vm1, %v5577_v20, 128  ;;  %v1800_v55 = vand.u32 4294901760, %v5710_v29  ;;  %v1579_v28 = vcvt.s32.f32 %v1577_v0 }
 0x2d8   :  { %1707 = vmin.xlane.f32.xlu1 %v5694_v10  ;;  %1721 = vmin.xlane.f32.xlu0 %v5696_v49  ;;  %v1732_v32 = vshra.s32 %v5699_v23, 16  ;;  %v1731_v33 = vand.u32 65535, %v5699_v23 }
 0x2d9   :  { %v5747_v50 = vpack.c.bf16 %v6891_v38, %v1800_v55 }
 0x2da   :  { %v5704_v37 = vcvt.s32.f32 %v1732_v32 }
 0x2db   :  { %4502 = vmatprep.subr.bf16.mxu1 %v5747_v50 }
 0x2dc   :  { %1735 = vmin.xlane.f32.xlu1 %v5704_v37  ;;  %4504 = vmatpush3.bf16.msra.mxu1 %v5747_v50 }
 0x2dd   :  { %4506 = vmatprep.subr.bf16.mxu1 %v5753_v18 }
 0x2e0   :  { %4508 = vmatpush3.bf16.msra.mxu1 %v5753_v18 }
 0x2e1   :  { %4510 = vmatprep.subr.bf16.mxu1 %v5762_v54 }
 0x2e4   :  { %4512 = vmatpush3.bf16.msra.mxu1 %v5762_v54 }
 0x349   :  { %v5770_v62 = vpop.xlane.xlu0 %1525 }
 0x34a   :  { %vm1527_vm2 = vcmp.eq.f32.partialorder %v5586_v13, %v5770_v62 }
 0x34b   :  { %v1528_v57 = vsel %vm1527_vm2, %v1523_v1, inf }
 0x34c   :  { %1529 = vmin.xlane.f32.xlu0 %v1528_v57 }
 0x34d   :  { %v5776_v46 = vpop.xlane.xlu1 %1539  ;;  %v5778_v34 = vpop.xlane.xlu0 %1553 }
 0x34e   :  { %vm1541_vm3 = vcmp.eq.f32.partialorder %v5599_v5, %v5776_v46  ;;  %vm1555_vm4 = vcmp.eq.f32.partialorder %v5601_v12, %v5778_v34 }
 0x34f   :  { %v1542_v42 = vsel %vm1541_vm3, %v1537_v30, inf  ;;  %v1556_v13 = vsel %vm1555_vm4, %v1551_v7, inf  ;;  %v1621_v30 = vcvt.s32.f32 %v1619_v60  ;;  %v1635_v7 = vcvt.s32.f32 %v1633_v59  ;;  %v5854_v59 = vld [vmem:[%s6857_s1 + $0x60] sm:$0xff] }
 0x350   :  { %1543 = vmin.xlane.f32.xlu1 %v1542_v42  ;;  %1557 = vmin.xlane.f32.xlu0 %v1556_v13  ;;  %v5825_v42 = vld [vmem:[%s6857_s1 + $0x50] sm:$0xff] }
 0x351   :  { %v5786_v63 = vpop.xlane.xlu1 %1567  ;;  %v5788_v17 = vpop.xlane.xlu0 %1581  ;;  %v1824_v13 = vand.u32 4294901760, %v5825_v42 }
 0x352   :  { %vm1569_vm5 = vcmp.eq.f32.partialorder %v5615_v45, %v5786_v63  ;;  %vm1583_vm6 = vcmp.eq.f32.partialorder %v5617_v11, %v5788_v17  ;;  %v5807_v45 = vld [vmem:[%s6857_s1 + $0x40] sm:$0xff] }
 0x353   :  { %v1570_v5 = vsel %vm1569_vm5, %v1565_v52, inf  ;;  %v1584_v12 = vsel %vm1583_vm6, %v1579_v28, inf  ;;  %v1818_v11 = vand.u32 4294901760, %v5807_v45 }
 0x354   :  { %1571 = vmin.xlane.f32.xlu1 %v1570_v5  ;;  %1585 = vmin.xlane.f32.xlu0 %v1584_v12 }
 0x355   :  { %v5796_v32 = vpop.xlane.xlu1 %1595  ;;  %v5798_v27 = vpop.xlane.xlu0 %1609  ;;  %v5842_v52 = vpack.c.bf16 %v1821_v53, %v1818_v11 }
 0x356   :  { %vm1597_vm7 = vcmp.eq.f32.partialorder %v5631_v56, %v5796_v32  ;;  %vm1611_vm8 = vcmp.eq.f32.partialorder %v5633_v36, %v5798_v27  ;;  %v1647_v56 = vand.u32 65535, %v5652_v8  ;;  %v1661_v36 = vand.u32 65535, %v5655_v43  ;;  %v5835_v8 = vld [vmem:[%s6857_s1 + $0x58] sm:$0xff] }
 0x357   :  { %v1598_v1 = vsel %vm1597_vm7, %v1593_v16, inf  ;;  %v1612_v57 = vsel %vm1611_vm8, %v1607_v47, inf  ;;  %v1827_v43 = vand.u32 4294901760, %v5835_v8  ;;  %6965 = vst [vmem:[#allocation10_spill] sm:$0xff] %v5842_v52  ;;  %4514 = vmatprep.subr.bf16.mxu1 %v5842_v52  ;;  %v1830_v16 = vand.u32 4294901760, %v5854_v59 }
 0x358   :  { %1599 = vmin.xlane.f32.xlu1 %v1598_v1  ;;  %1613 = vmin.xlane.f32.xlu0 %v1612_v57  ;;  %v1649_v12 = vcvt.s32.f32 %v1647_v56  ;;  %v1663_v60 = vcvt.s32.f32 %v1661_v36 }
 0x359   :  { %v5818_v2 = vpop.xlane.xlu1 %1623  ;;  %v5820_v0 = vpop.xlane.xlu0 %1637  ;;  %4516 = vmatpush3.bf16.msra.mxu1 %v5842_v52  ;;  %v5872_v57 = vpack.c.bf16 %v1827_v43, %v1824_v13 }
 0x35a   :  { %vm1625_vm9 = vcmp.eq.f32.partialorder %v5647_v21, %v5818_v2  ;;  %vm1639_vm10 = vcmp.eq.f32.partialorder %v5649_v44, %v5820_v0  ;;  %v1675_v21 = vand.u32 65535, %v5668_v3  ;;  %v1689_v44 = vand.u32 65535, %v5671_v9  ;;  %v5865_v3 = vld [vmem:[%s6857_s1 + $0x68] sm:$0xff] }
 0x35b   :  { %v1626_v22 = vsel %vm1625_vm9, %v1621_v30, inf  ;;  %v1640_v40 = vsel %vm1639_vm10, %v1635_v7, inf  ;;  %v1833_v9 = vand.u32 4294901760, %v5865_v3  ;;  %6966 = vst [vmem:[#allocation8_spill] sm:$0xff] %v5872_v57  ;;  %4518 = vmatprep.subr.bf16.mxu1 %v5872_v57 }
 0x35c   :  { %1627 = vmin.xlane.f32.xlu1 %v1626_v22  ;;  %1641 = vmin.xlane.f32.xlu0 %v1640_v40  ;;  %v1677_v30 = vcvt.s32.f32 %v1675_v21  ;;  %v1691_v7 = vcvt.s32.f32 %v1689_v44  ;;  %v5884_v22 = vld [vmem:[%s6857_s1 + $0x70] sm:$0xff] }
 0x35d   :  { %v5846_v28 = vpop.xlane.xlu1 %1651  ;;  %v5848_v5 = vpop.xlane.xlu0 %1665  ;;  %v1836_v40 = vand.u32 4294901760, %v5884_v22  ;;  %4520 = vmatpush3.bf16.msra.mxu1 %v5872_v57 }
 0x35e   :  { %vm1653_vm11 = vcmp.eq.f32.partialorder %v5663_v48, %v5846_v28  ;;  %vm1667_vm12 = vcmp.eq.f32.partialorder %v5665_v39, %v5848_v5  ;;  %v1703_v48 = vand.u32 65535, %v5684_v35  ;;  %v1717_v39 = vand.u32 65535, %v5687_v14  ;;  %v5890_v35 = vld [vmem:[%s6857_s1 + $0x78] sm:$0xff] }
 0x35f   :  { %v1654_v47 = vsel %vm1653_vm11, %v1649_v12, inf  ;;  %v1668_v1 = vsel %vm1667_vm12, %v1663_v60, inf  ;;  %v1839_v14 = vand.u32 4294901760, %v5890_v35  ;;  %v5902_v12 = vpack.c.bf16 %v1833_v9, %v1830_v16  ;;  %v4866_v60 = vld [vmem:[%s6857_s1] sm:$0xff] }
 0x360   :  { %1655 = vmin.xlane.f32.xlu1 %v1654_v47  ;;  %1669 = vmin.xlane.f32.xlu0 %v1668_v1  ;;  %v6968_v47 = vld [vmem:[#allocation5_spill] sm:$0xff]  ;;  %v1705_v38 = vcvt.s32.f32 %v1703_v48 }
 0x361   :  { %v5876_v56 = vpop.xlane.xlu1 %1679  ;;  %v5878_v36 = vpop.xlane.xlu0 %1693  ;;  %6967 = vst [vmem:[#allocation9_spill] sm:$0xff] %v5902_v12  ;;  %v6969_v1 = vand.u32 4294901760, %v6968_v47  ;;  %v1719_v47 = vcvt.s32.f32 %v1717_v39  ;;  %4522 = vmatprep.subr.bf16.mxu1 %v5902_v12  ;;  %v5934_v48 = vpack.c.bf16 %v1839_v14, %v1836_v40 }
 0x362   :  { %vm1681_vm13 = vcmp.eq.f32.partialorder %v5679_v6, %v5876_v56  ;;  %vm1695_vm14 = vcmp.eq.f32.partialorder %v5681_v31, %v5878_v36  ;;  %v4867_v31 = vld [vmem:[%s6857_s1 + $0x8] sm:$0xff]  ;;  %4524 = vmatpush3.bf16.msra.mxu1 %v5902_v12 }
 0x363   :  { %v1682_v21 = vsel %vm1681_vm13, %v1677_v30, inf  ;;  %v1696_v44 = vsel %vm1695_vm14, %v1691_v7, inf  ;;  %v5909_v6 = vsub.f32 %v4866_v60, %v6969_v1  ;;  %v6971_v30 = vld [vmem:[#allocation6_spill] sm:$0xff]  ;;  %6974 = vst [vmem:[#allocation11_spill] sm:$0xff] %v5934_v48  ;;  %4526 = vmatprep.subr.bf16.mxu1 %v5934_v48 }
 0x364   :  { %1683 = vmin.xlane.f32.xlu1 %v1682_v21  ;;  %1697 = vmin.xlane.f32.xlu0 %v1696_v44  ;;  %v6972_v7 = vand.u32 4294901760, %v6971_v30 }
 0x365   :  { %6970 = vst [vmem:[#allocation5_spill] sm:$0xff] %v5909_v6  ;;  %v5919_v61 = vpop.xlane.xlu1 %1707  ;;  %v5921_v25 = vpop.xlane.xlu0 %1721  ;;  %v6901_v21 = vand.u32 4294901760, %v5909_v6 }
 0x366   :  { %v5916_v4 = vsub.f32 %v4867_v31, %v6972_v7  ;;  %vm1709_vm15 = vcmp.eq.f32.partialorder %v5694_v10, %v5919_v61  ;;  %vm1723_vm1 = vcmp.eq.f32.partialorder %v5696_v49, %v5921_v25  ;;  %v1733_v49 = vcvt.s32.f32 %v1731_v33  ;;  %4528 = vmatpush3.bf16.msra.mxu1 %v5934_v48 }
 0x367   :  { %v1710_v44 = vsel %vm1709_vm15, %v1705_v38, inf  ;;  %v1724_v23 = vsel %vm1723_vm1, %v1719_v47, inf  ;;  %v2038_v39 = vsub.f32 %v5909_v6, %v6901_v21  ;;  %v5955_v33 = vsub.f32 %v5807_v45, %v1818_v11 }
 0x368   :  { %6973 = vst [vmem:[#allocation6_spill] sm:$0xff] %v5916_v4  ;;  %1711 = vmin.xlane.f32.xlu1 %v1710_v44  ;;  %1725 = vmin.xlane.f32.xlu0 %v1724_v23  ;;  %v6900_v10 = vand.u32 4294901760, %v5916_v4  ;;  %v5973_v45 = vsub.f32 %v5825_v42, %v1824_v13  ;;  %v5978_v11 = vsub.f32 %v5835_v8, %v1827_v43  ;;  %v1686_v21 = vcvt.f32.s32 %v5876_v56 }
 0x369   :  { %v5940_v60 = vpop.xlane.xlu1 %1735  ;;  %v2039_v38 = vand.u32 4294901760, %v2038_v39  ;;  %6975 = vst [vmem:[#allocation12_spill] sm:$0xff] %v5955_v33  ;;  %v6899_v47 = vand.u32 4294901760, %v5955_v33  ;;  %v5993_v13 = vsub.f32 %v5854_v59, %v1830_v16  ;;  %v5998_v8 = vsub.f32 %v5865_v3, %v1833_v9 }
 0x36a   :  { %vm1737_vm2 = vcmp.eq.f32.partialorder %v5704_v37, %v5940_v60  ;;  %v2045_v1 = vsub.f32 %v5916_v4, %v6900_v10  ;;  %v5960_v37 = vsub.f32 %v5813_v19, %v1821_v53  ;;  %6977 = vst [vmem:[#allocation14_spill] sm:$0xff] %v5973_v45  ;;  %6978 = vst [vmem:[#allocation15_spill] sm:$0xff] %v5978_v11  ;;  %v1728_v56 = vcvt.f32.s32 %v5921_v25 }
 0x36b   :  { %v1738_v31 = vsel %vm1737_vm2, %v1733_v49, inf  ;;  %v2094_v23 = vsub.f32 %v5955_v33, %v6899_v47  ;;  %v6897_v49 = vand.u32 4294901760, %v5973_v45  ;;  %6979 = vst [vmem:[#allocation16_spill] sm:$0xff] %v5993_v13  ;;  %6980 = vst [vmem:[#allocation17_spill] sm:$0xff] %v5998_v8  ;;  %v6010_v59 = vsub.f32 %v5884_v22, %v1836_v40 }
 0x36c   :  { %1739 = vmin.xlane.f32.xlu1 %v1738_v31  ;;  %v2046_v30 = vand.u32 4294901760, %v2045_v1  ;;  %6976 = vst [vmem:[#allocation13_spill] sm:$0xff] %v5960_v37  ;;  %v6898_v44 = vand.u32 4294901760, %v5960_v37  ;;  %v6015_v16 = vsub.f32 %v5890_v35, %v1839_v14  ;;  %v1742_v25 = vcvt.f32.s32 %v5940_v60 }
 0x36d   :  { %v2095_v19 = vand.u32 4294901760, %v2094_v23  ;;  %v2108_v31 = vsub.f32 %v5973_v45, %v6897_v49  ;;  %v6892_v23 = vand.u32 4294901760, %v5993_v13  ;;  %6981 = vst [vmem:[#allocation18_spill] sm:$0xff] %v6010_v59 }
 0x36e   :  { %v5949_v7 = vpack.c.bf16 %v2046_v30, %v2039_v38  ;;  %v2101_v39 = vsub.f32 %v5960_v37, %v6898_v44  ;;  %v6896_v38 = vand.u32 4294901760, %v5978_v11  ;;  %6982 = vst [vmem:[#allocation19_spill] sm:$0xff] %v6015_v16  ;;  %v1588_v44 = vcvt.f32.s32 %v5788_v17 }
 0x36f   :  { %v2109_v43 = vand.u32 4294901760, %v2108_v31  ;;  %v6893_v31 = vand.u32 4294901760, %v6010_v59  ;;  %v1644_v17 = vcvt.f32.s32 %v5820_v0 }
 0x370   :  { %4530 = vmatprep.subr.bf16.mxu1 %v5949_v7  ;;  %v2102_v53 = vand.u32 4294901760, %v2101_v39  ;;  %v2115_v42 = vsub.f32 %v5978_v11, %v6896_v38  ;;  %v6895_v39 = vand.u32 4294901760, %v5998_v8 }
 0x371   :  { %v2136_v22 = vsub.f32 %v6010_v59, %v6893_v31  ;;  %v6042_v31 = vpack.c.bf16 %v5978_v11, %v5973_v45 }
 0x372   :  { %v5982_v1 = vpack.c.bf16 %v2102_v53, %v2095_v19  ;;  %v2116_v30 = vand.u32 4294901760, %v2115_v42  ;;  %v2122_v53 = vsub.f32 %v5993_v13, %v6892_v23  ;;  %v2129_v3 = vsub.f32 %v5998_v8, %v6895_v39 }
 0x373   :  { %v6894_v42 = vand.u32 4294901760, %v6015_v16  ;;  %v2137_v14 = vand.u32 4294901760, %v2136_v22  ;;  %v1532_v22 = vcvt.f32.s32 %v5770_v62  ;;  %v6983_v39 = vand.u32 4294901760, %v5716_v41 }
 0x374   :  { %v6002_v19 = vpack.c.bf16 %v2116_v30, %v2109_v43  ;;  %v2123_v9 = vand.u32 4294901760, %v2122_v53  ;;  %v2130_v43 = vand.u32 4294901760, %v2129_v3  ;;  %v6034_v53 = vpack.c.bf16 %v5916_v4, %v5909_v6 }
 0x375   :  { %v2143_v40 = vsub.f32 %v6015_v16, %v6894_v42  ;;  %v6038_v3 = vpack.c.bf16 %v5960_v37, %v5955_v33  ;;  %v6059_v42 = vsub.f32 %v5710_v29, %v1800_v55  ;;  %v6064_v38 = vsub.f32 %v5716_v41, %v6983_v39 }
 0x376   :  { %v6028_v35 = vpack.c.bf16 %v2130_v43, %v2123_v9  ;;  %v6046_v9 = vpack.c.bf16 %v5998_v8, %v5993_v13  ;;  %v6050_v43 = vpack.c.bf16 %v6015_v16, %v6010_v59  ;;  %v1533_v49 = vshll.u32 %v1532_v22, 16 }
 0x377   :  { %v2144_v30 = vand.u32 4294901760, %v2143_v40  ;;  %v1546_v40 = vcvt.f32.s32 %v5776_v46  ;;  %v1602_v62 = vcvt.f32.s32 %v5796_v32  ;;  %v1616_v46 = vcvt.f32.s32 %v5798_v27 }
 0x378   :  { %v6985_v29 = vand.u32 4294901760, %v5728_v58  ;;  %v1658_v32 = vcvt.f32.s32 %v5846_v28  ;;  %v1672_v27 = vcvt.f32.s32 %v5848_v5  ;;  %v6109_v5 = vshll.u32 %v1686_v21, 16 }
 0x379   :  { %v6030_v23 = vpack.c.bf16 %v2144_v30, %v2137_v14  ;;  %v1560_v14 = vcvt.f32.s32 %v5778_v34  ;;  %v1574_v30 = vcvt.f32.s32 %v5786_v63  ;;  %v1630_v34 = vcvt.f32.s32 %v5818_v2 }
 0x37a   :  { %v6984_v63 = vand.u32 4294901760, %v5722_v15  ;;  %v6078_v55 = vsub.f32 %v5728_v58, %v6985_v29  ;;  %v1547_v41 = vshll.u32 %v1546_v40, 16  ;;  %v6902_v2 = vand.u32 4294901760, %v6059_v42 }
 0x37b   :  { %v1561_v39 = vshll.u32 %v1560_v14, 16  ;;  %v1575_v22 = vshll.u32 %v1574_v30, 16  ;;  %v1700_v58 = vcvt.f32.s32 %v5878_v36  ;;  %v6089_v40 = vshll.u32 %v1616_v46, 16 }
 0x37c   :  { %v6073_v47 = vsub.f32 %v5722_v15, %v6984_v63  ;;  %v1589_v15 = vshll.u32 %v1588_v44, 16  ;;  %v6085_v63 = vshll.u32 %v1602_v62, 16  ;;  %v6091_v14 = vshll.u32 %v1630_v34, 16 }
 0x37d   :  { %v6095_v30 = vshll.u32 %v1644_v17, 16  ;;  %v6097_v29 = vshll.u32 %v1658_v32, 16  ;;  %v1714_v44 = vcvt.f32.s32 %v5919_v61  ;;  %v6100_v10 = vshll.u32 %v1672_v27, 16 }
 0x37e   :  { %v2052_v36 = vsub.f32 %v6059_v42, %v6902_v2  ;;  %v6986_v46 = vand.u32 4294901760, %v6064_v38  ;;  %v6111_v17 = vshll.u32 %v1700_v58, 16  ;;  %v6987_v61 = vand.u32 4294901760, %v5734_v24 }
 0x37f   :  { %v6988_v2 = vand.u32 4294901760, %v6073_v47  ;;  %v6989_v21 = vand.u32 4294901760, %v6078_v55  ;;  %v6910_v59 = vmov 0.0  }
 0x380   :  { %v2059_v34 = vsub.f32 %v6064_v38, %v6986_v46  ;;  %v6118_v27 = vsub.f32 %v5734_v24, %v6987_v61  ;;  %v6132_v46 = vshll.u32 %v1714_v44, 16  ;;  %v6136_v61 = vshll.u32 %v1728_v56, 16 }
 0x381   :  { %v2066_v16 = vsub.f32 %v6073_v47, %v6988_v2  ;;  %v2073_v58 = vsub.f32 %v6078_v55, %v6989_v21  ;;  %v2053_v21 = vand.u32 4294901760, %v2052_v36 }
 0x382   :  { %v2060_v8 = vand.u32 4294901760, %v2059_v34 }
 0x383   :  { %v2067_v11 = vand.u32 4294901760, %v2066_v16  ;;  %v2074_v45 = vand.u32 4294901760, %v2073_v58 }
 0x3d9   :  { %v1530_v0 = vpop.xlane.xlu0 %1529 }
 0x3da   :  { %v1531_v62 = vcvt.f32.s32 %v1530_v0 }
 0x3dc   :  { %v6113_v32 = vadd.s32 %v1533_v49, %v1531_v62  ;;  %v6990_v49 = vand.u32 4294901760, %v5740_v26 }
 0x3dd   :  { %v1544_v0 = vpop.xlane.xlu1 %1543  ;;  %v1558_v28 = vpop.xlane.xlu0 %1557 }
 0x3de   :  { %v6130_v62 = vsub.f32 %v5740_v26, %v6990_v49  ;;  %vm1745_vm3 = vcmp.eq.s32.totalorder %v5577_v20, %v6113_v32  ;;  %v1545_v24 = vcvt.f32.s32 %v1544_v0  ;;  %v1559_v60 = vcvt.f32.s32 %v1558_v28 }
 0x3df   :  { %v3185_v2 = vsel %vm1745_vm3, 1.0, %v6910_v59  ;;  %v6912_v49 = vand.u32 4294901760, %v6118_v27  ;;  %v6149_v0 = vshll.u32 %v1742_v25, 16  ;;  %v6165_v25 = vpack.c.bf16 %v2060_v8, %v2053_v21 }
 0x3e0   :  { %v6142_v13 = vsub.f32 %v3185_v2, %v3185_v2  ;;  %v6144_v26 = vadd.s32 %v1547_v41, %v1545_v24  ;;  %v6146_v44 = vadd.s32 %v1561_v39, %v1559_v60  ;;  %v6181_v8 = vpack.c.bf16 %v2074_v45, %v2067_v11 }
 0x3e1   :  { %v1572_v28 = vpop.xlane.xlu1 %1571  ;;  %v1586_v56 = vpop.xlane.xlu0 %1585  ;;  %v2080_v2 = vsub.f32 %v6118_v27, %v6912_v49  ;;  %v6991_v21 = vand.u32 4294901760, %v6130_v62 }
 0x3e2   :  { %vm1746_vm4 = vcmp.eq.s32.totalorder %v5577_v20, %v6144_v26  ;;  %vm1747_vm5 = vcmp.eq.s32.totalorder %v5577_v20, %v6146_v44  ;;  %v1573_v41 = vcvt.f32.s32 %v1572_v28  ;;  %v1587_v36 = vcvt.f32.s32 %v1586_v56 }
 0x3e3   :  { %v3186_v39 = vsel %vm1746_vm4, 1.0, %v6910_v59  ;;  %v3187_v16 = vsel %vm1747_vm5, 1.0, %v6910_v59  ;;  %v6913_v34 = vand.u32 4294901760, %v6142_v13 }
 0x3e4   :  { %v6167_v58 = vsub.f32 %v3186_v39, %v3186_v39  ;;  %v6169_v24 = vadd.s32 %v1575_v22, %v1573_v41  ;;  %v6171_v60 = vadd.s32 %v1589_v15, %v1587_v36  ;;  %v6176_v28 = vsub.f32 %v3187_v16, %v3187_v16 }
 0x3e5   :  { %v1600_v56 = vpop.xlane.xlu1 %1599  ;;  %v1614_v37 = vpop.xlane.xlu0 %1613  ;;  %v1877_v59 = vsub.f32 %v6142_v13, %v6913_v34  ;;  %v2087_v22 = vsub.f32 %v6130_v62, %v6991_v21  ;;  %v6992_v36 = vmov 0.0   ;;  %v2081_v34 = vand.u32 4294901760, %v2080_v2 }
 0x3e6   :  { %v6920_v15 = vand.u32 4294901760, %v6167_v58  ;;  %vm1748_vm6 = vcmp.eq.s32.totalorder %v5577_v20, %v6169_v24  ;;  %vm1749_vm7 = vcmp.eq.s32.totalorder %v5577_v20, %v6171_v60  ;;  %v1601_v41 = vcvt.f32.s32 %v1600_v56  ;;  %v4870_v60 = vld [vmem:[%s6856_s0 + $0x18] sm:$0xff] }
 0x3e7   :  { %v3188_v39 = vsel %vm1748_vm6, 1.0, %v6992_v36  ;;  %v3189_v45 = vsel %vm1749_vm7, 1.0, %v6992_v36  ;;  %v1615_v11 = vcvt.f32.s32 %v1614_v37  ;;  %v1878_v16 = vand.u32 4294901760, %v1877_v59 }
 0x3e8   :  { %v6199_v21 = vsub.f32 %v3188_v39, %v3188_v39  ;;  %v6202_v49 = vadd.s32 %v6085_v63, %v1601_v41  ;;  %v1887_v56 = vsub.f32 %v6167_v58, %v6920_v15  ;;  %v6207_v33 = vsub.f32 %v3189_v45, %v3189_v45 }
 0x3e9   :  { %v6210_v4 = vadd.s32 %v6089_v40, %v1615_v11  ;;  %4001 = vmatprep.mubr.f32.mxu1 %v1878_v16  ;;  %v1628_v6 = vpop.xlane.xlu1 %1627  ;;  %v1642_v48 = vpop.xlane.xlu0 %1641  ;;  %v6919_v37 = vand.u32 4294901760, %v6176_v28  ;;  %v2088_v59 = vand.u32 4294901760, %v2087_v22 }
 0x3ea   :  { %vm1750_vm8 = vcmp.eq.s32.totalorder %v5577_v20, %v6202_v49  ;;  %v1629_v63 = vcvt.f32.s32 %v1628_v6  ;;  %v1643_v41 = vcvt.f32.s32 %v1642_v48  ;;  %v1888_v39 = vand.u32 4294901760, %v1887_v56 }
 0x3eb   :  { %v3190_v2 = vsel %vm1750_vm8, 1.0, %v6992_v36  ;;  %vm1751_vm9 = vcmp.eq.s32.totalorder %v5577_v20, %v6210_v4  ;;  %v1897_v40 = vsub.f32 %v6176_v28, %v6919_v37  ;;  %v6923_v22 = vand.u32 4294901760, %v6199_v21  ;;  %v4868_v4 = vld [vmem:[%s6856_s0 + $0x8] sm:$0xff] }
 0x3ec   :  { %v6225_v45 = vsub.f32 %v3190_v2, %v3190_v2  ;;  %v3191_v6 = vsel %vm1751_vm9, 1.0, %v6992_v36  ;;  %v6232_v48 = vadd.s32 %v6091_v14, %v1629_v63  ;;  %v6235_v11 = vadd.s32 %v6095_v30, %v1643_v41  ;;  %4002 = vmatmul.mubr.f32.vlgmr.msra.gmra.mrb[16].mxu1 %v1888_v39 }
 0x3ed   :  { %v6237_v16 = vsub.f32 %v3191_v6, %v3191_v6  ;;  %4532 = vmatpush3.bf16.msra.mxu1 %v5949_v7  ;;  %v1656_v56 = vpop.xlane.xlu1 %1655  ;;  %v1898_v37 = vand.u32 4294901760, %v1897_v40  ;;  %v1670_v2 = vpop.xlane.xlu0 %1669  ;;  %v1907_v15 = vsub.f32 %v6199_v21, %v6923_v22  ;;  %v6931_v12 = vand.u32 4294901760, %v6207_v33 }
 0x3ee   :  { %vm1752_vm10 = vcmp.eq.s32.totalorder %v5577_v20, %v6232_v48  ;;  %vm1753_vm11 = vcmp.eq.s32.totalorder %v5577_v20, %v6235_v11  ;;  %v1657_v14 = vcvt.f32.s32 %v1656_v56  ;;  %v1671_v30 = vcvt.f32.s32 %v1670_v2  ;;  %4534 = vmatprep.subr.bf16.mxu1 %v6165_v25 }
 0x3ef   :  { %v3192_v7 = vsel %vm1752_vm10, 1.0, %v6992_v36  ;;  %v3193_v63 = vsel %vm1753_vm11, 1.0, %v6992_v36  ;;  %4004 = vmatprep.mubr.f32.mxu1 %v1898_v37  ;;  %v1908_v41 = vand.u32 4294901760, %v1907_v15  ;;  %v1917_v39 = vsub.f32 %v6207_v33, %v6931_v12 }
 0x3f0   :  { %v6260_v40 = vsub.f32 %v3192_v7, %v3192_v7  ;;  %v6263_v6 = vadd.s32 %v6097_v29, %v1657_v14  ;;  %v6266_v56 = vadd.s32 %v6100_v10, %v1671_v30  ;;  %v4541_v2 = vpack.c.bf16 %v2088_v59, %v2081_v34 }
 0x3f1   :  { %v6268_v22 = vsub.f32 %v3193_v63, %v3193_v63  ;;  %4005 = vmatmul.mubr.f32.gmra.mrb[18].mxu1 %v1908_v41  ;;  %v1684_v57 = vpop.xlane.xlu1 %1683  ;;  %v1918_v52 = vand.u32 4294901760, %v1917_v39  ;;  %v1698_v37 = vpop.xlane.xlu0 %1697  ;;  %v6930_v15 = vand.u32 4294901760, %v6225_v45  ;;  %v6932_v54 = vand.u32 4294901760, %v6237_v16 }
 0x3f2   :  { %6993 = vst [vmem:[#allocation20_spill] sm:$0xff] %v6260_v40  ;;  %vm1754_vm12 = vcmp.eq.s32.totalorder %v5577_v20, %v6263_v6  ;;  %vm1755_vm13 = vcmp.eq.s32.totalorder %v5577_v20, %v6266_v56  ;;  %4536 = vmatpush3.bf16.msra.mxu1 %v6165_v25  ;;  %v1685_v10 = vcvt.f32.s32 %v1684_v57  ;;  %v1699_v29 = vcvt.f32.s32 %v1698_v37  ;;  %v4871_v56 = vld [vmem:[%s6856_s0 + $0x10] sm:$0xff] }
 0x3f3   :  { %v3194_v34 = vsel %vm1754_vm12, 1.0, %v6992_v36  ;;  %v3195_v59 = vsel %vm1755_vm13, 1.0, %v6992_v36  ;;  %4007 = vmatprep.mubr.f32.mxu1 %v1918_v52  ;;  %4538 = vmatprep.subr.bf16.mxu1 %v6181_v8  ;;  %v1927_v14 = vsub.f32 %v6225_v45, %v6930_v15  ;;  %v1937_v57 = vsub.f32 %v6237_v16, %v6932_v54 }
 0x3f4   :  { %v6292_v25 = vsub.f32 %v3194_v34, %v3194_v34  ;;  %v6294_v30 = vsub.f32 %v3195_v59, %v3195_v59  ;;  %v6297_v7 = vadd.s32 %v6109_v5, %v1685_v10  ;;  %v6300_v63 = vadd.s32 %v6111_v17, %v1699_v29 }
 0x3f5   :  { %v1928_v52 = vand.u32 4294901760, %v1927_v14  ;;  %v1712_v41 = vpop.xlane.xlu1 %1711  ;;  %v1938_v39 = vand.u32 4294901760, %v1937_v57  ;;  %v1726_v37 = vpop.xlane.xlu0 %1725  ;;  %v6933_v15 = vand.u32 4294901760, %v6260_v40  ;;  %v1956_v12 = vand.u32 4294901760, %v6268_v22 }
 0x3f6   :  { %vm1756_vm14 = vcmp.eq.s32.totalorder %v5577_v20, %v6297_v7  ;;  %vm1757_vm15 = vcmp.eq.s32.totalorder %v5577_v20, %v6300_v63  ;;  %4540 = vmatpush3.bf16.msra.mxu1 %v6181_v8  ;;  %v1713_v5 = vcvt.f32.s32 %v1712_v41  ;;  %v1727_v10 = vcvt.f32.s32 %v1726_v37 }
 0x3f7   :  { %v3196_v17 = vsel %vm1756_vm14, 1.0, %v6992_v36  ;;  %v3197_v29 = vsel %vm1757_vm15, 1.0, %v6992_v36  ;;  %4008 = vmatmul.mubr.f32.gmra.mrb[20].mxu1 %v1928_v52  ;;  %4542 = vmatprep.subr.bf16.mxu1 %v4541_v2  ;;  %v1947_v34 = vsub.f32 %v6260_v40, %v6933_v15  ;;  %v1957_v8 = vsub.f32 %v6268_v22, %v1956_v12 }
 0x3f8   :  { %v6323_v59 = vsub.f32 %v3196_v17, %v3196_v17  ;;  %v6325_v14 = vsub.f32 %v3197_v29, %v3197_v29  ;;  %v6328_v57 = vadd.s32 %v6132_v46, %v1713_v5  ;;  %4010 = vmatprep.mubr.f32.mxu1 %v1938_v39  ;;  %v6331_v41 = vadd.s32 %v6136_v61, %v1727_v10 }
 0x3f9   :  { %v1948_v52 = vand.u32 4294901760, %v1947_v34  ;;  %v1740_v37 = vpop.xlane.xlu1 %1739  ;;  %v1958_v54 = vand.u32 4294901760, %v1957_v8  ;;  %v6936_v15 = vand.u32 4294901760, %v6292_v25  ;;  %v1976_v40 = vand.u32 4294901760, %v6294_v30 }
 0x3fa   :  { %vm1758_vm1 = vcmp.eq.s32.totalorder %v5577_v20, %v6328_v57  ;;  %vm1759_vm2 = vcmp.eq.s32.totalorder %v5577_v20, %v6331_v41  ;;  %4544 = vmatpush3.bf16.msra.mxu1 %v4541_v2  ;;  %v1741_v46 = vcvt.f32.s32 %v1740_v37  ;;  %v1986_v39 = vand.u32 4294901760, %v6323_v59  ;;  %v4872_v57 = vld [vmem:[%s6856_s0 + $0x28] sm:$0xff] }
 0x3fb   :  { %v3198_v61 = vsel %vm1758_vm1, 1.0, %v6992_v36  ;;  %v3199_v5 = vsel %vm1759_vm2, 1.0, %v6992_v36  ;;  %4011 = vmatmul.mubr.f32.gmra.mrb[22].mxu1 %v1948_v52  ;;  %4546 = vmatprep.subr.bf16.mxu1 %v5982_v1  ;;  %v1967_v2 = vsub.f32 %v6292_v25, %v6936_v15  ;;  %v1977_v10 = vsub.f32 %v6294_v30, %v1976_v40 }
 0x3fc   :  { %v6355_v17 = vsub.f32 %v3198_v61, %v3198_v61  ;;  %v6357_v29 = vsub.f32 %v3199_v5, %v3199_v5  ;;  %v6360_v34 = vadd.s32 %v6149_v0, %v1741_v46  ;;  %4013 = vmatprep.mubr.f32.mxu1 %v1958_v54  ;;  %v1987_v8 = vsub.f32 %v6323_v59, %v1986_v39 }
 0x3fd   :  { %v1968_v52 = vand.u32 4294901760, %v1967_v2  ;;  %v1978_v37 = vand.u32 4294901760, %v1977_v10  ;;  %v1996_v15 = vand.u32 4294901760, %v6325_v14 }
 0x3fe   :  { %vm1760_vm0 = vcmp.eq.s32.totalorder %v5577_v20, %v6360_v34  ;;  %4548 = vmatpush3.bf16.msra.mxu1 %v5982_v1  ;;  %v2006_v61 = vand.u32 4294901760, %v6355_v17  ;;  %v2016_v5 = vand.u32 4294901760, %v6357_v29  ;;  %v1988_v0 = vand.u32 4294901760, %v1987_v8  ;;  %v4869_v20 = vld [vmem:[%s6856_s0] sm:$0xff] }
 0x3ff   :  { %v3200_v54 = vsel %vm1760_vm0, 1.0, %v6992_v36  ;;  %4014 = vmatmul.mubr.f32.gmra.mrb[24].mxu1 %v1968_v52  ;;  %4550 = vmatprep.subr.bf16.mxu1 %v6002_v19  ;;  %v1997_v46 = vsub.f32 %v6325_v14, %v1996_v15 }
 0x400   :  { %v6379_v2 = vsub.f32 %v3200_v54, %v3200_v54  ;;  %4016 = vmatprep.mubr.f32.mxu1 %v1978_v37  ;;  %v2007_v1 = vsub.f32 %v6355_v17, %v2006_v61  ;;  %v2017_v10 = vsub.f32 %v6357_v29, %v2016_v5 }
 0x401   :  { %v1998_v36 = vand.u32 4294901760, %v1997_v46 }
 0x402   :  { %4552 = vmatpush3.bf16.msra.mxu1 %v6002_v19  ;;  %v2026_v8 = vand.u32 4294901760, %v6379_v2  ;;  %v2008_v52 = vand.u32 4294901760, %v2007_v1  ;;  %v2018_v54 = vand.u32 4294901760, %v2017_v10  ;;  %v6938_v19 = vmov 1.0   ;;  %v6999_v1 = vld [vmem:[#allocation11_spill] sm:$0xff]  ;;  %v7000_v10 = vld [vmem:[#allocation5_spill] sm:$0xff] }
 0x403   :  { %4017 = vmatmul.mubr.f32.gmra.mrb[26].mxu1 %v1988_v0  ;;  %4554 = vmatprep.subr.bf16.mxu1 %v6028_v35  ;;  %v4565_v0 = vpack.c.bf16 %v6064_v38, %v6059_v42 }
 0x404   :  { %4019 = vmatprep.mubr.f32.mxu1 %v1998_v36  ;;  %v2027_v37 = vsub.f32 %v6379_v2, %v2026_v8  ;;  %v7001_v36 = vand.u32 4294901760, %v7000_v10  ;;  %v7008_v10 = vand.u32 4294901760, %v6176_v28 }
 0x406   :  { %4556 = vmatpush3.bf16.msra.mxu1 %v6028_v35  ;;  %v2028_v46 = vand.u32 4294901760, %v2027_v37  ;;  %v4573_v35 = vpack.c.bf16 %v6130_v62, %v6118_v27 }
 0x407   :  { %4020 = vmatmul.mubr.f32.gmra.mrb[28].mxu1 %v2008_v52  ;;  %4558 = vmatprep.subr.bf16.mxu1 %v6030_v23  ;;  %v7002_v52 = vld [vmem:[#allocation6_spill] sm:$0xff] }
 0x408   :  { %4022 = vmatprep.mubr.f32.mxu1 %v2018_v54  ;;  %v7003_v54 = vand.u32 4294901760, %v7002_v52  ;;  %v7010_v52 = vand.u32 4294901760, %v6078_v55 }
 0x40a   :  { %4560 = vmatpush3.bf16.msra.mxu1 %v6030_v23  ;;  %v4569_v23 = vpack.c.bf16 %v6078_v55, %v6073_v47  ;;  %v4625_v37 = vpack.c.bf16 %v7003_v54, %v7001_v36  ;;  %v7009_v36 = vand.u32 4294901760, %v6073_v47  ;;  %v7011_v54 = vand.u32 4294901760, %v6199_v21  ;;  %v7017_v55 = vld [vmem:[#allocation12_spill] sm:$0xff] }
 0x40b   :  { %4023 = vmatmul.mubr.f32.gmra.mrb[30].mxu1 %v2028_v46  ;;  %4562 = vmatprep.subr.bf16.mxu1 %v6034_v53  ;;  %v7004_v46 = vand.u32 4294901760, %v6142_v13  ;;  %v7016_v47 = vand.u32 4294901760, %v6237_v16 }
 0x40c   :  { %4057 = vmatprep.mubr.msk.f32.mxu1 %vm1745_vm3, %v6938_v19 }
 0x40f   :  { %4058 = vmatmul.mubr.msk.f32.vlgmr.msra.gmra.mrb[16].mxu1 %vm1746_vm4, %v6938_v19 }
 0x410   :  { %4564 = vmatpush3.bf16.msra.mxu1 %v6034_v53  ;;  %4060 = vmatprep.mubr.msk.f32.mxu1 %vm1747_vm5, %v6938_v19  ;;  %v6995_v53 = vld [vmem:[#allocation20_spill] sm:$0xff] }
 0x411   :  { %4566 = vmatprep.subr.bf16.mxu1 %v4565_v0 }
 0x413   :  { %4061 = vmatmul.mubr.msk.f32.gmra.mrb[18].mxu1 %vm1748_vm6, %v6938_v19 }
 0x414   :  { %4568 = vmatpush3.bf16.msra.mxu1 %v4565_v0  ;;  %4063 = vmatprep.mubr.msk.f32.mxu1 %vm1749_vm7, %v6938_v19  ;;  %v7005_v0 = vand.u32 4294901760, %v6059_v42  ;;  %v7013_v42 = vand.u32 4294901760, %v6118_v27  ;;  %v7022_v27 = vld [vmem:[#allocation14_spill] sm:$0xff] }
 0x415   :  { %4570 = vmatprep.subr.bf16.mxu1 %v4569_v23 }
 0x417   :  { %4064 = vmatmul.mubr.msk.f32.gmra.mrb[20].mxu1 %vm1750_vm8, %v6938_v19 }
 0x418   :  { %4572 = vmatpush3.bf16.msra.mxu1 %v4569_v23  ;;  %4066 = vmatprep.mubr.msk.f32.mxu1 %vm1751_vm9, %v6938_v19  ;;  %v7006_v23 = vand.u32 4294901760, %v6064_v38  ;;  %v7012_v38 = vand.u32 4294901760, %v6207_v33 }
 0x419   :  { %4574 = vmatprep.subr.bf16.mxu1 %v4573_v35 }
 0x41b   :  { %4067 = vmatmul.mubr.msk.f32.gmra.mrb[22].mxu1 %vm1752_vm10, %v6938_v19 }
 0x41c   :  { %4576 = vmatpush3.bf16.msra.mxu1 %v4573_v35  ;;  %4069 = vmatprep.mubr.msk.f32.mxu1 %vm1753_vm11, %v6938_v19  ;;  %v4629_v35 = vpack.c.bf16 %v7006_v23, %v7005_v0  ;;  %v7021_v0 = vand.u32 4294901760, %v6995_v53 }
 0x41d   :  { %4578 = vmatprep.subr.bf16.mxu1 %v6038_v3 }
 0x41f   :  { %4070 = vmatmul.mubr.msk.f32.gmra.mrb[24].mxu1 %vm1754_vm12, %v6938_v19 }
 0x420   :  { %4580 = vmatpush3.bf16.msra.mxu1 %v6038_v3  ;;  %4072 = vmatprep.mubr.msk.f32.mxu1 %vm1755_vm13, %v6938_v19  ;;  %v6996_v3 = vld [vmem:[#allocation10_spill] sm:$0xff] }
 0x421   :  { %4582 = vmatprep.subr.bf16.mxu1 %v6042_v31 }
 0x423   :  { %4073 = vmatmul.mubr.msk.f32.gmra.mrb[26].mxu1 %vm1756_vm14, %v6938_v19 }
 0x424   :  { %4584 = vmatpush3.bf16.msra.mxu1 %v6042_v31  ;;  %4075 = vmatprep.mubr.msk.f32.mxu1 %vm1757_vm15, %v6938_v19  ;;  %v6994_v31 = vld [vmem:[#allocation7_spill] sm:$0xff] }
 0x425   :  { %4586 = vmatprep.subr.bf16.mxu1 %v6046_v9 }
 0x427   :  { %4076 = vmatmul.mubr.msk.f32.gmra.mrb[28].mxu1 %vm1758_vm1, %v6938_v19 }
 0x428   :  { %4588 = vmatpush3.bf16.msra.mxu1 %v6046_v9  ;;  %4078 = vmatprep.mubr.msk.f32.mxu1 %vm1759_vm2, %v6938_v19  ;;  %v6997_v9 = vld [vmem:[#allocation8_spill] sm:$0xff] }
 0x429   :  { %4590 = vmatprep.subr.bf16.mxu1 %v6050_v43 }
 0x42b   :  { %4079 = vmatmul.mubr.msk.f32.gmra.mrb[30].mxu1 %vm1760_vm0, %v6938_v19  ;;  %v7007_v19 = vand.u32 4294901760, %v6167_v58 }
 0x42c   :  { %4592 = vmatpush3.bf16.msra.mxu1 %v6050_v43  ;;  %4113 = vmatprep.mubr.f32.mxu1 %v6142_v13  ;;  %v6998_v43 = vld [vmem:[#allocation9_spill] sm:$0xff]  ;;  %v4633_v13 = vpack.c.bf16 %v7010_v52, %v7009_v36 }
 0x42d   :  { %4594 = vmatprep.subr.bf16.mxu1 %v5181_v51  ;;  %v7029_v36 = vld [vmem:[#allocation17_spill] sm:$0xff] }
 0x42e   :  { %v7030_v52 = vand.u32 4294901760, %v7029_v36 }
 0x42f   :  { %4114 = vmatmul.mubr.f32.vlgmr.msra.gmra.mrb[16].mxu1 %v6167_v58  ;;  %v7014_v58 = vand.u32 4294901760, %v6130_v62  ;;  %v7023_v62 = vand.u32 4294901760, %v7022_v27 }
 0x430   :  { %4596 = vmatpush3.bf16.msra.mxu1 %v5181_v51  ;;  %4116 = vmatprep.mubr.f32.mxu1 %v6176_v28 }
 0x431   :  { %4598 = vmatprep.subr.bf16.mxu1 %v5747_v50  ;;  %v4637_v28 = vpack.c.bf16 %v7014_v58, %v7013_v42  ;;  %v4875_v42 = vld [vmem:[%s6856_s0 + $0x30] sm:$0xff] }
 0x433   :  { %4117 = vmatmul.mubr.f32.gmra.mrb[18].mxu1 %v6199_v21  ;;  %v7018_v21 = vand.u32 4294901760, %v7017_v55 }
 0x434   :  { %4600 = vmatpush3.bf16.msra.mxu1 %v5747_v50  ;;  %4119 = vmatprep.mubr.f32.mxu1 %v6207_v33 }
 0x435   :  { %4602 = vmatprep.subr.bf16.mxu1 %v5753_v18 }
 0x437   :  { %4120 = vmatmul.mubr.f32.gmra.mrb[20].mxu1 %v6225_v45 }
 0x438   :  { %4604 = vmatpush3.bf16.msra.mxu1 %v5753_v18  ;;  %4122 = vmatprep.mubr.f32.mxu1 %v6237_v16 }
 0x439   :  { %4606 = vmatprep.subr.bf16.mxu1 %v6994_v31 }
 0x43b   :  { %4123 = vmatmul.mubr.f32.gmra.mrb[22].mxu1 %v6995_v53  ;;  %v7027_v53 = vld [vmem:[#allocation16_spill] sm:$0xff] }
 0x43c   :  { %4608 = vmatpush3.bf16.msra.mxu1 %v6994_v31  ;;  %4125 = vmatprep.mubr.f32.mxu1 %v6268_v22 }
 0x43d   :  { %4610 = vmatprep.subr.bf16.mxu1 %v6996_v3 }
 0x43f   :  { %4126 = vmatmul.mubr.f32.gmra.mrb[24].mxu1 %v6292_v25 }
 0x440   :  { %4612 = vmatpush3.bf16.msra.mxu1 %v6996_v3  ;;  %4128 = vmatprep.mubr.f32.mxu1 %v6294_v30 }
 0x441   :  { %4614 = vmatprep.subr.bf16.mxu1 %v6997_v9 }
 0x443   :  { %4129 = vmatmul.mubr.f32.gmra.mrb[26].mxu1 %v6323_v59 }
 0x444   :  { %4616 = vmatpush3.bf16.msra.mxu1 %v6997_v9  ;;  %4131 = vmatprep.mubr.f32.mxu1 %v6325_v14 }
 0x445   :  { %4618 = vmatprep.subr.bf16.mxu1 %v6998_v43 }
 0x447   :  { %4132 = vmatmul.mubr.f32.gmra.mrb[28].mxu1 %v6355_v17 }
 0x448   :  { %4620 = vmatpush3.bf16.msra.mxu1 %v6998_v43  ;;  %4134 = vmatprep.mubr.f32.mxu1 %v6357_v29  ;;  %v4873_v29 = vld [vmem:[%s6856_s0 + $0x20] sm:$0xff] }
 0x449   :  { %4622 = vmatprep.subr.bf16.mxu1 %v6999_v1 }
 0x44b   :  { %4135 = vmatmul.mubr.f32.gmra.mrb[30].mxu1 %v6379_v2 }
 0x44c   :  { %4624 = vmatpush3.bf16.msra.mxu1 %v6999_v1  ;;  %4169 = vmatprep.mubr.f32.mxu1 %v7004_v46 }
 0x44d   :  { %4626 = vmatprep.subr.bf16.mxu1 %v4625_v37 }
 0x44f   :  { %4170 = vmatmul.mubr.f32.vlgmr.msra.gmra.mrb[16].mxu1 %v7007_v19  ;;  %v7015_v19 = vand.u32 4294901760, %v6225_v45  ;;  %v7024_v45 = vld [vmem:[#allocation15_spill] sm:$0xff] }
 0x450   :  { %4628 = vmatpush3.bf16.msra.mxu1 %v4625_v37  ;;  %4172 = vmatprep.mubr.f32.mxu1 %v7008_v10  ;;  %v7019_v37 = vld [vmem:[#allocation13_spill] sm:$0xff]  ;;  %v7025_v23 = vand.u32 4294901760, %v7024_v45  ;;  %v7028_v10 = vand.u32 4294901760, %v7027_v53 }
 0x451   :  { %4630 = vmatprep.subr.bf16.mxu1 %v4629_v35  ;;  %v7020_v46 = vand.u32 4294901760, %v7019_v37 }
 0x452   :  { %v4645_v16 = vpack.c.bf16 %v7025_v23, %v7023_v62  ;;  %v4649_v22 = vpack.c.bf16 %v7030_v52, %v7028_v10  ;;  %v4877_v62 = vld [vmem:[%s6856_s0 + $0x40] sm:$0xff]  ;;  %v4878_v52 = vld [vmem:[%s6856_s0 + $0x58] sm:$0xff] }
 0x453   :  { %4173 = vmatmul.mubr.f32.gmra.mrb[18].mxu1 %v7011_v54  ;;  %v4641_v33 = vpack.c.bf16 %v7020_v46, %v7018_v21  ;;  %v4876_v46 = vld [vmem:[%s6856_s0 + $0x48] sm:$0xff] }
 0x454   :  { %4632 = vmatpush3.bf16.msra.mxu1 %v4629_v35  ;;  %4175 = vmatprep.mubr.f32.mxu1 %v7012_v38  ;;  %v7026_v35 = vand.u32 4294901760, %v6292_v25 }
 0x455   :  { %4634 = vmatprep.subr.bf16.mxu1 %v4633_v13 }
 0x457   :  { %4176 = vmatmul.mubr.f32.gmra.mrb[20].mxu1 %v7015_v19 }
 0x458   :  { %4636 = vmatpush3.bf16.msra.mxu1 %v4633_v13  ;;  %4178 = vmatprep.mubr.f32.mxu1 %v7016_v47  ;;  %v7033_v13 = vld [vmem:[#allocation19_spill] sm:$0xff] }
 0x459   :  { %4638 = vmatprep.subr.bf16.mxu1 %v4637_v28  ;;  %v7034_v54 = vand.u32 4294901760, %v7033_v13  ;;  %v4879_v13 = vld [vmem:[%s6856_s0 + $0x50] sm:$0xff] }
 0x45b   :  { %4179 = vmatmul.mubr.f32.gmra.mrb[22].mxu1 %v7021_v0 }
 0x45c   :  { %4640 = vmatpush3.bf16.msra.mxu1 %v4637_v28  ;;  %4181 = vmatprep.mubr.f32.mxu1 %v1956_v12  ;;  %v7031_v12 = vld [vmem:[#allocation18_spill] sm:$0xff] }
 0x45d   :  { %4642 = vmatprep.subr.bf16.mxu1 %v4641_v33  ;;  %v7032_v25 = vand.u32 4294901760, %v7031_v12 }
 0x45f   :  { %4182 = vmatmul.mubr.f32.gmra.mrb[24].mxu1 %v7026_v35  ;;  %v4653_v30 = vpack.c.bf16 %v7034_v54, %v7032_v25 }
 0x460   :  { %4644 = vmatpush3.bf16.msra.mxu1 %v4641_v33  ;;  %4184 = vmatprep.mubr.f32.mxu1 %v1976_v40  ;;  %v7035_v40 = vmov 1.0  }
 0x461   :  { %4646 = vmatprep.subr.bf16.mxu1 %v4645_v16 }
 0x463   :  { %4185 = vmatmul.mubr.f32.gmra.mrb[26].mxu1 %v1986_v39 }
 0x464   :  { %4648 = vmatpush3.bf16.msra.mxu1 %v4645_v16  ;;  %4187 = vmatprep.mubr.f32.mxu1 %v1996_v15 }
 0x465   :  { %4650 = vmatprep.subr.bf16.mxu1 %v4649_v22 }
 0x467   :  { %4188 = vmatmul.mubr.f32.gmra.mrb[28].mxu1 %v2006_v61 }
 0x468   :  { %4652 = vmatpush3.bf16.msra.mxu1 %v4649_v22  ;;  %4190 = vmatprep.mubr.f32.mxu1 %v2016_v5 }
 0x469   :  { %4654 = vmatprep.subr.bf16.mxu1 %v4653_v30 }
 0x46b   :  { %4191 = vmatmul.mubr.f32.gmra.mrb[30].mxu1 %v2026_v8 }
 0x46c   :  { %4656 = vmatpush3.bf16.msra.mxu1 %v4653_v30  ;;  %4225 = vmatprep.mubr.msk.f32.mxu1 %vm1745_vm3, %v7035_v40 }
 0x46d   :  { %4658 = vmatprep.subr.bf16.mxu1 %v5181_v51 }
 0x46f   :  { %4226 = vmatmul.mubr.msk.f32.vlgmr.msra.gmra.mrb[16].mxu1 %vm1746_vm4, %v7035_v40 }
 0x470   :  { %4660 = vmatpush3.bf16.msra.mxu1 %v5181_v51  ;;  %4228 = vmatprep.mubr.msk.f32.mxu1 %vm1747_vm5, %v7035_v40 }
 0x471   :  { %4662 = vmatprep.subr.bf16.mxu1 %v5747_v50 }
 0x473   :  { %4229 = vmatmul.mubr.msk.f32.gmra.mrb[18].mxu1 %vm1748_vm6, %v7035_v40 }
 0x474   :  { %4664 = vmatpush3.bf16.msra.mxu1 %v5747_v50  ;;  %4231 = vmatprep.mubr.msk.f32.mxu1 %vm1749_vm7, %v7035_v40 }
 0x475   :  { %4666 = vmatprep.subr.bf16.mxu1 %v5753_v18 }
 0x477   :  { %4232 = vmatmul.mubr.msk.f32.gmra.mrb[20].mxu1 %vm1750_vm8, %v7035_v40 }
 0x478   :  { %4668 = vmatpush3.bf16.msra.mxu1 %v5753_v18  ;;  %4234 = vmatprep.mubr.msk.f32.mxu1 %vm1751_vm9, %v7035_v40 }
 0x479   :  { %4670 = vmatprep.subr.bf16.mxu1 %v6994_v31 }
 0x47b   :  { %4235 = vmatmul.mubr.msk.f32.gmra.mrb[22].mxu1 %vm1752_vm10, %v7035_v40 }
 0x47c   :  { %4672 = vmatpush3.bf16.msra.mxu1 %v6994_v31  ;;  %4237 = vmatprep.mubr.msk.f32.mxu1 %vm1753_vm11, %v7035_v40 }
 0x47d   :  { %4674 = vmatprep.subr.bf16.mxu1 %v6996_v3 }
 0x47f   :  { %4238 = vmatmul.mubr.msk.f32.gmra.mrb[24].mxu1 %vm1754_vm12, %v7035_v40 }
 0x480   :  { %4676 = vmatpush3.bf16.msra.mxu1 %v6996_v3  ;;  %4240 = vmatprep.mubr.msk.f32.mxu1 %vm1755_vm13, %v7035_v40 }
 0x481   :  { %4678 = vmatprep.subr.bf16.mxu1 %v6997_v9 }
 0x483   :  { %4241 = vmatmul.mubr.msk.f32.gmra.mrb[26].mxu1 %vm1756_vm14, %v7035_v40 }
 0x484   :  { %4680 = vmatpush3.bf16.msra.mxu1 %v6997_v9  ;;  %4243 = vmatprep.mubr.msk.f32.mxu1 %vm1757_vm15, %v7035_v40  ;;  %v4874_v9 = vld [vmem:[%s6856_s0 + $0x38] sm:$0xff] }
 0x485   :  { %4682 = vmatprep.subr.bf16.mxu1 %v6998_v43 }
 0x487   :  { %4244 = vmatmul.mubr.msk.f32.gmra.mrb[28].mxu1 %vm1758_vm1, %v7035_v40 }
 0x488   :  { %4684 = vmatpush3.bf16.msra.mxu1 %v6998_v43  ;;  %4246 = vmatprep.mubr.msk.f32.mxu1 %vm1759_vm2, %v7035_v40 }
 0x489   :  { %4686 = vmatprep.subr.bf16.mxu1 %v6999_v1 }
 0x48b   :  { %4247 = vmatmul.mubr.msk.f32.gmra.mrb[30].mxu1 %vm1760_vm0, %v7035_v40 }
 0x48c   :  { %4688 = vmatpush3.bf16.msra.mxu1 %v6999_v1  ;;  %4281 = vmatprep.mubr.msk.f32.mxu1 %vm1745_vm3, %v7035_v40  ;;  %vm7036_vm3 = vcmask 261120  }
 0x48f   :  { %4282 = vmatmul.mubr.msk.f32.vlgmr.msra.gmra.mrb[16].mxu1 %vm1746_vm4, %v7035_v40  ;;  %vm7037_vm4 = vmmov %vm7036_vm3 }
 0x490   :  { %4284 = vmatprep.mubr.msk.f32.mxu1 %vm1747_vm5, %v7035_v40 }
 0x493   :  { %4285 = vmatmul.mubr.msk.f32.gmra.mrb[18].mxu1 %vm1748_vm6, %v7035_v40 }
 0x494   :  { %4287 = vmatprep.mubr.msk.f32.mxu1 %vm1749_vm7, %v7035_v40 }
 0x497   :  { %4288 = vmatmul.mubr.msk.f32.gmra.mrb[20].mxu1 %vm1750_vm8, %v7035_v40 }
 0x498   :  { %4290 = vmatprep.mubr.msk.f32.mxu1 %vm1751_vm9, %v7035_v40 }
 0x49b   :  { %4291 = vmatmul.mubr.msk.f32.gmra.mrb[22].mxu1 %vm1752_vm10, %v7035_v40 }
 0x49c   :  { %4293 = vmatprep.mubr.msk.f32.mxu1 %vm1753_vm11, %v7035_v40 }
 0x49f   :  { %4294 = vmatmul.mubr.msk.f32.gmra.mrb[24].mxu1 %vm1754_vm12, %v7035_v40 }
 0x4a0   :  { %4296 = vmatprep.mubr.msk.f32.mxu1 %vm1755_vm13, %v7035_v40 }
 0x4a3   :  { %4297 = vmatmul.mubr.msk.f32.gmra.mrb[26].mxu1 %vm1756_vm14, %v7035_v40 }
 0x4a4   :  { %4299 = vmatprep.mubr.msk.f32.mxu1 %vm1757_vm15, %v7035_v40 }
 0x4a7   :  { %4300 = vmatmul.mubr.msk.f32.gmra.mrb[28].mxu1 %vm1758_vm1, %v7035_v40 }
 0x4a8   :  { %4302 = vmatprep.mubr.msk.f32.mxu1 %vm1759_vm2, %v7035_v40 }
 0x4ab   :  { %4303 = vmatmul.mubr.msk.f32.gmra.mrb[30].mxu1 %vm1760_vm0, %v7035_v40  ;;  %vm7038_vm0 = vmmov %vm7036_vm3 }
 0x4ac   :  { %vm7039_vm5 = vmmov %vm7038_vm0 }
 0x4ad   :  { %vm7040_vm6 = vmmov %vm7038_vm0 }
 0x4ae   :  { %vm7041_vm7 = vmmov %vm7038_vm0 }
 0x4af   :  { %vm7042_vm8 = vmmov %vm7038_vm0 }
 0x4b0   :  { %vm7043_vm9 = vmmov %vm7038_vm0 }
 0x4b1   :  { %vm7044_vm10 = vmmov %vm7038_vm0 }
 0x4b2   :  { %vm7045_vm11 = vmmov %vm7038_vm0 }
 0x4b3   :  { %vm7046_vm12 = vmmov %vm7038_vm0 }
 0x4b4   :  { %vm7047_vm13 = vmmov %vm7038_vm0 }
 0x4b5   :  { %vm7048_vm14 = vmmov %vm7038_vm0 }
 0x4b6   :  { %vm7049_vm15 = vmmov %vm7038_vm0 }
 0x4b7   :  { %vm7050_vm1 = vmmov %vm7038_vm0 }
 0x4b8   :  { %vm7051_vm2 = vmmov %vm7038_vm0 }
 0x562   :  { %v4283_v51 = vpop.f32.mrb[16].mxu1 }
 0x563   :  { %3080 = vst.msk [vmem:[%s6859_s3 + $0x8] sm:$0xff] %vm7036_vm3, %v4283_v51  ;;  %v3096_v50 = vsub.f32 %v4283_v51, %v4868_v4  ;;  %v2985_v18 = vpop.f32.mrb[17].mxu1  ;;  %vm7052_vm3 = vmmov %vm7038_vm0 }
 0x564   :  { %3079 = vst.msk [vmem:[%s6859_s3] sm:$0xff] %vm7037_vm4, %v2985_v18  ;;  %v3095_v32 = vsub.f32 %v2985_v18, %v4869_v20  ;;  %vm7053_vm4 = vmmov %vm7038_vm0  ;;  %v4880_v20 = vld [vmem:[%s6856_s0 + $0x68] sm:$0xff] }
 0x565   :  { %v3112_v26 = vmul.f32 %v3096_v50, %v3096_v50 }
 0x566   :  { %v3111_v44 = vmul.f32 %v3095_v32, %v3095_v32  ;;  %v4286_v49 = vpop.f32.mrb[18].mxu1 }
 0x567   :  { %v3128_v24 = vsel %vm7038_vm0, %v3112_v26, 0.0  ;;  %3082 = vst.msk [vmem:[%s6859_s3 + $0x18] sm:$0xff] %vm7039_vm5, %v4286_v49  ;;  %v3098_v48 = vsub.f32 %v4286_v49, %v4870_v60  ;;  %v2997_v11 = vpop.f32.mrb[19].mxu1  ;;  %vm7054_vm5 = vmmov %vm7038_vm0  ;;  %v4881_v49 = vld [vmem:[%s6856_s0 + $0x60] sm:$0xff] }
 0x568   :  { %v3127_v6 = vsel %vm7040_vm6, %v3111_v44, 0.0  ;;  %3081 = vst.msk [vmem:[%s6859_s3 + $0x10] sm:$0xff] %vm7041_vm7, %v2997_v11  ;;  %v3097_v15 = vsub.f32 %v2997_v11, %v4871_v56  ;;  %vm7055_vm6 = vmmov %vm7038_vm0 }
 0x569   :  { %v3129_v7 = vadd.f32 %v3128_v24, %v3127_v6  ;;  %v3114_v63 = vmul.f32 %v3098_v48, %v3098_v48  ;;  %vm7056_vm7 = vmmov %vm7038_vm0 }
 0x56a   :  { %v3113_v59 = vmul.f32 %v3097_v15, %v3097_v15  ;;  %v4289_v14 = vpop.f32.mrb[20].mxu1 }
 0x56b   :  { %3084 = vst.msk [vmem:[%s6859_s3 + $0x28] sm:$0xff] %vm7042_vm8, %v4289_v14  ;;  %v3100_v41 = vsub.f32 %v4289_v14, %v4872_v57  ;;  %v3009_v39 = vpop.f32.mrb[21].mxu1  ;;  %v3132_v5 = vsel %vm7045_vm11, %v3114_v63, 0.0  ;;  %vm7057_vm8 = vmmov %vm7038_vm0  ;;  %v4883_v57 = vld [vmem:[%s6856_s0 + $0x70] sm:$0xff] }
 0x56c   :  { %v3130_v17 = vsel %vm7043_vm9, %v3113_v59, 0.0  ;;  %3083 = vst.msk [vmem:[%s6859_s3 + $0x20] sm:$0xff] %vm7044_vm10, %v3009_v39  ;;  %v3099_v34 = vsub.f32 %v3009_v39, %v4873_v29  ;;  %vm7058_vm9 = vmmov %vm7038_vm0 }
 0x56d   :  { %v3131_v61 = vadd.f32 %v3130_v17, %v3129_v7  ;;  %v3116_v2 = vmul.f32 %v3100_v41, %v3100_v41  ;;  %vm7059_vm10 = vmmov %vm7038_vm0  ;;  %v4882_v7 = vld [vmem:[%s6856_s0 + $0x78] sm:$0xff] }
 0x56e   :  { %v3115_v8 = vmul.f32 %v3099_v34, %v3099_v34  ;;  %v4292_v31 = vpop.f32.mrb[22].mxu1  ;;  %vm7060_vm11 = vmmov %vm7038_vm0 }
 0x56f   :  { %v3133_v3 = vadd.f32 %v3132_v5, %v3131_v61  ;;  %3086 = vst.msk [vmem:[%s6859_s3 + $0x38] sm:$0xff] %vm7046_vm12, %v4292_v31  ;;  %v3102_v43 = vsub.f32 %v4292_v31, %v4874_v9  ;;  %v3021_v1 = vpop.f32.mrb[23].mxu1  ;;  %v3136_v19 = vsel %vm7049_vm15, %v3116_v2, 0.0  ;;  %vm7061_vm12 = vmmov %vm7038_vm0 }
 0x570   :  { %v3134_v38 = vsel %vm7047_vm13, %v3115_v8, 0.0  ;;  %3085 = vst.msk [vmem:[%s6859_s3 + $0x30] sm:$0xff] %vm7048_vm14, %v3021_v1  ;;  %v3101_v58 = vsub.f32 %v3021_v1, %v4875_v42  ;;  %vm7062_vm13 = vmmov %vm7038_vm0 }
 0x571   :  { %v3135_v28 = vadd.f32 %v3134_v38, %v3133_v3  ;;  %v3118_v47 = vmul.f32 %v3102_v43, %v3102_v43  ;;  %vm7063_vm14 = vmmov %vm7038_vm0 }
 0x572   :  { %v3117_v55 = vmul.f32 %v3101_v58, %v3101_v58  ;;  %v4295_v21 = vpop.f32.mrb[24].mxu1  ;;  %vm7064_vm15 = vmmov %vm7038_vm0 }
 0x573   :  { %v3137_v37 = vadd.f32 %v3136_v19, %v3135_v28  ;;  %3088 = vst.msk [vmem:[%s6859_s3 + $0x48] sm:$0xff] %vm7050_vm1, %v4295_v21  ;;  %v3104_v33 = vsub.f32 %v4295_v21, %v4876_v46  ;;  %v3033_v0 = vpop.f32.mrb[25].mxu1  ;;  %v3140_v16 = vsel %vm7053_vm4, %v3118_v47, 0.0  ;;  %vm7065_vm1 = vmmov %vm7038_vm0 }
 0x574   :  { %v3138_v27 = vsel %vm7051_vm2, %v3117_v55, 0.0  ;;  %3087 = vst.msk [vmem:[%s6859_s3 + $0x40] sm:$0xff] %vm7052_vm3, %v3033_v0  ;;  %v3103_v45 = vsub.f32 %v3033_v0, %v4877_v62  ;;  %vm7066_vm2 = vmmov %vm7038_vm0  ;;  %vm3164_vm3 = vcmask 253952  }
 0x575   :  { %v3139_v23 = vadd.f32 %v3138_v27, %v3137_v37  ;;  %v3120_v35 = vmul.f32 %v3104_v33, %v3104_v33 }
 0x576   :  { %v3119_v53 = vmul.f32 %v3103_v45, %v3103_v45  ;;  %v4298_v10 = vpop.f32.mrb[26].mxu1 }
 0x577   :  { %v3141_v36 = vadd.f32 %v3140_v16, %v3139_v23  ;;  %3090 = vst.msk [vmem:[%s6859_s3 + $0x58] sm:$0xff] %vm7038_vm0, %v4298_v10  ;;  %v3106_v22 = vsub.f32 %v4298_v10, %v4878_v52  ;;  %v3045_v12 = vpop.f32.mrb[27].mxu1  ;;  %v3144_v40 = vsel %vm7056_vm7, %v3120_v35, 0.0 }
 0x578   :  { %v3142_v25 = vsel %vm7054_vm5, %v3119_v53, 0.0  ;;  %3089 = vst.msk [vmem:[%s6859_s3 + $0x50] sm:$0xff] %vm7055_vm6, %v3045_v12  ;;  %v3105_v54 = vsub.f32 %v3045_v12, %v4879_v13 }
 0x579   :  { %v3143_v30 = vadd.f32 %v3142_v25, %v3141_v36  ;;  %v3122_v51 = vmul.f32 %v3106_v22, %v3106_v22 }
 0x57a   :  { %v3121_v4 = vmul.f32 %v3105_v54, %v3105_v54  ;;  %v4301_v50 = vpop.f32.mrb[28].mxu1 }
 0x57b   :  { %v3145_v18 = vadd.f32 %v3144_v40, %v3143_v30  ;;  %3092 = vst.msk [vmem:[%s6859_s3 + $0x68] sm:$0xff] %vm7057_vm8, %v4301_v50  ;;  %v3108_v32 = vsub.f32 %v4301_v50, %v4880_v20  ;;  %v3057_v26 = vpop.f32.mrb[29].mxu1  ;;  %v3148_v48 = vsel %vm7060_vm11, %v3122_v51, 0.0 }
 0x57c   :  { %v3146_v44 = vsel %vm7058_vm9, %v3121_v4, 0.0  ;;  %3091 = vst.msk [vmem:[%s6859_s3 + $0x60] sm:$0xff] %vm7059_vm10, %v3057_v26  ;;  %v3107_v24 = vsub.f32 %v3057_v26, %v4881_v49 }
 0x57d   :  { %v3147_v60 = vadd.f32 %v3146_v44, %v3145_v18  ;;  %v3124_v11 = vmul.f32 %v3108_v32, %v3108_v32 }
 0x57e   :  { %v3123_v6 = vmul.f32 %v3107_v24, %v3107_v24  ;;  %v4304_v56 = vpop.f32.mrb[30].mxu1 }
 0x57f   :  { %v3149_v15 = vadd.f32 %v3148_v48, %v3147_v60  ;;  %3094 = vst.msk [vmem:[%s6859_s3 + $0x78] sm:$0xff] %vm7061_vm12, %v4304_v56  ;;  %v3110_v63 = vsub.f32 %v4304_v56, %v4882_v7  ;;  %v3069_v59 = vpop.f32.mrb[31].mxu1  ;;  %v3152_v17 = vsel %vm7064_vm15, %v3124_v11, 0.0 }
 0x580   :  { %v3150_v14 = vsel %vm7062_vm13, %v3123_v6, 0.0  ;;  %3093 = vst.msk [vmem:[%s6859_s3 + $0x70] sm:$0xff] %vm7063_vm14, %v3069_v59  ;;  %v3109_v41 = vsub.f32 %v3069_v59, %v4883_v57  ;;  %s4910_s3 = smov [#allocation2]  }
 0x581   :  { %v3151_v39 = vadd.f32 %v3150_v14, %v3149_v15  ;;  %v3126_v29 = vmul.f32 %v3110_v63, %v3110_v63  ;;  %s3174_s14 = sshll.u32 %s4910_s3, 4  ;;  %s3175_s14 = int_to_ptr.vmem [resolvable:$true] %s3174_s14 }
 0x582   :  { %v3125_v34 = vmul.f32 %v3109_v41, %v3109_v41  ;;  %s4884_s0 = scalar_lea.vmem %s3175_s14, 16  ;;  %s4888_s15 = scalar_lea.vmem %s3175_s14, 32 }
 0x583   :  { %v3153_v61 = vadd.f32 %v3152_v17, %v3151_v39  ;;  %v3156_v8 = vsel %vm7066_vm2, %v3126_v29, 0.0  ;;  %p4885_p0 = scmp.ne.s32.totalorder %s3175_s14, %s4884_s0  ;;  %p4889_p1 = scmp.lt.s32.totalorder %s3175_s14, %s3175_s14 }
 0x584   :  { %v3154_v5 = vsel %vm7065_vm1, %v3125_v34, 0.0  ;;  %p4890_p2 = scmp.lt.s32.totalorder %s4888_s15, %s4884_s0 }
 0x585   :  { %v3155_v2 = vadd.f32 %v3154_v5, %v3153_v61 }
 0x586   :  { %p4891_p3 = por %p4890_p2, %p4889_p1 }
 0x587   :  { %v3157_v31 = vadd.f32 %v3156_v8, %v3155_v2 }
 0x588   :  { %p4892_p4 = pnand %p4891_p3, %p4885_p0 }
 0x589   :  { %v3158_v3 = vrot.slane %v3157_v31, 4 }
 0x58b   :  { %v3159_v9 = vadd.f32 %v3158_v3, %v3157_v31 }
 0x58d   :  { %v3160_v43 = vrot.slane %v3159_v9, 2 }
 0x58f   :  { %v3161_v1 = vadd.f32 %v3160_v43, %v3159_v9 }
 0x591   :  { %v3162_v38 = vrot.slane %v3161_v1, 1 }
 0x593   :  { %v3163_v42 = vadd.f32 %v3162_v38, %v3161_v1 }
 0x595   :  { %3165 = vst.msk [vmem:[#allocation2] sm:$0x1] %vm3164_vm3, %v3163_v42 }
 0x596   :  { %4895 = shalt.err (!%p4892_p4)
}
 0x597   :  { %s4896_s18 = scalar_lea.hbm %s6860_s4, 16 }
 0x598   :  { %p4897_p5 = scmp.ne.s32.totalorder %s6860_s4, %s4896_s18  ;;  %p4900_p6 = scmp.lt.u32.totalorder %s4896_s18, %s6860_s4 }
 0x59a   :  { %p4902_p7 = pnand %p4900_p6, %p4897_p5 }
 0x59c   :  { %4905 = shalt.err (!%p4902_p7)
}
 0x59d   :  { %3177 = dma.vmem_to_hbm [thread:$0]  %s3175_s14, 16, %s6860_s4, [#allocation3]  }
 0x59e   :  { %4906 = dma.done.wait [#allocation3], 16  }
 0x59f   :  { %4907 = vsyncadd [#allocation3], 4294967280 }
 0x5a0   :  { %3183 = vsyncpa [#allocation3], 1 }

</bundles_post_ra>
